<compile_context>
chip_gen: v6e
topology: v6e:2x2x1
jax: 0.10.0
libtpu: 0.0.40
codegen_flags: <defaults>
</compile_context>

<pallas_src>
import functools

import jax
import jax.numpy as jnp
import numpy as np
from jax.experimental import pallas as pl
from jax.experimental.pallas import tpu as pltpu

LN_EPS = 1e-5
INV_SQRT2 = 0.7071067811865476


# ----------------------------- in-kernel helpers ----------------------------

def _layernorm(x, g, b):
    # x: (rows, H); g, b: (1, H)
    m = jnp.mean(x, axis=-1, keepdims=True)
    c = x - m
    var = jnp.mean(c * c, axis=-1, keepdims=True)
    return c * jax.lax.rsqrt(var + LN_EPS) * g + b


def _mha_heads(q2d, kv2d, wqT_h, bq_h, wkT_h, bk_h, wvT_h, bv_h, woT_h, bo, *, num_heads):
    """Multi-head attention for one sample, heads batched in one contraction.

    q2d: (Lq, H), kv2d: (Lk, H)
    w{q,k,v}T_h: (nh, H, hd)   b{q,k,v}_h: (nh, 1, hd)
    woT_h: (nh, hd, H)         bo: (1, H)
    """
    Lq, H = q2d.shape
    Lk = kv2d.shape[0]
    nh = num_heads
    hd = H // nh
    scale = 1.0 / float(np.sqrt(hd))

    qb = jnp.broadcast_to(q2d[None], (nh, Lq, H))
    kb = jnp.broadcast_to(kv2d[None], (nh, Lk, H))
    qh = jnp.einsum("hld,hdk->hlk", qb, wqT_h, preferred_element_type=jnp.float32) + bq_h
    kh = jnp.einsum("hld,hdk->hlk", kb, wkT_h, preferred_element_type=jnp.float32) + bk_h
    vh = jnp.einsum("hld,hdk->hlk", kb, wvT_h, preferred_element_type=jnp.float32) + bv_h

    s = jnp.einsum("hqd,hkd->hqk", qh, kh, preferred_element_type=jnp.float32) * scale
    s = s - jnp.max(s, axis=-1, keepdims=True)
    p = jnp.exp(s)
    p = p * pl.reciprocal(jnp.sum(p, axis=-1, keepdims=True), approx=True)

    o = jnp.einsum("hqk,hkd->hqd", p, vh, preferred_element_type=jnp.float32)   # (nh, Lq, hd)
    out = jnp.einsum("hqd,hdk->hqk", o, woT_h, preferred_element_type=jnp.float32)
    return jnp.sum(out, axis=0) + bo                                            # (Lq, H)


# ----------------------------- fused kernels --------------------------------

def _perceiver_kernel(x_ref, pwT, pb, wvT, bv, woT, bo, lat_ref,
                      g1, b1, w1T, fb1, w2T, fb2, g2, b2, o_ref):
    """Whole PerceiverResampler block for the full batch (no grid).

    x: (B, D) -> output rows (B*L, H), row-major over (batch, latent).
    """
    x = x_ref[...].astype(jnp.float32)                                           # (B, D)
    proj = jnp.dot(x, pwT[...], preferred_element_type=jnp.float32) + pb[...]    # (B, H)

    # Key/value sequence length is 1 -> softmax == 1 -> attention out = out_proj(V).
    v = jnp.dot(proj, wvT[...], preferred_element_type=jnp.float32) + bv[...]    # (B, H)
    attn = jnp.dot(v, woT[...], preferred_element_type=jnp.float32) + bo[...]    # (B, H)

    lat = lat_ref[...].astype(jnp.float32)                                       # (L, H)
    B = attn.shape[0]
    L, H = lat.shape
    y = (attn[:, None, :] + lat[None, :, :]).reshape(B * L, H)                   # attn + latents

    h1 = _layernorm(y, g1[...], b1[...])                                         # LN1
    hmid = jnp.dot(h1, w1T[...], preferred_element_type=jnp.float32) + fb1[...]  # (B*L, 4H)
    hmid = 0.5 * hmid * (1.0 + jax.lax.erf(hmid * INV_SQRT2))                    # exact GELU
    ff = jnp.dot(hmid, w2T[...], preferred_element_type=jnp.float32) + fb2[...]  # (B*L, H)
    o_ref[...] = _layernorm(ff + h1, g2[...], b2[...]).astype(o_ref.dtype)       # LN2


def _cross_kernel(t_ref, g_ref, wqT, bq, wkT, bk, wvT, bv, woT, bo, n1g, n1b,
                  tp_ref, gp_ref, *, num_heads):
    """Bi-directional cross attention + norm1 + mean pooling for one batch element."""
    t = t_ref[...].astype(jnp.float32)   # (L, H) text latents
    g = g_ref[...].astype(jnp.float32)   # (L, H) gene latents

    w = (wqT[...], bq[...], wkT[...], bk[...], wvT[...], bv[...], woT[...], bo[...])
    text_att = _mha_heads(t, g, *w, num_heads=num_heads)                 # text attends to gene
    t_norm = _layernorm(t + text_att, n1g[...], n1b[...])                # norm1 (KV for 2nd attn)
    gene_att = _mha_heads(g, t_norm, *w, num_heads=num_heads)            # gene attends to text
    # norm2(gene + gene_att) is dead w.r.t. the module outputs -> skipped.

    tp_ref[0] = jnp.mean(text_att, axis=0, keepdims=True).astype(tp_ref.dtype)
    gp_ref[0] = jnp.mean(gene_att, axis=0, keepdims=True).astype(gp_ref.dtype)


# ----------------------------- Pallas wrappers ------------------------------

def perceiver_fused(x, p):
    """One pallas_call per PerceiverResampler; all weights VMEM-resident, no grid."""
    B = x.shape[0]
    L, H = p["latents"].shape
    return pl.pallas_call(
        _perceiver_kernel,
        out_shape=jax.ShapeDtypeStruct((B * L, H), jnp.float32),
    )(x, p["projT"], p["projb"], p["wvT"], p["bv"], p["woT"], p["bo"], p["latents"],
      p["ln1g"], p["ln1b"], p["ffw1T"], p["ffb1"], p["ffw2T"], p["ffb2"],
      p["ln2g"], p["ln2b"])


def _const_spec(a):
    n = a.ndim

    def idx(b):
        return (0,) * n

    return pl.BlockSpec(a.shape, idx)


def cross_fused(text_rows, gene_rows, xp, B, L, H, num_heads):
    """One pallas_call for both cross attentions + norm1 + both mean pools, gridded over batch."""
    kernel = functools.partial(_cross_kernel, num_heads=num_heads)
    tp, gp = pl.pallas_call(
        kernel,
        out_shape=(jax.ShapeDtypeStruct((B, 1, H), jnp.float32),
                   jax.ShapeDtypeStruct((B, 1, H), jnp.float32)),
        grid=(B,),
        in_specs=[
            pl.BlockSpec((L, H), lambda b: (b, 0)),
            pl.BlockSpec((L, H), lambda b: (b, 0)),
            _const_spec(xp["wqT_h"]), _const_spec(xp["bq_h"]),
            _const_spec(xp["wkT_h"]), _const_spec(xp["bk_h"]),
            _const_spec(xp["wvT_h"]), _const_spec(xp["bv_h"]),
            _const_spec(xp["woT_h"]), _const_spec(xp["bo"]),
            _const_spec(xp["n1g"]), _const_spec(xp["n1b"]),
        ],
        out_specs=(pl.BlockSpec((1, 1, H), lambda b: (b, 0, 0)),
                   pl.BlockSpec((1, 1, H), lambda b: (b, 0, 0))),
        compiler_params=pltpu.CompilerParams(dimension_semantics=("parallel",)),
    )(text_rows, gene_rows, xp["wqT_h"], xp["bq_h"], xp["wkT_h"], xp["bk_h"],
      xp["wvT_h"], xp["bv_h"], xp["woT_h"], xp["bo"], xp["n1g"], xp["n1b"])
    return tp[:, 0, :], gp[:, 0, :]


def cross_modal_forward(x1, x2, prep, num_heads):
    """CrossModalAttention.forward (return_attn=False; dropout = identity / eval mode)."""
    text_rows = perceiver_fused(x1, prep["text"])     # (B*L, H)
    gene_rows = perceiver_fused(x2, prep["gene"])     # (B*L, H)
    B = x1.shape[0]
    L, H = prep["text"]["latents"].shape
    return cross_fused(text_rows, gene_rows, prep["xattn"], B, L, H, num_heads)


# ----------------------------- parameter prep (one-time) --------------------

def prepare_params(raw, H, num_heads):
    """One-time re-layout of torch-style params into kernel-ready form."""
    nh = num_heads
    hd = H // nh

    def prep_perceiver(p):
        wv = p["attn_in_w"][2 * H:]        # only V / out_proj matter when Lk == 1
        bv = p["attn_in_b"][2 * H:]
        return dict(
            projT=p["in_proj_w"].T, projb=p["in_proj_b"][None, :],
            wvT=wv.T, bv=bv[None, :],
            woT=p["attn_out_w"].T, bo=p["attn_out_b"][None, :],
            latents=p["latents"],
            ln1g=p["ln1_g"][None, :], ln1b=p["ln1_b"][None, :],
            ffw1T=p["ff_w1"].T, ffb1=p["ff_b1"][None, :],
            ffw2T=p["ff_w2"].T, ffb2=p["ff_b2"][None, :],
            ln2g=p["ln2_g"][None, :], ln2b=p["ln2_b"][None, :],
        )

    xp = raw["x_attn"]
    wq, wk, wv = xp["in_w"][:H], xp["in_w"][H:2 * H], xp["in_w"][2 * H:]
    bq, bk, bv = xp["in_b"][:H], xp["in_b"][H:2 * H], xp["in_b"][2 * H:]

    def heads_w(w):   # (H, H) torch (out, in) -> (nh, H_in, hd), transposed per head
        return jnp.stack([w[h * hd:(h + 1) * hd, :].T for h in range(nh)], axis=0)

    def heads_b(b):
        return b.reshape(nh, 1, hd)

    woT_h = jnp.stack([xp["out_w"][:, h * hd:(h + 1) * hd].T for h in range(nh)], axis=0)

    return dict(
        text=prep_perceiver(raw["text"]),
        gene=prep_perceiver(raw["gene"]),
        xattn=dict(
            wqT_h=heads_w(wq), bq_h=heads_b(bq),
            wkT_h=heads_w(wk), bk_h=heads_b(bk),
            wvT_h=heads_w(wv), bv_h=heads_b(bv),
            woT_h=woT_h, bo=xp["out_b"][None, :],
            n1g=raw["norm1_g"][None, :], n1b=raw["norm1_b"][None, :],
        ),
    )


# ----------------------------- raw parameter init ---------------------------

def init_perceiver(key, input_dim, H, L):
    ks = jax.random.split(key, 9)
    s = 0.05
    F = 4 * H
    return dict(
        latents=jax.random.normal(ks[0], (L, H), jnp.float32),
        in_proj_w=jax.random.normal(ks[1], (H, input_dim), jnp.float32) * s,
        in_proj_b=jax.random.normal(ks[2], (H,), jnp.float32) * s,
        attn_in_w=jax.random.normal(ks[3], (3 * H, H), jnp.float32) * s,
        attn_in_b=jax.random.normal(ks[4], (3 * H,), jnp.float32) * s,
        attn_out_w=jax.random.normal(ks[5], (H, H), jnp.float32) * s,
        attn_out_b=jnp.zeros((H,), jnp.float32),
        ln1_g=jnp.ones((H,), jnp.float32), ln1_b=jnp.zeros((H,), jnp.float32),
        ln2_g=jnp.ones((H,), jnp.float32), ln2_b=jnp.zeros((H,), jnp.float32),
        ff_w1=jax.random.normal(ks[6], (F, H), jnp.float32) * s,
        ff_b1=jax.random.normal(ks[7], (F,), jnp.float32) * s,
        ff_w2=jax.random.normal(ks[8], (H, F), jnp.float32) * s,
        ff_b2=jnp.zeros((H,), jnp.float32),
    )


def init_params(key, H, dim1, dim2, L):
    kt, kg, k1, k2, k3 = jax.random.split(key, 5)
    s = 0.05
    return dict(
        text=init_perceiver(kt, dim1, H, L),
        gene=init_perceiver(kg, dim2, H, L),
        x_attn=dict(
            in_w=jax.random.normal(k1, (3 * H, H), jnp.float32) * s,
            in_b=jax.random.normal(k2, (3 * H,), jnp.float32) * s,
            out_w=jax.random.normal(k3, (H, H), jnp.float32) * s,
            out_b=jnp.zeros((H,), jnp.float32),
        ),
        norm1_g=jnp.ones((H,), jnp.float32), norm1_b=jnp.zeros((H,), jnp.float32),
        norm2_g=jnp.ones((H,), jnp.float32), norm2_b=jnp.zeros((H,), jnp.float32),
    )


# ----------------------------- pure-JAX reference ---------------------------

def _ref_ln(x, g, b):
    m = jnp.mean(x, -1, keepdims=True)
    v = jnp.mean((x - m) ** 2, -1, keepdims=True)
    return (x - m) / jnp.sqrt(v + LN_EPS) * g + b


def _ref_mha(q, kv, in_w, in_b, out_w, out_b, nh):
    B, Lq, H = q.shape
    Lk = kv.shape[1]
    hd = H // nh
    wq, wk, wv = in_w[:H], in_w[H:2 * H], in_w[2 * H:]
    bq, bk, bv = in_b[:H], in_b[H:2 * H], in_b[2 * H:]
    qp = (q @ wq.T + bq).reshape(B, Lq, nh, hd).transpose(0, 2, 1, 3)
    kp = (kv @ wk.T + bk).reshape(B, Lk, nh, hd).transpose(0, 2, 1, 3)
    vp = (kv @ wv.T + bv).reshape(B, Lk, nh, hd).transpose(0, 2, 1, 3)
    s = jnp.einsum("bhqd,bhkd->bhqk", qp, kp) / np.sqrt(hd)
    p = jax.nn.softmax(s, axis=-1)
    o = jnp.einsum("bhqk,bhkd->bhqd", p, vp).transpose(0, 2, 1, 3).reshape(B, Lq, H)
    return o @ out_w.T + out_b


def _ref_perceiver(x, p, nh):
    B = x.shape[0]
    L, H = p["latents"].shape
    proj = x @ p["in_proj_w"].T + p["in_proj_b"]
    lat = jnp.broadcast_to(p["latents"][None], (B, L, H))
    attn = _ref_mha(lat, proj[:, None, :], p["attn_in_w"], p["attn_in_b"],
                    p["attn_out_w"], p["attn_out_b"], nh)
    h1 = _ref_ln(attn + lat, p["ln1_g"], p["ln1_b"])
    h = jax.nn.gelu(h1 @ p["ff_w1"].T + p["ff_b1"], approximate=False)
    ff = h @ p["ff_w2"].T + p["ff_b2"]
    return _ref_ln(ff + h1, p["ln2_g"], p["ln2_b"])


def ref_forward(x1, x2, params, nh):
    t = _ref_perceiver(x1, params["text"], nh)
    g = _ref_perceiver(x2, params["gene"], nh)
    xp = params["x_attn"]
    ta = _ref_mha(t, g, xp["in_w"], xp["in_b"], xp["out_w"], xp["out_b"], nh)
    t2 = _ref_ln(t + ta, params["norm1_g"], params["norm1_b"])
    ga = _ref_mha(g, t2, xp["in_w"], xp["in_b"], xp["out_w"], xp["out_b"], nh)
    return jnp.mean(ta, axis=1), jnp.mean(ga, axis=1)


# ----------------------------------- main ------------------------------------

if __name__ == "__main__":
    B, DIM1, DIM2, HIDDEN, NUM_HEADS, NUM_LATENTS = 2, 24, 40, 32, 4, 8

    key = jax.random.PRNGKey(0)
    k1, k2, kp = jax.random.split(key, 3)
    input1 = jax.random.normal(k1, (B, DIM1), jnp.float32)
    input2 = jax.random.normal(k2, (B, DIM2), jnp.float32)

    raw_params = init_params(kp, HIDDEN, DIM1, DIM2, NUM_LATENTS)
    prep = prepare_params(raw_params, HIDDEN, NUM_HEADS)   # one-time weight re-layout

    fwd = jax.jit(functools.partial(cross_modal_forward, num_heads=NUM_HEADS))
    text_pooled, gene_pooled = fwd(input1, input2, prep)
    jax.block_until_ready((text_pooled, gene_pooled))

    assert text_pooled.shape == (B, HIDDEN) and gene_pooled.shape == (B, HIDDEN)

    ref_t, ref_g = ref_forward(input1, input2, raw_params, NUM_HEADS)
    np.testing.assert_allclose(np.asarray(text_pooled), np.asarray(ref_t), rtol=2e-3, atol=2e-3)
    np.testing.assert_allclose(np.asarray(gene_pooled), np.asarray(ref_g), rtol=2e-3, atol=2e-3)

    print("KERNEL_OK")
</pallas_src>

<mosaic_0001>
module attributes {stable_mosaic.version = 11 : i64} {
  func.func @_perceiver_kernel(%arg0: memref<2x40xf32, #tpu.memory_space<vmem>>, %arg1: memref<40x32xf32, #tpu.memory_space<vmem>>, %arg2: memref<1x32xf32, #tpu.memory_space<vmem>>, %arg3: memref<32x32xf32, #tpu.memory_space<vmem>>, %arg4: memref<1x32xf32, #tpu.memory_space<vmem>>, %arg5: memref<32x32xf32, #tpu.memory_space<vmem>>, %arg6: memref<1x32xf32, #tpu.memory_space<vmem>>, %arg7: memref<8x32xf32, #tpu.memory_space<vmem>>, %arg8: memref<1x32xf32, #tpu.memory_space<vmem>>, %arg9: memref<1x32xf32, #tpu.memory_space<vmem>>, %arg10: memref<32x128xf32, #tpu.memory_space<vmem>>, %arg11: memref<1x128xf32, #tpu.memory_space<vmem>>, %arg12: memref<128x32xf32, #tpu.memory_space<vmem>>, %arg13: memref<1x32xf32, #tpu.memory_space<vmem>>, %arg14: memref<1x32xf32, #tpu.memory_space<vmem>>, %arg15: memref<1x32xf32, #tpu.memory_space<vmem>>, %arg16: memref<16x32xf32, #tpu.memory_space<vmem>>) attributes {dimension_semantics = [], scalar_prefetch = 0 : i64, scratch_operands = 0 : i64, tpu.core_type = #tpu.core_type<tc>} {
    %c0 = arith.constant 0 : index
    %c0_0 = arith.constant 0 : index
    %0 = vector.load %arg0[%c0, %c0_0] : memref<2x40xf32, #tpu.memory_space<vmem>>, vector<2x40xf32>
    %c0_1 = arith.constant 0 : index
    %c0_2 = arith.constant 0 : index
    %1 = vector.load %arg1[%c0_1, %c0_2] : memref<40x32xf32, #tpu.memory_space<vmem>>, vector<40x32xf32>
    %cst = arith.constant dense<0.000000e+00> : vector<2x32xf32>
    %2 = tpu.matmul %0, %1, %cst {dimension_numbers = #tpu.dot_dimension_numbers<[1], [0], [0], [1], [0, 0, 1, 1], [], []>} : vector<2x40xf32>, vector<40x32xf32>, vector<2x32xf32> -> vector<2x32xf32>
    %c0_3 = arith.constant 0 : index
    %c0_4 = arith.constant 0 : index
    %3 = vector.load %arg2[%c0_3, %c0_4] : memref<1x32xf32, #tpu.memory_space<vmem>>, vector<1x32xf32>
    %4 = vector.broadcast %3 : vector<1x32xf32> to vector<2x32xf32>
    %5 = arith.addf %2, %4 : vector<2x32xf32>
    %c0_5 = arith.constant 0 : index
    %c0_6 = arith.constant 0 : index
    %6 = vector.load %arg3[%c0_5, %c0_6] : memref<32x32xf32, #tpu.memory_space<vmem>>, vector<32x32xf32>
    %cst_7 = arith.constant dense<0.000000e+00> : vector<2x32xf32>
    %7 = tpu.matmul %5, %6, %cst_7 {dimension_numbers = #tpu.dot_dimension_numbers<[1], [0], [0], [1], [0, 0, 1, 1], [], []>} : vector<2x32xf32>, vector<32x32xf32>, vector<2x32xf32> -> vector<2x32xf32>
    %c0_8 = arith.constant 0 : index
    %c0_9 = arith.constant 0 : index
    %8 = vector.load %arg4[%c0_8, %c0_9] : memref<1x32xf32, #tpu.memory_space<vmem>>, vector<1x32xf32>
    %9 = vector.broadcast %8 : vector<1x32xf32> to vector<2x32xf32>
    %10 = arith.addf %7, %9 : vector<2x32xf32>
    %c0_10 = arith.constant 0 : index
    %c0_11 = arith.constant 0 : index
    %11 = vector.load %arg5[%c0_10, %c0_11] : memref<32x32xf32, #tpu.memory_space<vmem>>, vector<32x32xf32>
    %cst_12 = arith.constant dense<0.000000e+00> : vector<2x32xf32>
    %12 = tpu.matmul %10, %11, %cst_12 {dimension_numbers = #tpu.dot_dimension_numbers<[1], [0], [0], [1], [0, 0, 1, 1], [], []>} : vector<2x32xf32>, vector<32x32xf32>, vector<2x32xf32> -> vector<2x32xf32>
    %c0_13 = arith.constant 0 : index
    %c0_14 = arith.constant 0 : index
    %13 = vector.load %arg6[%c0_13, %c0_14] : memref<1x32xf32, #tpu.memory_space<vmem>>, vector<1x32xf32>
    %14 = vector.broadcast %13 : vector<1x32xf32> to vector<2x32xf32>
    %15 = arith.addf %12, %14 : vector<2x32xf32>
    %c0_15 = arith.constant 0 : index
    %c0_16 = arith.constant 0 : index
    %16 = vector.load %arg7[%c0_15, %c0_16] : memref<8x32xf32, #tpu.memory_space<vmem>>, vector<8x32xf32>
    %17 = vector.shape_cast %15 : vector<2x32xf32> to vector<2x1x32xf32>
    %18 = vector.shape_cast %16 : vector<8x32xf32> to vector<1x8x32xf32>
    %19 = vector.broadcast %17 : vector<2x1x32xf32> to vector<2x8x32xf32>
    %20 = vector.broadcast %18 : vector<1x8x32xf32> to vector<2x8x32xf32>
    %21 = arith.addf %19, %20 : vector<2x8x32xf32>
    %22 = vector.shape_cast %21 : vector<2x8x32xf32> to vector<16x32xf32>
    %c0_17 = arith.constant 0 : index
    %c0_18 = arith.constant 0 : index
    %23 = vector.load %arg8[%c0_17, %c0_18] : memref<1x32xf32, #tpu.memory_space<vmem>>, vector<1x32xf32>
    %c0_19 = arith.constant 0 : index
    %c0_20 = arith.constant 0 : index
    %24 = vector.load %arg9[%c0_19, %c0_20] : memref<1x32xf32, #tpu.memory_space<vmem>>, vector<1x32xf32>
    %cst_21 = arith.constant dense<0.000000e+00> : vector<16xf32>
    %25 = vector.multi_reduction <add>, %22, %cst_21 [1] : vector<16x32xf32> to vector<16xf32>
    %26 = vector.shape_cast %25 : vector<16xf32> to vector<16x1xf32>
    %cst_22 = arith.constant 3.200000e+01 : f32
    %27 = vector.broadcast %cst_22 : f32 to vector<16x1xf32>
    %28 = arith.divf %26, %27 : vector<16x1xf32>
    %29 = vector.broadcast %28 : vector<16x1xf32> to vector<16x32xf32>
    %30 = arith.subf %22, %29 : vector<16x32xf32>
    %31 = arith.mulf %30, %30 : vector<16x32xf32>
    %cst_23 = arith.constant dense<0.000000e+00> : vector<16xf32>
    %32 = vector.multi_reduction <add>, %31, %cst_23 [1] : vector<16x32xf32> to vector<16xf32>
    %33 = vector.shape_cast %32 : vector<16xf32> to vector<16x1xf32>
    %cst_24 = arith.constant 3.200000e+01 : f32
    %34 = vector.broadcast %cst_24 : f32 to vector<16x1xf32>
    %35 = arith.divf %33, %34 : vector<16x1xf32>
    %cst_25 = arith.constant 9.99999974E-6 : f32
    %36 = vector.broadcast %cst_25 : f32 to vector<16x1xf32>
    %37 = arith.addf %35, %36 : vector<16x1xf32>
    %38 = math.rsqrt %37 : vector<16x1xf32>
    %39 = vector.broadcast %38 : vector<16x1xf32> to vector<16x32xf32>
    %40 = arith.mulf %30, %39 : vector<16x32xf32>
    %41 = vector.broadcast %23 : vector<1x32xf32> to vector<16x32xf32>
    %42 = arith.mulf %40, %41 : vector<16x32xf32>
    %43 = vector.broadcast %24 : vector<1x32xf32> to vector<16x32xf32>
    %44 = arith.addf %42, %43 : vector<16x32xf32>
    %c0_26 = arith.constant 0 : index
    %c0_27 = arith.constant 0 : index
    %45 = vector.load %arg10[%c0_26, %c0_27] : memref<32x128xf32, #tpu.memory_space<vmem>>, vector<32x128xf32>
    %cst_28 = arith.constant dense<0.000000e+00> : vector<16x128xf32>
    %46 = tpu.matmul %44, %45, %cst_28 {dimension_numbers = #tpu.dot_dimension_numbers<[1], [0], [0], [1], [0, 0, 1, 1], [], []>} : vector<16x32xf32>, vector<32x128xf32>, vector<16x128xf32> -> vector<16x128xf32>
    %c0_29 = arith.constant 0 : index
    %c0_30 = arith.constant 0 : index
    %47 = vector.load %arg11[%c0_29, %c0_30] : memref<1x128xf32, #tpu.memory_space<vmem>>, vector<1x128xf32>
    %48 = vector.broadcast %47 : vector<1x128xf32> to vector<16x128xf32>
    %49 = arith.addf %46, %48 : vector<16x128xf32>
    %cst_31 = arith.constant 5.000000e-01 : f32
    %50 = vector.broadcast %cst_31 : f32 to vector<16x128xf32>
    %51 = arith.mulf %50, %49 : vector<16x128xf32>
    %cst_32 = arith.constant 0.707106769 : f32
    %52 = vector.broadcast %cst_32 : f32 to vector<16x128xf32>
    %53 = arith.mulf %49, %52 : vector<16x128xf32>
    %54 = math.erf %53 : vector<16x128xf32>
    %cst_33 = arith.constant 1.000000e+00 : f32
    %55 = vector.broadcast %cst_33 : f32 to vector<16x128xf32>
    %56 = arith.addf %55, %54 : vector<16x128xf32>
    %57 = arith.mulf %51, %56 : vector<16x128xf32>
    %c0_34 = arith.constant 0 : index
    %c0_35 = arith.constant 0 : index
    %58 = vector.load %arg12[%c0_34, %c0_35] : memref<128x32xf32, #tpu.memory_space<vmem>>, vector<128x32xf32>
    %cst_36 = arith.constant dense<0.000000e+00> : vector<16x32xf32>
    %59 = tpu.matmul %57, %58, %cst_36 {dimension_numbers = #tpu.dot_dimension_numbers<[1], [0], [0], [1], [0, 0, 1, 1], [], []>} : vector<16x128xf32>, vector<128x32xf32>, vector<16x32xf32> -> vector<16x32xf32>
    %c0_37 = arith.constant 0 : index
    %c0_38 = arith.constant 0 : index
    %60 = vector.load %arg13[%c0_37, %c0_38] : memref<1x32xf32, #tpu.memory_space<vmem>>, vector<1x32xf32>
    %61 = vector.broadcast %60 : vector<1x32xf32> to vector<16x32xf32>
    %62 = arith.addf %59, %61 : vector<16x32xf32>
    %63 = arith.addf %62, %44 : vector<16x32xf32>
    %c0_39 = arith.constant 0 : index
    %c0_40 = arith.constant 0 : index
    %64 = vector.load %arg14[%c0_39, %c0_40] : memref<1x32xf32, #tpu.memory_space<vmem>>, vector<1x32xf32>
    %c0_41 = arith.constant 0 : index
    %c0_42 = arith.constant 0 : index
    %65 = vector.load %arg15[%c0_41, %c0_42] : memref<1x32xf32, #tpu.memory_space<vmem>>, vector<1x32xf32>
    %cst_43 = arith.constant dense<0.000000e+00> : vector<16xf32>
    %66 = vector.multi_reduction <add>, %63, %cst_43 [1] : vector<16x32xf32> to vector<16xf32>
    %67 = vector.shape_cast %66 : vector<16xf32> to vector<16x1xf32>
    %cst_44 = arith.constant 3.200000e+01 : f32
    %68 = vector.broadcast %cst_44 : f32 to vector<16x1xf32>
    %69 = arith.divf %67, %68 : vector<16x1xf32>
    %70 = vector.broadcast %69 : vector<16x1xf32> to vector<16x32xf32>
    %71 = arith.subf %63, %70 : vector<16x32xf32>
    %72 = arith.mulf %71, %71 : vector<16x32xf32>
    %cst_45 = arith.constant dense<0.000000e+00> : vector<16xf32>
    %73 = vector.multi_reduction <add>, %72, %cst_45 [1] : vector<16x32xf32> to vector<16xf32>
    %74 = vector.shape_cast %73 : vector<16xf32> to vector<16x1xf32>
    %cst_46 = arith.constant 3.200000e+01 : f32
    %75 = vector.broadcast %cst_46 : f32 to vector<16x1xf32>
    %76 = arith.divf %74, %75 : vector<16x1xf32>
    %cst_47 = arith.constant 9.99999974E-6 : f32
    %77 = vector.broadcast %cst_47 : f32 to vector<16x1xf32>
    %78 = arith.addf %76, %77 : vector<16x1xf32>
    %79 = math.rsqrt %78 : vector<16x1xf32>
    %80 = vector.broadcast %79 : vector<16x1xf32> to vector<16x32xf32>
    %81 = arith.mulf %71, %80 : vector<16x32xf32>
    %82 = vector.broadcast %64 : vector<1x32xf32> to vector<16x32xf32>
    %83 = arith.mulf %81, %82 : vector<16x32xf32>
    %84 = vector.broadcast %65 : vector<1x32xf32> to vector<16x32xf32>
    %85 = arith.addf %83, %84 : vector<16x32xf32>
    %c0_48 = arith.constant 0 : index
    %c0_49 = arith.constant 0 : index
    %86 = vector.load %arg16[%c0_48, %c0_49] : memref<16x32xf32, #tpu.memory_space<vmem>>, vector<16x32xf32>
    tpu.vector_store %arg16[%c0_48, %c0_49], %85 {strides = array<i32>} : memref<16x32xf32, #tpu.memory_space<vmem>>, vector<16x32xf32>,
    return
  }
}

module attributes {stable_mosaic.version = 11 : i64} {
  func.func @_perceiver_kernel(%arg0: memref<2x24xf32, #tpu.memory_space<vmem>>, %arg1: memref<24x32xf32, #tpu.memory_space<vmem>>, %arg2: memref<1x32xf32, #tpu.memory_space<vmem>>, %arg3: memref<32x32xf32, #tpu.memory_space<vmem>>, %arg4: memref<1x32xf32, #tpu.memory_space<vmem>>, %arg5: memref<32x32xf32, #tpu.memory_space<vmem>>, %arg6: memref<1x32xf32, #tpu.memory_space<vmem>>, %arg7: memref<8x32xf32, #tpu.memory_space<vmem>>, %arg8: memref<1x32xf32, #tpu.memory_space<vmem>>, %arg9: memref<1x32xf32, #tpu.memory_space<vmem>>, %arg10: memref<32x128xf32, #tpu.memory_space<vmem>>, %arg11: memref<1x128xf32, #tpu.memory_space<vmem>>, %arg12: memref<128x32xf32, #tpu.memory_space<vmem>>, %arg13: memref<1x32xf32, #tpu.memory_space<vmem>>, %arg14: memref<1x32xf32, #tpu.memory_space<vmem>>, %arg15: memref<1x32xf32, #tpu.memory_space<vmem>>, %arg16: memref<16x32xf32, #tpu.memory_space<vmem>>) attributes {dimension_semantics = [], scalar_prefetch = 0 : i64, scratch_operands = 0 : i64, tpu.core_type = #tpu.core_type<tc>} {
    %c0 = arith.constant 0 : index
    %c0_0 = arith.constant 0 : index
    %0 = vector.load %arg0[%c0, %c0_0] : memref<2x24xf32, #tpu.memory_space<vmem>>, vector<2x24xf32>
    %c0_1 = arith.constant 0 : index
    %c0_2 = arith.constant 0 : index
    %1 = vector.load %arg1[%c0_1, %c0_2] : memref<24x32xf32, #tpu.memory_space<vmem>>, vector<24x32xf32>
    %cst = arith.constant dense<0.000000e+00> : vector<2x32xf32>
    %2 = tpu.matmul %0, %1, %cst {dimension_numbers = #tpu.dot_dimension_numbers<[1], [0], [0], [1], [0, 0, 1, 1], [], []>} : vector<2x24xf32>, vector<24x32xf32>, vector<2x32xf32> -> vector<2x32xf32>
    %c0_3 = arith.constant 0 : index
    %c0_4 = arith.constant 0 : index
    %3 = vector.load %arg2[%c0_3, %c0_4] : memref<1x32xf32, #tpu.memory_space<vmem>>, vector<1x32xf32>
    %4 = vector.broadcast %3 : vector<1x32xf32> to vector<2x32xf32>
    %5 = arith.addf %2, %4 : vector<2x32xf32>
    %c0_5 = arith.constant 0 : index
    %c0_6 = arith.constant 0 : index
    %6 = vector.load %arg3[%c0_5, %c0_6] : memref<32x32xf32, #tpu.memory_space<vmem>>, vector<32x32xf32>
    %cst_7 = arith.constant dense<0.000000e+00> : vector<2x32xf32>
    %7 = tpu.matmul %5, %6, %cst_7 {dimension_numbers = #tpu.dot_dimension_numbers<[1], [0], [0], [1], [0, 0, 1, 1], [], []>} : vector<2x32xf32>, vector<32x32xf32>, vector<2x32xf32> -> vector<2x32xf32>
    %c0_8 = arith.constant 0 : index
    %c0_9 = arith.constant 0 : index
    %8 = vector.load %arg4[%c0_8, %c0_9] : memref<1x32xf32, #tpu.memory_space<vmem>>, vector<1x32xf32>
    %9 = vector.broadcast %8 : vector<1x32xf32> to vector<2x32xf32>
    %10 = arith.addf %7, %9 : vector<2x32xf32>
    %c0_10 = arith.constant 0 : index
    %c0_11 = arith.constant 0 : index
    %11 = vector.load %arg5[%c0_10, %c0_11] : memref<32x32xf32, #tpu.memory_space<vmem>>, vector<32x32xf32>
    %cst_12 = arith.constant dense<0.000000e+00> : vector<2x32xf32>
    %12 = tpu.matmul %10, %11, %cst_12 {dimension_numbers = #tpu.dot_dimension_numbers<[1], [0], [0], [1], [0, 0, 1, 1], [], []>} : vector<2x32xf32>, vector<32x32xf32>, vector<2x32xf32> -> vector<2x32xf32>
    %c0_13 = arith.constant 0 : index
    %c0_14 = arith.constant 0 : index
    %13 = vector.load %arg6[%c0_13, %c0_14] : memref<1x32xf32, #tpu.memory_space<vmem>>, vector<1x32xf32>
    %14 = vector.broadcast %13 : vector<1x32xf32> to vector<2x32xf32>
    %15 = arith.addf %12, %14 : vector<2x32xf32>
    %c0_15 = arith.constant 0 : index
    %c0_16 = arith.constant 0 : index
    %16 = vector.load %arg7[%c0_15, %c0_16] : memref<8x32xf32, #tpu.memory_space<vmem>>, vector<8x32xf32>
    %17 = vector.shape_cast %15 : vector<2x32xf32> to vector<2x1x32xf32>
    %18 = vector.shape_cast %16 : vector<8x32xf32> to vector<1x8x32xf32>
    %19 = vector.broadcast %17 : vector<2x1x32xf32> to vector<2x8x32xf32>
    %20 = vector.broadcast %18 : vector<1x8x32xf32> to vector<2x8x32xf32>
    %21 = arith.addf %19, %20 : vector<2x8x32xf32>
    %22 = vector.shape_cast %21 : vector<2x8x32xf32> to vector<16x32xf32>
    %c0_17 = arith.constant 0 : index
    %c0_18 = arith.constant 0 : index
    %23 = vector.load %arg8[%c0_17, %c0_18] : memref<1x32xf32, #tpu.memory_space<vmem>>, vector<1x32xf32>
    %c0_19 = arith.constant 0 : index
    %c0_20 = arith.constant 0 : index
    %24 = vector.load %arg9[%c0_19, %c0_20] : memref<1x32xf32, #tpu.memory_space<vmem>>, vector<1x32xf32>
    %cst_21 = arith.constant dense<0.000000e+00> : vector<16xf32>
    %25 = vector.multi_reduction <add>, %22, %cst_21 [1] : vector<16x32xf32> to vector<16xf32>
    %26 = vector.shape_cast %25 : vector<16xf32> to vector<16x1xf32>
    %cst_22 = arith.constant 3.200000e+01 : f32
    %27 = vector.broadcast %cst_22 : f32 to vector<16x1xf32>
    %28 = arith.divf %26, %27 : vector<16x1xf32>
    %29 = vector.broadcast %28 : vector<16x1xf32> to vector<16x32xf32>
    %30 = arith.subf %22, %29 : vector<16x32xf32>
    %31 = arith.mulf %30, %30 : vector<16x32xf32>
    %cst_23 = arith.constant dense<0.000000e+00> : vector<16xf32>
    %32 = vector.multi_reduction <add>, %31, %cst_23 [1] : vector<16x32xf32> to vector<16xf32>
    %33 = vector.shape_cast %32 : vector<16xf32> to vector<16x1xf32>
    %cst_24 = arith.constant 3.200000e+01 : f32
    %34 = vector.broadcast %cst_24 : f32 to vector<16x1xf32>
    %35 = arith.divf %33, %34 : vector<16x1xf32>
    %cst_25 = arith.constant 9.99999974E-6 : f32
    %36 = vector.broadcast %cst_25 : f32 to vector<16x1xf32>
    %37 = arith.addf %35, %36 : vector<16x1xf32>
    %38 = math.rsqrt %37 : vector<16x1xf32>
    %39 = vector.broadcast %38 : vector<16x1xf32> to vector<16x32xf32>
    %40 = arith.mulf %30, %39 : vector<16x32xf32>
    %41 = vector.broadcast %23 : vector<1x32xf32> to vector<16x32xf32>
    %42 = arith.mulf %40, %41 : vector<16x32xf32>
    %43 = vector.broadcast %24 : vector<1x32xf32> to vector<16x32xf32>
    %44 = arith.addf %42, %43 : vector<16x32xf32>
    %c0_26 = arith.constant 0 : index
    %c0_27 = arith.constant 0 : index
    %45 = vector.load %arg10[%c0_26, %c0_27] : memref<32x128xf32, #tpu.memory_space<vmem>>, vector<32x128xf32>
    %cst_28 = arith.constant dense<0.000000e+00> : vector<16x128xf32>
    %46 = tpu.matmul %44, %45, %cst_28 {dimension_numbers = #tpu.dot_dimension_numbers<[1], [0], [0], [1], [0, 0, 1, 1], [], []>} : vector<16x32xf32>, vector<32x128xf32>, vector<16x128xf32> -> vector<16x128xf32>
    %c0_29 = arith.constant 0 : index
    %c0_30 = arith.constant 0 : index
    %47 = vector.load %arg11[%c0_29, %c0_30] : memref<1x128xf32, #tpu.memory_space<vmem>>, vector<1x128xf32>
    %48 = vector.broadcast %47 : vector<1x128xf32> to vector<16x128xf32>
    %49 = arith.addf %46, %48 : vector<16x128xf32>
    %cst_31 = arith.constant 5.000000e-01 : f32
    %50 = vector.broadcast %cst_31 : f32 to vector<16x128xf32>
    %51 = arith.mulf %50, %49 : vector<16x128xf32>
    %cst_32 = arith.constant 0.707106769 : f32
    %52 = vector.broadcast %cst_32 : f32 to vector<16x128xf32>
    %53 = arith.mulf %49, %52 : vector<16x128xf32>
    %54 = math.erf %53 : vector<16x128xf32>
    %cst_33 = arith.constant 1.000000e+00 : f32
    %55 = vector.broadcast %cst_33 : f32 to vector<16x128xf32>
    %56 = arith.addf %55, %54 : vector<16x128xf32>
    %57 = arith.mulf %51, %56 : vector<16x128xf32>
    %c0_34 = arith.constant 0 : index
    %c0_35 = arith.constant 0 : index
    %58 = vector.load %arg12[%c0_34, %c0_35] : memref<128x32xf32, #tpu.memory_space<vmem>>, vector<128x32xf32>
    %cst_36 = arith.constant dense<0.000000e+00> : vector<16x32xf32>
    %59 = tpu.matmul %57, %58, %cst_36 {dimension_numbers = #tpu.dot_dimension_numbers<[1], [0], [0], [1], [0, 0, 1, 1], [], []>} : vector<16x128xf32>, vector<128x32xf32>, vector<16x32xf32> -> vector<16x32xf32>
    %c0_37 = arith.constant 0 : index
    %c0_38 = arith.constant 0 : index
    %60 = vector.load %arg13[%c0_37, %c0_38] : memref<1x32xf32, #tpu.memory_space<vmem>>, vector<1x32xf32>
    %61 = vector.broadcast %60 : vector<1x32xf32> to vector<16x32xf32>
    %62 = arith.addf %59, %61 : vector<16x32xf32>
    %63 = arith.addf %62, %44 : vector<16x32xf32>
    %c0_39 = arith.constant 0 : index
    %c0_40 = arith.constant 0 : index
    %64 = vector.load %arg14[%c0_39, %c0_40] : memref<1x32xf32, #tpu.memory_space<vmem>>, vector<1x32xf32>
    %c0_41 = arith.constant 0 : index
    %c0_42 = arith.constant 0 : index
    %65 = vector.load %arg15[%c0_41, %c0_42] : memref<1x32xf32, #tpu.memory_space<vmem>>, vector<1x32xf32>
    %cst_43 = arith.constant dense<0.000000e+00> : vector<16xf32>
    %66 = vector.multi_reduction <add>, %63, %cst_43 [1] : vector<16x32xf32> to vector<16xf32>
    %67 = vector.shape_cast %66 : vector<16xf32> to vector<16x1xf32>
    %cst_44 = arith.constant 3.200000e+01 : f32
    %68 = vector.broadcast %cst_44 : f32 to vector<16x1xf32>
    %69 = arith.divf %67, %68 : vector<16x1xf32>
    %70 = vector.broadcast %69 : vector<16x1xf32> to vector<16x32xf32>
    %71 = arith.subf %63, %70 : vector<16x32xf32>
    %72 = arith.mulf %71, %71 : vector<16x32xf32>
    %cst_45 = arith.constant dense<0.000000e+00> : vector<16xf32>
    %73 = vector.multi_reduction <add>, %72, %cst_45 [1] : vector<16x32xf32> to vector<16xf32>
    %74 = vector.shape_cast %73 : vector<16xf32> to vector<16x1xf32>
    %cst_46 = arith.constant 3.200000e+01 : f32
    %75 = vector.broadcast %cst_46 : f32 to vector<16x1xf32>
    %76 = arith.divf %74, %75 : vector<16x1xf32>
    %cst_47 = arith.constant 9.99999974E-6 : f32
    %77 = vector.broadcast %cst_47 : f32 to vector<16x1xf32>
    %78 = arith.addf %76, %77 : vector<16x1xf32>
    %79 = math.rsqrt %78 : vector<16x1xf32>
    %80 = vector.broadcast %79 : vector<16x1xf32> to vector<16x32xf32>
    %81 = arith.mulf %71, %80 : vector<16x32xf32>
    %82 = vector.broadcast %64 : vector<1x32xf32> to vector<16x32xf32>
    %83 = arith.mulf %81, %82 : vector<16x32xf32>
    %84 = vector.broadcast %65 : vector<1x32xf32> to vector<16x32xf32>
    %85 = arith.addf %83, %84 : vector<16x32xf32>
    %c0_48 = arith.constant 0 : index
    %c0_49 = arith.constant 0 : index
    %86 = vector.load %arg16[%c0_48, %c0_49] : memref<16x32xf32, #tpu.memory_space<vmem>>, vector<16x32xf32>
    tpu.vector_store %arg16[%c0_48, %c0_49], %85 {strides = array<i32>} : memref<16x32xf32, #tpu.memory_space<vmem>>, vector<16x32xf32>,
    return
  }
}

module attributes {stable_mosaic.version = 11 : i64} {
  func.func @_cross_kernel(%arg0: i32, %arg1: memref<8x32xf32, #tpu.memory_space<vmem>>, %arg2: memref<8x32xf32, #tpu.memory_space<vmem>>, %arg3: memref<4x32x8xf32, #tpu.memory_space<vmem>>, %arg4: memref<4x1x8xf32, #tpu.memory_space<vmem>>, %arg5: memref<4x32x8xf32, #tpu.memory_space<vmem>>, %arg6: memref<4x1x8xf32, #tpu.memory_space<vmem>>, %arg7: memref<4x32x8xf32, #tpu.memory_space<vmem>>, %arg8: memref<4x1x8xf32, #tpu.memory_space<vmem>>, %arg9: memref<4x8x32xf32, #tpu.memory_space<vmem>>, %arg10: memref<1x32xf32, #tpu.memory_space<vmem>>, %arg11: memref<1x32xf32, #tpu.memory_space<vmem>>, %arg12: memref<1x32xf32, #tpu.memory_space<vmem>>, %arg13: memref<1x1x32xf32, #tpu.memory_space<vmem>>, %arg14: memref<1x1x32xf32, #tpu.memory_space<vmem>>) attributes {dimension_semantics = [#tpu.dimension_semantics<parallel>], iteration_bounds = array<i64: 2>, scalar_prefetch = 0 : i64, scratch_operands = 0 : i64, tpu.core_type = #tpu.core_type<tc>, window_params = [{transform_indices = @transform_0, window_bounds = array<i64: 8, 32>}, {transform_indices = @transform_1, window_bounds = array<i64: 8, 32>}, {pipeline_mode = #tpu.pipeline_mode<synchronous>, transform_indices = @transform_2, window_bounds = array<i64: 4, 32, 8>}, {pipeline_mode = #tpu.pipeline_mode<synchronous>, transform_indices = @transform_3, window_bounds = array<i64: 4, 1, 8>}, {pipeline_mode = #tpu.pipeline_mode<synchronous>, transform_indices = @transform_4, window_bounds = array<i64: 4, 32, 8>}, {pipeline_mode = #tpu.pipeline_mode<synchronous>, transform_indices = @transform_5, window_bounds = array<i64: 4, 1, 8>}, {pipeline_mode = #tpu.pipeline_mode<synchronous>, transform_indices = @transform_6, window_bounds = array<i64: 4, 32, 8>}, {pipeline_mode = #tpu.pipeline_mode<synchronous>, transform_indices = @transform_7, window_bounds = array<i64: 4, 1, 8>}, {pipeline_mode = #tpu.pipeline_mode<synchronous>, transform_indices = @transform_8, window_bounds = array<i64: 4, 8, 32>}, {pipeline_mode = #tpu.pipeline_mode<synchronous>, transform_indices = @transform_9, window_bounds = array<i64: 1, 32>}, {pipeline_mode = #tpu.pipeline_mode<synchronous>, transform_indices = @transform_10, window_bounds = array<i64: 1, 32>}, {pipeline_mode = #tpu.pipeline_mode<synchronous>, transform_indices = @transform_11, window_bounds = array<i64: 1, 32>}, {transform_indices = @transform_12, window_bounds = array<i64: 1, 1, 32>}, {transform_indices = @transform_13, window_bounds = array<i64: 1, 1, 32>}]} {
    %c0 = arith.constant 0 : index
    %c0_0 = arith.constant 0 : index
    %0 = vector.load %arg1[%c0, %c0_0] : memref<8x32xf32, #tpu.memory_space<vmem>>, vector<8x32xf32>
    %c0_1 = arith.constant 0 : index
    %c0_2 = arith.constant 0 : index
    %1 = vector.load %arg2[%c0_1, %c0_2] : memref<8x32xf32, #tpu.memory_space<vmem>>, vector<8x32xf32>
    %c0_3 = arith.constant 0 : index
    %c0_4 = arith.constant 0 : index
    %c0_5 = arith.constant 0 : index
    %2 = vector.load %arg3[%c0_3, %c0_4, %c0_5] : memref<4x32x8xf32, #tpu.memory_space<vmem>>, vector<4x32x8xf32>
    %c0_6 = arith.constant 0 : index
    %c0_7 = arith.constant 0 : index
    %c0_8 = arith.constant 0 : index
    %3 = vector.load %arg4[%c0_6, %c0_7, %c0_8] : memref<4x1x8xf32, #tpu.memory_space<vmem>>, vector<4x1x8xf32>
    %c0_9 = arith.constant 0 : index
    %c0_10 = arith.constant 0 : index
    %c0_11 = arith.constant 0 : index
    %4 = vector.load %arg5[%c0_9, %c0_10, %c0_11] : memref<4x32x8xf32, #tpu.memory_space<vmem>>, vector<4x32x8xf32>
    %c0_12 = arith.constant 0 : index
    %c0_13 = arith.constant 0 : index
    %c0_14 = arith.constant 0 : index
    %5 = vector.load %arg6[%c0_12, %c0_13, %c0_14] : memref<4x1x8xf32, #tpu.memory_space<vmem>>, vector<4x1x8xf32>
    %c0_15 = arith.constant 0 : index
    %c0_16 = arith.constant 0 : index
    %c0_17 = arith.constant 0 : index
    %6 = vector.load %arg7[%c0_15, %c0_16, %c0_17] : memref<4x32x8xf32, #tpu.memory_space<vmem>>, vector<4x32x8xf32>
    %c0_18 = arith.constant 0 : index
    %c0_19 = arith.constant 0 : index
    %c0_20 = arith.constant 0 : index
    %7 = vector.load %arg8[%c0_18, %c0_19, %c0_20] : memref<4x1x8xf32, #tpu.memory_space<vmem>>, vector<4x1x8xf32>
    %c0_21 = arith.constant 0 : index
    %c0_22 = arith.constant 0 : index
    %c0_23 = arith.constant 0 : index
    %8 = vector.load %arg9[%c0_21, %c0_22, %c0_23] : memref<4x8x32xf32, #tpu.memory_space<vmem>>, vector<4x8x32xf32>
    %c0_24 = arith.constant 0 : index
    %c0_25 = arith.constant 0 : index
    %9 = vector.load %arg10[%c0_24, %c0_25] : memref<1x32xf32, #tpu.memory_space<vmem>>, vector<1x32xf32>
    %10 = vector.shape_cast %0 : vector<8x32xf32> to vector<1x8x32xf32>
    %11 = vector.shape_cast %10 : vector<1x8x32xf32> to vector<1x8x32xf32>
    %12 = vector.broadcast %11 : vector<1x8x32xf32> to vector<4x8x32xf32>
    %13 = vector.shape_cast %1 : vector<8x32xf32> to vector<1x8x32xf32>
    %14 = vector.shape_cast %13 : vector<1x8x32xf32> to vector<1x8x32xf32>
    %15 = vector.broadcast %14 : vector<1x8x32xf32> to vector<4x8x32xf32>
    "tpu.trace_start"() <{level = 10 : i32, message = "hld,hdk->hlk"}> : () -> ()
    %cst = arith.constant dense<0.000000e+00> : vector<4x8x8xf32>
    %16 = tpu.matmul %12, %2, %cst {dimension_numbers = #tpu.dot_dimension_numbers<[2], [1], [1], [2], [0, 0, 0, 1, 1, 2], [0], [0]>} : vector<4x8x32xf32>, vector<4x32x8xf32>, vector<4x8x8xf32> -> vector<4x8x8xf32>
    "tpu.trace_stop"() : () -> ()
    %17 = vector.broadcast %3 : vector<4x1x8xf32> to vector<4x8x8xf32>
    %18 = arith.addf %16, %17 : vector<4x8x8xf32>
    "tpu.trace_start"() <{level = 10 : i32, message = "hld,hdk->hlk"}> : () -> ()
    %cst_26 = arith.constant dense<0.000000e+00> : vector<4x8x8xf32>
    %19 = tpu.matmul %15, %4, %cst_26 {dimension_numbers = #tpu.dot_dimension_numbers<[2], [1], [1], [2], [0, 0, 0, 1, 1, 2], [0], [0]>} : vector<4x8x32xf32>, vector<4x32x8xf32>, vector<4x8x8xf32> -> vector<4x8x8xf32>
    "tpu.trace_stop"() : () -> ()
    %20 = vector.broadcast %5 : vector<4x1x8xf32> to vector<4x8x8xf32>
    %21 = arith.addf %19, %20 : vector<4x8x8xf32>
    "tpu.trace_start"() <{level = 10 : i32, message = "hld,hdk->hlk"}> : () -> ()
    %cst_27 = arith.constant dense<0.000000e+00> : vector<4x8x8xf32>
    %22 = tpu.matmul %15, %6, %cst_27 {dimension_numbers = #tpu.dot_dimension_numbers<[2], [1], [1], [2], [0, 0, 0, 1, 1, 2], [0], [0]>} : vector<4x8x32xf32>, vector<4x32x8xf32>, vector<4x8x8xf32> -> vector<4x8x8xf32>
    "tpu.trace_stop"() : () -> ()
    %23 = vector.broadcast %7 : vector<4x1x8xf32> to vector<4x8x8xf32>
    %24 = arith.addf %22, %23 : vector<4x8x8xf32>
    "tpu.trace_start"() <{level = 10 : i32, message = "hqd,hkd->hqk"}> : () -> ()
    %cst_28 = arith.constant dense<0.000000e+00> : vector<4x8x8xf32>
    %25 = tpu.matmul %18, %21, %cst_28 {dimension_numbers = #tpu.dot_dimension_numbers<[2], [2], [1], [1], [0, 0, 0, 1, 1, 1], [0], [0]>} : vector<4x8x8xf32>, vector<4x8x8xf32>, vector<4x8x8xf32> -> vector<4x8x8xf32>
    "tpu.trace_stop"() : () -> ()
    %cst_29 = arith.constant 0.353553385 : f32
    %26 = vector.broadcast %cst_29 : f32 to vector<4x8x8xf32>
    %27 = arith.mulf %25, %26 : vector<4x8x8xf32>
    %cst_30 = arith.constant dense<0xFF800000> : vector<4x8xf32>
    %28 = vector.multi_reduction <maximumf>, %27, %cst_30 [2] : vector<4x8x8xf32> to vector<4x8xf32>
    %29 = vector.shape_cast %28 : vector<4x8xf32> to vector<4x8x1xf32>
    %30 = vector.broadcast %29 : vector<4x8x1xf32> to vector<4x8x8xf32>
    %31 = arith.subf %27, %30 : vector<4x8x8xf32>
    %32 = math.exp %31 : vector<4x8x8xf32>
    %cst_31 = arith.constant dense<0.000000e+00> : vector<4x8xf32>
    %33 = vector.multi_reduction <add>, %32, %cst_31 [2] : vector<4x8x8xf32> to vector<4x8xf32>
    %34 = vector.shape_cast %33 : vector<4x8xf32> to vector<4x8x1xf32>
    %35 = tpu.reciprocal %34 {approx = true} : vector<4x8x1xf32> -> vector<4x8x1xf32>
    %36 = vector.broadcast %35 : vector<4x8x1xf32> to vector<4x8x8xf32>
    %37 = arith.mulf %32, %36 : vector<4x8x8xf32>
    "tpu.trace_start"() <{level = 10 : i32, message = "hqk,hkd->hqd"}> : () -> ()
    %cst_32 = arith.constant dense<0.000000e+00> : vector<4x8x8xf32>
    %38 = tpu.matmul %37, %24, %cst_32 {dimension_numbers = #tpu.dot_dimension_numbers<[2], [1], [1], [2], [0, 0, 0, 1, 1, 2], [0], [0]>} : vector<4x8x8xf32>, vector<4x8x8xf32>, vector<4x8x8xf32> -> vector<4x8x8xf32>
    "tpu.trace_stop"() : () -> ()
    "tpu.trace_start"() <{level = 10 : i32, message = "hqd,hdk->hqk"}> : () -> ()
    %cst_33 = arith.constant dense<0.000000e+00> : vector<4x8x32xf32>
    %39 = tpu.matmul %38, %8, %cst_33 {dimension_numbers = #tpu.dot_dimension_numbers<[2], [1], [1], [2], [0, 0, 0, 1, 1, 2], [0], [0]>} : vector<4x8x8xf32>, vector<4x8x32xf32>, vector<4x8x32xf32> -> vector<4x8x32xf32>
    "tpu.trace_stop"() : () -> ()
    %cst_34 = arith.constant dense<0.000000e+00> : vector<8x32xf32>
    %40 = vector.multi_reduction <add>, %39, %cst_34 [0] : vector<4x8x32xf32> to vector<8x32xf32>
    %41 = vector.broadcast %9 : vector<1x32xf32> to vector<8x32xf32>
    %42 = arith.addf %40, %41 : vector<8x32xf32>
    %43 = arith.addf %0, %42 : vector<8x32xf32>
    %c0_35 = arith.constant 0 : index
    %c0_36 = arith.constant 0 : index
    %44 = vector.load %arg11[%c0_35, %c0_36] : memref<1x32xf32, #tpu.memory_space<vmem>>, vector<1x32xf32>
    %c0_37 = arith.constant 0 : index
    %c0_38 = arith.constant 0 : index
    %45 = vector.load %arg12[%c0_37, %c0_38] : memref<1x32xf32, #tpu.memory_space<vmem>>, vector<1x32xf32>
    %cst_39 = arith.constant dense<0.000000e+00> : vector<8xf32>
    %46 = vector.multi_reduction <add>, %43, %cst_39 [1] : vector<8x32xf32> to vector<8xf32>
    %47 = vector.shape_cast %46 : vector<8xf32> to vector<8x1xf32>
    %cst_40 = arith.constant 3.200000e+01 : f32
    %48 = vector.broadcast %cst_40 : f32 to vector<8x1xf32>
    %49 = arith.divf %47, %48 : vector<8x1xf32>
    %50 = vector.broadcast %49 : vector<8x1xf32> to vector<8x32xf32>
    %51 = arith.subf %43, %50 : vector<8x32xf32>
    %52 = arith.mulf %51, %51 : vector<8x32xf32>
    %cst_41 = arith.constant dense<0.000000e+00> : vector<8xf32>
    %53 = vector.multi_reduction <add>, %52, %cst_41 [1] : vector<8x32xf32> to vector<8xf32>
    %54 = vector.shape_cast %53 : vector<8xf32> to vector<8x1xf32>
    %cst_42 = arith.constant 3.200000e+01 : f32
    %55 = vector.broadcast %cst_42 : f32 to vector<8x1xf32>
    %56 = arith.divf %54, %55 : vector<8x1xf32>
    %cst_43 = arith.constant 9.99999974E-6 : f32
    %57 = vector.broadcast %cst_43 : f32 to vector<8x1xf32>
    %58 = arith.addf %56, %57 : vector<8x1xf32>
    %59 = math.rsqrt %58 : vector<8x1xf32>
    %60 = vector.broadcast %59 : vector<8x1xf32> to vector<8x32xf32>
    %61 = arith.mulf %51, %60 : vector<8x32xf32>
    %62 = vector.broadcast %44 : vector<1x32xf32> to vector<8x32xf32>
    %63 = arith.mulf %61, %62 : vector<8x32xf32>
    %64 = vector.broadcast %45 : vector<1x32xf32> to vector<8x32xf32>
    %65 = arith.addf %63, %64 : vector<8x32xf32>
    %66 = vector.shape_cast %1 : vector<8x32xf32> to vector<1x8x32xf32>
    %67 = vector.shape_cast %66 : vector<1x8x32xf32> to vector<1x8x32xf32>
    %68 = vector.broadcast %67 : vector<1x8x32xf32> to vector<4x8x32xf32>
    %69 = vector.shape_cast %65 : vector<8x32xf32> to vector<1x8x32xf32>
    %70 = vector.shape_cast %69 : vector<1x8x32xf32> to vector<1x8x32xf32>
    %71 = vector.broadcast %70 : vector<1x8x32xf32> to vector<4x8x32xf32>
    "tpu.trace_start"() <{level = 10 : i32, message = "hld,hdk->hlk"}> : () -> ()
    %cst_44 = arith.constant dense<0.000000e+00> : vector<4x8x8xf32>
    %72 = tpu.matmul %68, %2, %cst_44 {dimension_numbers = #tpu.dot_dimension_numbers<[2], [1], [1], [2], [0, 0, 0, 1, 1, 2], [0], [0]>} : vector<4x8x32xf32>, vector<4x32x8xf32>, vector<4x8x8xf32> -> vector<4x8x8xf32>
    "tpu.trace_stop"() : () -> ()
    %73 = vector.broadcast %3 : vector<4x1x8xf32> to vector<4x8x8xf32>
    %74 = arith.addf %72, %73 : vector<4x8x8xf32>
    "tpu.trace_start"() <{level = 10 : i32, message = "hld,hdk->hlk"}> : () -> ()
    %cst_45 = arith.constant dense<0.000000e+00> : vector<4x8x8xf32>
    %75 = tpu.matmul %71, %4, %cst_45 {dimension_numbers = #tpu.dot_dimension_numbers<[2], [1], [1], [2], [0, 0, 0, 1, 1, 2], [0], [0]>} : vector<4x8x32xf32>, vector<4x32x8xf32>, vector<4x8x8xf32> -> vector<4x8x8xf32>
    "tpu.trace_stop"() : () -> ()
    %76 = vector.broadcast %5 : vector<4x1x8xf32> to vector<4x8x8xf32>
    %77 = arith.addf %75, %76 : vector<4x8x8xf32>
    "tpu.trace_start"() <{level = 10 : i32, message = "hld,hdk->hlk"}> : () -> ()
    %cst_46 = arith.constant dense<0.000000e+00> : vector<4x8x8xf32>
    %78 = tpu.matmul %71, %6, %cst_46 {dimension_numbers = #tpu.dot_dimension_numbers<[2], [1], [1], [2], [0, 0, 0, 1, 1, 2], [0], [0]>} : vector<4x8x32xf32>, vector<4x32x8xf32>, vector<4x8x8xf32> -> vector<4x8x8xf32>
    "tpu.trace_stop"() : () -> ()
    %79 = vector.broadcast %7 : vector<4x1x8xf32> to vector<4x8x8xf32>
    %80 = arith.addf %78, %79 : vector<4x8x8xf32>
    "tpu.trace_start"() <{level = 10 : i32, message = "hqd,hkd->hqk"}> : () -> ()
    %cst_47 = arith.constant dense<0.000000e+00> : vector<4x8x8xf32>
    %81 = tpu.matmul %74, %77, %cst_47 {dimension_numbers = #tpu.dot_dimension_numbers<[2], [2], [1], [1], [0, 0, 0, 1, 1, 1], [0], [0]>} : vector<4x8x8xf32>, vector<4x8x8xf32>, vector<4x8x8xf32> -> vector<4x8x8xf32>
    "tpu.trace_stop"() : () -> ()
    %cst_48 = arith.constant 0.353553385 : f32
    %82 = vector.broadcast %cst_48 : f32 to vector<4x8x8xf32>
    %83 = arith.mulf %81, %82 : vector<4x8x8xf32>
    %cst_49 = arith.constant dense<0xFF800000> : vector<4x8xf32>
    %84 = vector.multi_reduction <maximumf>, %83, %cst_49 [2] : vector<4x8x8xf32> to vector<4x8xf32>
    %85 = vector.shape_cast %84 : vector<4x8xf32> to vector<4x8x1xf32>
    %86 = vector.broadcast %85 : vector<4x8x1xf32> to vector<4x8x8xf32>
    %87 = arith.subf %83, %86 : vector<4x8x8xf32>
    %88 = math.exp %87 : vector<4x8x8xf32>
    %cst_50 = arith.constant dense<0.000000e+00> : vector<4x8xf32>
    %89 = vector.multi_reduction <add>, %88, %cst_50 [2] : vector<4x8x8xf32> to vector<4x8xf32>
    %90 = vector.shape_cast %89 : vector<4x8xf32> to vector<4x8x1xf32>
    %91 = tpu.reciprocal %90 {approx = true} : vector<4x8x1xf32> -> vector<4x8x1xf32>
    %92 = vector.broadcast %91 : vector<4x8x1xf32> to vector<4x8x8xf32>
    %93 = arith.mulf %88, %92 : vector<4x8x8xf32>
    "tpu.trace_start"() <{level = 10 : i32, message = "hqk,hkd->hqd"}> : () -> ()
    %cst_51 = arith.constant dense<0.000000e+00> : vector<4x8x8xf32>
    %94 = tpu.matmul %93, %80, %cst_51 {dimension_numbers = #tpu.dot_dimension_numbers<[2], [1], [1], [2], [0, 0, 0, 1, 1, 2], [0], [0]>} : vector<4x8x8xf32>, vector<4x8x8xf32>, vector<4x8x8xf32> -> vector<4x8x8xf32>
    "tpu.trace_stop"() : () -> ()
    "tpu.trace_start"() <{level = 10 : i32, message = "hqd,hdk->hqk"}> : () -> ()
    %cst_52 = arith.constant dense<0.000000e+00> : vector<4x8x32xf32>
    %95 = tpu.matmul %94, %8, %cst_52 {dimension_numbers = #tpu.dot_dimension_numbers<[2], [1], [1], [2], [0, 0, 0, 1, 1, 2], [0], [0]>} : vector<4x8x8xf32>, vector<4x8x32xf32>, vector<4x8x32xf32> -> vector<4x8x32xf32>
    "tpu.trace_stop"() : () -> ()
    %cst_53 = arith.constant dense<0.000000e+00> : vector<8x32xf32>
    %96 = vector.multi_reduction <add>, %95, %cst_53 [0] : vector<4x8x32xf32> to vector<8x32xf32>
    %97 = vector.broadcast %9 : vector<1x32xf32> to vector<8x32xf32>
    %98 = arith.addf %96, %97 : vector<8x32xf32>
    %cst_54 = arith.constant dense<0.000000e+00> : vector<32xf32>
    %99 = vector.multi_reduction <add>, %42, %cst_54 [0] : vector<8x32xf32> to vector<32xf32>
    %100 = vector.shape_cast %99 : vector<32xf32> to vector<1x32xf32>
    %cst_55 = arith.constant 8.000000e+00 : f32
    %101 = vector.broadcast %cst_55 : f32 to vector<1x32xf32>
    %102 = arith.divf %100, %101 : vector<1x32xf32>
    %c0_56 = arith.constant 0 : index
    %c0_57 = arith.constant 0 : index
    %c0_58 = arith.constant 0 : index
    %103 = vector.load %arg13[%c0_56, %c0_57, %c0_58] : memref<1x1x32xf32, #tpu.memory_space<vmem>>, vector<1x1x32xf32>
    %104 = vector.shape_cast %103 : vector<1x1x32xf32> to vector<1x32xf32>
    %105 = vector.shape_cast %102 : vector<1x32xf32> to vector<1x1x32xf32>
    tpu.vector_store %arg13[%c0_56, %c0_57, %c0_58], %105 {strides = array<i32>} : memref<1x1x32xf32, #tpu.memory_space<vmem>>, vector<1x1x32xf32>,
    %cst_59 = arith.constant dense<0.000000e+00> : vector<32xf32>
    %106 = vector.multi_reduction <add>, %98, %cst_59 [0] : vector<8x32xf32> to vector<32xf32>
    %107 = vector.shape_cast %106 : vector<32xf32> to vector<1x32xf32>
    %cst_60 = arith.constant 8.000000e+00 : f32
    %108 = vector.broadcast %cst_60 : f32 to vector<1x32xf32>
    %109 = arith.divf %107, %108 : vector<1x32xf32>
    %c0_61 = arith.constant 0 : index
    %c0_62 = arith.constant 0 : index
    %c0_63 = arith.constant 0 : index
    %110 = vector.load %arg14[%c0_61, %c0_62, %c0_63] : memref<1x1x32xf32, #tpu.memory_space<vmem>>, vector<1x1x32xf32>
    %111 = vector.shape_cast %110 : vector<1x1x32xf32> to vector<1x32xf32>
    %112 = vector.shape_cast %109 : vector<1x32xf32> to vector<1x1x32xf32>
    tpu.vector_store %arg14[%c0_61, %c0_62, %c0_63], %112 {strides = array<i32>} : memref<1x1x32xf32, #tpu.memory_space<vmem>>, vector<1x1x32xf32>,
    return
  }
  func.func @transform_0(%arg0: i32) -> (i32, i32) {
    %c0_i32 = arith.constant 0 : i32
    %c0_i32_0 = arith.constant 0 : i32
    return %arg0, %c0_i32 : i32, i32
  }
  func.func @transform_1(%arg0: i32) -> (i32, i32) {
    %c0_i32 = arith.constant 0 : i32
    %c0_i32_0 = arith.constant 0 : i32
    return %arg0, %c0_i32 : i32, i32
  }
  func.func @transform_2(%arg0: i32) -> (i32, i32, i32) {
    %c0_i32 = arith.constant 0 : i32
    %c0_i32_0 = arith.constant 0 : i32
    %c0_i32_1 = arith.constant 0 : i32
    %c0_i32_2 = arith.constant 0 : i32
    return %c0_i32, %c0_i32_0, %c0_i32_1 : i32, i32, i32
  }
  func.func @transform_3(%arg0: i32) -> (i32, i32, i32) {
    %c0_i32 = arith.constant 0 : i32
    %c0_i32_0 = arith.constant 0 : i32
    %c0_i32_1 = arith.constant 0 : i32
    %c0_i32_2 = arith.constant 0 : i32
    return %c0_i32, %c0_i32_0, %c0_i32_1 : i32, i32, i32
  }
  func.func @transform_4(%arg0: i32) -> (i32, i32, i32) {
    %c0_i32 = arith.constant 0 : i32
    %c0_i32_0 = arith.constant 0 : i32
    %c0_i32_1 = arith.constant 0 : i32
    %c0_i32_2 = arith.constant 0 : i32
    return %c0_i32, %c0_i32_0, %c0_i32_1 : i32, i32, i32
  }
  func.func @transform_5(%arg0: i32) -> (i32, i32, i32) {
    %c0_i32 = arith.constant 0 : i32
    %c0_i32_0 = arith.constant 0 : i32
    %c0_i32_1 = arith.constant 0 : i32
    %c0_i32_2 = arith.constant 0 : i32
    return %c0_i32, %c0_i32_0, %c0_i32_1 : i32, i32, i32
  }
  func.func @transform_6(%arg0: i32) -> (i32, i32, i32) {
    %c0_i32 = arith.constant 0 : i32
    %c0_i32_0 = arith.constant 0 : i32
    %c0_i32_1 = arith.constant 0 : i32
    %c0_i32_2 = arith.constant 0 : i32
    return %c0_i32, %c0_i32_0, %c0_i32_1 : i32, i32, i32
  }
  func.func @transform_7(%arg0: i32) -> (i32, i32, i32) {
    %c0_i32 = arith.constant 0 : i32
    %c0_i32_0 = arith.constant 0 : i32
    %c0_i32_1 = arith.constant 0 : i32
    %c0_i32_2 = arith.constant 0 : i32
    return %c0_i32, %c0_i32_0, %c0_i32_1 : i32, i32, i32
  }
  func.func @transform_8(%arg0: i32) -> (i32, i32, i32) {
    %c0_i32 = arith.constant 0 : i32
    %c0_i32_0 = arith.constant 0 : i32
    %c0_i32_1 = arith.constant 0 : i32
    %c0_i32_2 = arith.constant 0 : i32
    return %c0_i32, %c0_i32_0, %c0_i32_1 : i32, i32, i32
  }
  func.func @transform_9(%arg0: i32) -> (i32, i32) {
    %c0_i32 = arith.constant 0 : i32
    %c0_i32_0 = arith.constant 0 : i32
    %c0_i32_1 = arith.constant 0 : i32
    return %c0_i32, %c0_i32_0 : i32, i32
  }
  func.func @transform_10(%arg0: i32) -> (i32, i32) {
    %c0_i32 = arith.constant 0 : i32
    %c0_i32_0 = arith.constant 0 : i32
    %c0_i32_1 = arith.constant 0 : i32
    return %c0_i32, %c0_i32_0 : i32, i32
  }
  func.func @transform_11(%arg0: i32) -> (i32, i32) {
    %c0_i32 = arith.constant 0 : i32
    %c0_i32_0 = arith.constant 0 : i32
    %c0_i32_1 = arith.constant 0 : i32
    return %c0_i32, %c0_i32_0 : i32, i32
  }
  func.func @transform_12(%arg0: i32) -> (i32, i32, i32) {
    %c0_i32 = arith.constant 0 : i32
    %c0_i32_0 = arith.constant 0 : i32
    %c0_i32_1 = arith.constant 0 : i32
    return %arg0, %c0_i32, %c0_i32_0 : i32, i32, i32
  }
  func.func @transform_13(%arg0: i32) -> (i32, i32, i32) {
    %c0_i32 = arith.constant 0 : i32
    %c0_i32_0 = arith.constant 0 : i32
    %c0_i32_1 = arith.constant 0 : i32
    return %arg0, %c0_i32, %c0_i32_0 : i32, i32, i32
  }
}

</mosaic_0001>

<bundles_post_ra>
// kernel: cross_modal_forward.3
= control target key start
LH: loop header
LB: loop body
LE: loop exit
PB: predicated region body
PF: predicated region fallthrough
CT: control target
= control target key end

     0   :  { %v784_v0 = vmov 0.0   ;;  %vm785_vm0 = vmmov 0   ;;  %vm64_vm1 = vcmask 195584   ;;  %vm149_vm2 = vcmask 261120   ;;  %s1029_s1 = inlined_call_operand.vmem [shape: f32[24,32], index: 1, kind: input, shape index: {}]   ;;  %s1030_s0 = inlined_call_operand.vmem [shape: f32[2,24], index: 0, kind: input, shape index: {}]   ;;  %s1031_s3 = inlined_call_operand.vmem [shape: f32[32,32], index: 3, kind: input, shape index: {}]   ;;  %s1032_s2 = inlined_call_operand.vmem [shape: f32[1,32], index: 2, kind: input, shape index: {}]   ;;  %s1033_s5 = inlined_call_operand.vmem [shape: f32[32,32], index: 5, kind: input, shape index: {}]   ;;  %s1034_s4 = inlined_call_operand.vmem [shape: f32[1,32], index: 4, kind: input, shape index: {}]   ;;  %s1035_s6 = inlined_call_operand.vmem [shape: f32[1,32], index: 6, kind: input, shape index: {}]   ;;  %s1036_s7 = inlined_call_operand.vmem [shape: f32[8,32], index: 7, kind: input, shape index: {}]   ;;  %s1037_s10 = inlined_call_operand.vmem [shape: f32[32,128], index: 10, kind: input, shape index: {}]   ;;  %s1038_s12 = inlined_call_operand.vmem [shape: f32[128,32], index: 12, kind: input, shape index: {}]   ;;  %s1039_s8 = inlined_call_operand.vmem [shape: f32[1,32], index: 8, kind: input, shape index: {}]   ;;  %s1040_s9 = inlined_call_operand.vmem [shape: f32[1,32], index: 9, kind: input, shape index: {}]   ;;  %s1041_s11 = inlined_call_operand.vmem [shape: f32[1,128], index: 11, kind: input, shape index: {}]   ;;  %s1042_s13 = inlined_call_operand.vmem [shape: f32[1,32], index: 13, kind: input, shape index: {}]   ;;  %s1043_s14 = inlined_call_operand.vmem [shape: f32[1,32], index: 14, kind: input, shape index: {}]   ;;  %s1044_s15 = inlined_call_operand.vmem [shape: f32[1,32], index: 15, kind: input, shape index: {}]   ;;  %s1045_s16 = inlined_call_operand.vmem [shape: f32[16,32], index: 16, kind: output, shape index: {}]  }
   0x1   :  { %1047 = sst [smem:[#allocation2_spill]] %s1029_s1  ;;  %692 = vmatprep.subr.mxu1 %v784_v0  ;;  %698 = vmatprep.mubr.msk.f32.mxu1 %vm785_vm0, %v784_v0  ;;  %v53_v4 = vld [vmem:[%s1030_s0] sm:$0x3]  ;;  %v141_v5 = vld [vmem:[%s1031_s3 + $0x18] sm:$0xff]  ;;  %v140_v6 = vld [vmem:[%s1031_s3 + $0x10] sm:$0xff]  ;;  %v312_v23 = vlaneseq }
   0x2   :  { %s1048_s23 = sld [smem:[#allocation2_spill]]  ;;  %v139_v7 = vld [vmem:[%s1031_s3 + $0x8] sm:$0xff]  ;;  %v138_v8 = vld [vmem:[%s1031_s3] sm:$0xff]  ;;  %v226_v12 = vld [vmem:[%s1033_s5 + $0x18] sm:$0xff]  ;;  %v786_v21 = vmov 1966171168  }
   0x3   :  { %v640_v9 = vld [vmem:[%s1032_s2] ss:$0 sm:$0xff]  ;;  %v225_v14 = vld [vmem:[%s1033_s5 + $0x10] sm:$0xff]  ;;  %v224_v15 = vld [vmem:[%s1033_s5 + $0x8] sm:$0xff]  ;;  %v310_v22 = vunpack.c.l.s4 %v786_v21  ;;  %v313_v25 = vshrl.u32 %v312_v23, 7 }
   0x4   :  { %v223_v16 = vld [vmem:[%s1033_s5] sm:$0xff]  ;;  %v391_v53 = vld [vmem:[%s1037_s10 + $0x18] sm:$0xff]  ;;  %v390_v54 = vld [vmem:[%s1037_s10 + $0x10] sm:$0xff] }
   0x5   :  { %v642_v17 = vld [vmem:[%s1034_s4] ss:$0 sm:$0xff]  ;;  %v311_v24 = vunpack.c.0.s8 %v310_v22  ;;  %v333_v32 = vsub.s32 0, %v313_v25  ;;  %v389_v55 = vld [vmem:[%s1037_s10 + $0x8] sm:$0xff]  ;;  %v505_v57 = vld [vmem:[%s1038_s12 + $0x78] sm:$0xff] }
   0x6   :  { %v644_v26 = vld [vmem:[%s1035_s6] ss:$0 sm:$0xff]  ;;  %v504_v58 = vld [vmem:[%s1038_s12 + $0x70] sm:$0xff]  ;;  %734 = vmatprep.subr.mxu0 %v505_v57  ;;  %v503_v59 = vld [vmem:[%s1038_s12 + $0x68] sm:$0xff] }
   0x7   :  { %v314_v27 = vsub.s32 %v311_v24, %v313_v25  ;;  %v307_v35 = vld [vmem:[%s1036_s7] sm:$0xff]  ;;  %735 = vmatpush3.msra.mxu0 %v505_v57  ;;  %v493_v21 = vld [vmem:[%s1038_s12 + $0x18] sm:$0xff]  ;;  %v492_v22 = vld [vmem:[%s1038_s12 + $0x10] sm:$0xff] }
   0x8   :  { %v56_v1 = vld [vmem:[%s1048_s23 + $0x10] sm:$0xff]  ;;  %v55_v2 = vld [vmem:[%s1048_s23 + $0x8] sm:$0xff]  ;;  %v54_v3 = vld [vmem:[%s1048_s23] sm:$0xff]  ;;  %736 = vmatprep.subr.mxu0 %v504_v58 }
   0x9   :  { %693 = vmatpush3.msra.mxu1 %v56_v1  ;;  %v388_v56 = vld [vmem:[%s1037_s10] sm:$0xff]  ;;  %737 = vmatpush3.msra.mxu0 %v504_v58  ;;  %v491_v23 = vld [vmem:[%s1038_s12 + $0x8] sm:$0xff] }
   0xa   :  { %694 = vmatprep.subr.mxu1 %v784_v0  ;;  %738 = vmatprep.subr.mxu0 %v503_v59  ;;  %v490_v24 = vld [vmem:[%s1038_s12] sm:$0xff] }
   0xb   :  { %695 = vmatpush3.msra.mxu1 %v55_v2  ;;  %739 = vmatpush3.msra.mxu0 %v503_v59  ;;  %v648_v25 = vld [vmem:[%s1041_s11] ss:$0 sm:$0xff] }
   0xc   :  { %696 = vmatprep.subr.mxu1 %v784_v0 }
   0xd   :  { %697 = vmatpush3.msra.mxu1 %v54_v3  ;;  %v646_v3 = vld [vmem:[%s1039_s8] ss:$0 sm:$0xff] }
   0xe   :  { %699 = vmatmul.mubr.msk.f32.vlgmr.msra.gmra.mxu1 %vm64_vm1, %v53_v4  ;;  %701 = vmatprep.subr.mxu1 %v784_v0 }
   0xf   :  { %702 = vmatpush3.msra.mxu1 %v141_v5  ;;  %709 = vmatprep.mubr.msk.f32.mxu1 %vm785_vm0, %v784_v0  ;;  %v647_v5 = vld [vmem:[%s1040_s9] ss:$0 sm:$0xff] }
  0x10   :  { %703 = vmatprep.subr.mxu1 %v784_v0 }
  0x11   :  { %704 = vmatpush3.msra.mxu1 %v140_v6 }
  0x12   :  { %705 = vmatprep.subr.mxu1 %v784_v0 }
  0x13   :  { %706 = vmatpush3.msra.mxu1 %v139_v7 }
  0x14   :  { %707 = vmatprep.subr.mxu1 %v784_v0 }
  0x15   :  { %708 = vmatpush3.msra.mxu1 %v138_v8 }
  0x16   :  { %712 = vmatprep.subr.mxu1 %v784_v0 }
  0xce   :  { %v134_v10 = vpop.f32.mrf.mxu1 }
  0xcf   :  { %v135_v11 = vadd.f32 %v640_v9, %v134_v10 }
  0xd0   :  { %v700_v13 = vpop.f32.mrf.mxu1 }
  0xd1   :  { %710 = vmatmul.mubr.msk.f32.vlgmr.msra.gmra.mxu1 %vm149_vm2, %v135_v11  ;;  %v501_v13 = vld [vmem:[%s1038_s12 + $0x58] sm:$0xff] }
  0xd2   :  { %713 = vmatpush3.msra.mxu1 %v226_v12  ;;  %720 = vmatprep.mubr.msk.f32.mxu1 %vm785_vm0, %v784_v0  ;;  %v502_v12 = vld [vmem:[%s1038_s12 + $0x60] sm:$0xff] }
  0xd3   :  { %714 = vmatprep.subr.mxu1 %v784_v0  ;;  %740 = vmatprep.subr.mxu0 %v502_v12 }
  0xd4   :  { %715 = vmatpush3.msra.mxu1 %v225_v14  ;;  %741 = vmatpush3.msra.mxu0 %v502_v12  ;;  %v500_v14 = vld [vmem:[%s1038_s12 + $0x50] sm:$0xff] }
  0xd5   :  { %716 = vmatprep.subr.mxu1 %v784_v0  ;;  %742 = vmatprep.subr.mxu0 %v501_v13 }
  0xd6   :  { %717 = vmatpush3.msra.mxu1 %v224_v15  ;;  %743 = vmatpush3.msra.mxu0 %v501_v13  ;;  %v499_v15 = vld [vmem:[%s1038_s12 + $0x48] sm:$0xff] }
  0xd7   :  { %718 = vmatprep.subr.mxu1 %v784_v0  ;;  %744 = vmatprep.subr.mxu0 %v500_v14 }
  0xd8   :  { %719 = vmatpush3.msra.mxu1 %v223_v16  ;;  %745 = vmatpush3.msra.mxu0 %v500_v14  ;;  %v498_v16 = vld [vmem:[%s1038_s12 + $0x40] sm:$0xff] }
  0xd9   :  { %723 = vmatprep.subr.mxu1 %v391_v53  ;;  %746 = vmatprep.subr.mxu0 %v499_v15 }
  0xda   :  { %747 = vmatpush3.msra.mxu0 %v499_v15 }
  0xdb   :  { %748 = vmatprep.subr.mxu0 %v498_v16 }
  0xdc   :  { %749 = vmatpush3.msra.mxu0 %v498_v16 }
 0x191   :  { %v219_v18 = vpop.f32.mrf.mxu1 }
 0x192   :  { %v220_v19 = vadd.f32 %v642_v17, %v219_v18  ;;  %v497_v17 = vld [vmem:[%s1038_s12 + $0x38] sm:$0xff]  ;;  %v496_v18 = vld [vmem:[%s1038_s12 + $0x30] sm:$0xff] }
 0x193   :  { %v711_v20 = vpop.f32.mrf.mxu1  ;;  %750 = vmatprep.subr.mxu0 %v497_v17 }
 0x194   :  { %721 = vmatmul.mubr.msk.f32.vlgmr.msra.gmra.mxu1 %vm149_vm2, %v220_v19  ;;  %751 = vmatpush3.msra.mxu0 %v497_v17  ;;  %v495_v19 = vld [vmem:[%s1038_s12 + $0x28] sm:$0xff]  ;;  %v494_v20 = vld [vmem:[%s1038_s12 + $0x20] sm:$0xff] }
 0x195   :  { %724 = vmatpush3.msra.mxu1 %v391_v53  ;;  %752 = vmatprep.subr.mxu0 %v496_v18 }
 0x196   :  { %725 = vmatprep.subr.mxu1 %v390_v54  ;;  %753 = vmatpush3.msra.mxu0 %v496_v18 }
 0x197   :  { %726 = vmatpush3.msra.mxu1 %v390_v54  ;;  %754 = vmatprep.subr.mxu0 %v495_v19 }
 0x198   :  { %727 = vmatprep.subr.mxu1 %v389_v55  ;;  %755 = vmatpush3.msra.mxu0 %v495_v19 }
 0x199   :  { %728 = vmatpush3.msra.mxu1 %v389_v55  ;;  %756 = vmatprep.subr.mxu0 %v494_v20 }
 0x19a   :  { %729 = vmatprep.subr.mxu1 %v388_v56  ;;  %757 = vmatpush3.msra.mxu0 %v494_v20 }
 0x19b   :  { %730 = vmatpush3.msra.mxu1 %v388_v56  ;;  %758 = vmatprep.subr.mxu0 %v493_v21 }
 0x19c   :  { %759 = vmatpush3.msra.mxu0 %v493_v21 }
 0x19d   :  { %760 = vmatprep.subr.mxu0 %v492_v22 }
 0x19e   :  { %761 = vmatpush3.msra.mxu0 %v492_v22 }
 0x19f   :  { %762 = vmatprep.subr.mxu0 %v491_v23 }
 0x1a0   :  { %763 = vmatpush3.msra.mxu0 %v491_v23 }
 0x1a1   :  { %764 = vmatprep.subr.mxu0 %v490_v24 }
 0x1a2   :  { %765 = vmatpush3.msra.mxu0 %v490_v24 }
 0x254   :  { %v303_v28 = vpop.f32.mrf.mxu1 }
 0x255   :  { %v304_v29 = vadd.f32 %v644_v26, %v303_v28 }
 0x256   :  { %v722_v30 = vpop.f32.mrf.mxu1 }
 0x257   :  { %v315_v31 = vrot.slane %v304_v29, %v314_v27 }
 0x259   :  { %v316_v33 = vcombine.high %v315_v31, %v315_v31  ;;  %v323_v34 = vrot.slane %v315_v31, %v314_v27 }
 0x25b   :  { %v334_v36 = vrot.slane %v323_v34, %v333_v32  ;;  %v330_v37 = vrot.slane %v316_v33, %v314_v27 }
 0x25d   :  { %v341_v38 = vadd.f32 %v334_v36, %v307_v35  ;;  %v338_v39 = vrot.slane %v330_v37, %v333_v32 }
 0x25f   :  { %v345_v40 = vsel %vm149_vm2, %v341_v38, 0.0  ;;  %v342_v41 = vadd.f32 %v338_v39, %v307_v35 }
 0x260   :  { %346 = vadd.xlane.f32.xlu0 %v345_v40  ;;  %v651_v40 = vld [vmem:[%s1042_s13] ss:$0 sm:$0xff] }
 0x261   :  { %v348_v42 = vsel %vm149_vm2, %v342_v41, 0.0 }
 0x264   :  { %349 = vadd.xlane.f32.xlu0 %v348_v42 }
 0x2e9   :  { %v347_v43 = vpop.xlane.xlu0 %346 }
 0x2ea   :  { %v352_v44 = vmul.f32 0.03125, %v347_v43 }
 0x2ec   :  { %v354_v45 = vsub.f32 %v341_v38, %v352_v44 }
 0x2ed   :  { %v350_v46 = vpop.xlane.xlu0 %349 }
 0x2ee   :  { %v353_v47 = vmul.f32 0.03125, %v350_v46  ;;  %v356_v48 = vmul.f32 %v354_v45, %v354_v45 }
 0x2f0   :  { %v355_v49 = vsub.f32 %v342_v41, %v353_v47  ;;  %v358_v50 = vsel %vm149_vm2, %v356_v48, 0.0 }
 0x2f1   :  { %359 = vadd.xlane.f32.xlu1 %v358_v50 }
 0x2f2   :  { %v357_v51 = vmul.f32 %v355_v49, %v355_v49 }
 0x2f4   :  { %v361_v52 = vsel %vm149_vm2, %v357_v51, 0.0 }
 0x2f5   :  { %362 = vadd.xlane.f32.xlu1 %v361_v52 }
 0x37a   :  { %v360_v60 = vpop.xlane.xlu1 %359 }
 0x37b   :  { %v364_v61 = vmul.f32 0.03125, %v360_v60 }
 0x37d   :  { %v366_v62 = vadd.f32 1e-05, %v364_v61 }
 0x37e   :  { %v363_v63 = vpop.xlane.xlu1 %362 }
 0x37f   :  { %772 = vrsqrt.f32 %v366_v62  ;;  %v365_v0 = vmul.f32 0.03125, %v363_v63 }
 0x381   :  { %v367_v1 = vadd.f32 1e-05, %v365_v0 }
 0x383   :  { %774 = vrsqrt.f32 %v367_v1 }
 0x38c   :  { %v773_v2 = vpop.eup %772 }
 0x38d   :  { %v370_v4 = vmul.f32 %v773_v2, %v354_v45  ;;  %v652_v2 = vld [vmem:[%s1043_s14] ss:$0 sm:$0xff] }
 0x38f   :  { %v378_v6 = vmul.f32 %v646_v3, %v370_v4 }
 0x390   :  { %v775_v7 = vpop.eup %774 }
 0x391   :  { %v371_v8 = vmul.f32 %v775_v7, %v355_v49  ;;  %v956_v9 = vadd.f32 %v647_v5, %v378_v6 }
 0x393   :  { %v379_v10 = vmul.f32 %v646_v3, %v371_v8  ;;  %731 = vmatprep.mubr.msk.f32.mxu1 %vm149_vm2, %v956_v9 }
 0x395   :  { %v960_v11 = vadd.f32 %v647_v5, %v379_v10  ;;  %v653_v5 = vld [vmem:[%s1044_s15] ss:$0 sm:$0xff] }
 0x397   :  { %732 = vmatmul.mubr.msk.f32.vlgmr.msra.gmra.mxu1 %vm149_vm2, %v960_v11 }
 0x457   :  { %v733_v26 = vpop.f32.mrf.mxu1 }
 0x458   :  { %v477_v27 = vadd.f32 %v733_v26, %v648_v25 }
 0x459   :  { %v471_v28 = vpop.f32.mrf.mxu1 }
 0x45a   :  { %v483_v29 = vmul.f32 0.70710677, %v477_v27  ;;  %v472_v30 = vadd.f32 %v648_v25, %v471_v28  ;;  %v481_v37 = vmul.f32 0.5, %v477_v27 }
 0x45c   :  { %776 = verf.f32 %v483_v29  ;;  %v482_v31 = vmul.f32 0.70710677, %v472_v30  ;;  %v480_v35 = vmul.f32 0.5, %v472_v30 }
 0x45e   :  { %778 = verf.f32 %v482_v31 }
 0x469   :  { %v777_v32 = vpop.eup %776 }
 0x46a   :  { %v487_v34 = vadd.f32 1.0, %v777_v32 }
 0x46b   :  { %v779_v33 = vpop.eup %778 }
 0x46c   :  { %v486_v36 = vadd.f32 1.0, %v779_v33  ;;  %v489_v39 = vmul.f32 %v487_v34, %v481_v37 }
 0x46e   :  { %v488_v38 = vmul.f32 %v486_v36, %v480_v35 }
 0x470   :  { %766 = vmatprep.mubr.f32.mxu0 %v488_v38 }
 0x471   :  { %767 = vmatmul.mubr.f32.vlgmr.msra.gmra.mxu0 %v489_v39 }
 0x531   :  { %v768_v41 = vpop.f32.mrf.mxu0 }
 0x532   :  { %v585_v42 = vadd.f32 %v768_v41, %v651_v40 }
 0x533   :  { %v579_v43 = vpop.f32.mrf.mxu0 }
 0x534   :  { %v580_v44 = vadd.f32 %v651_v40, %v579_v43  ;;  %v589_v45 = vadd.f32 %v585_v42, %v960_v11 }
 0x536   :  { %v595_v46 = vsel %vm149_vm2, %v589_v45, 0.0  ;;  %v588_v47 = vadd.f32 %v580_v44, %v956_v9 }
 0x537   :  { %596 = vadd.xlane.f32.xlu1 %v595_v46 }
 0x538   :  { %v592_v48 = vsel %vm149_vm2, %v588_v47, 0.0 }
 0x539   :  { %593 = vadd.xlane.f32.xlu0 %v592_v48 }
 0x5c0   :  { %v597_v49 = vpop.xlane.xlu1 %596 }
 0x5c1   :  { %v599_v50 = vmul.f32 0.03125, %v597_v49 }
 0x5c2   :  { %v594_v51 = vpop.xlane.xlu0 %593 }
 0x5c3   :  { %v601_v52 = vsub.f32 %v589_v45, %v599_v50  ;;  %v598_v53 = vmul.f32 0.03125, %v594_v51 }
 0x5c5   :  { %v600_v54 = vsub.f32 %v588_v47, %v598_v53  ;;  %v603_v55 = vmul.f32 %v601_v52, %v601_v52 }
 0x5c7   :  { %v607_v56 = vsel %vm149_vm2, %v603_v55, 0.0  ;;  %v602_v57 = vmul.f32 %v600_v54, %v600_v54 }
 0x5c8   :  { %608 = vadd.xlane.f32.xlu1 %v607_v56 }
 0x5c9   :  { %v604_v58 = vsel %vm149_vm2, %v602_v57, 0.0 }
 0x5ca   :  { %605 = vadd.xlane.f32.xlu0 %v604_v58 }
 0x651   :  { %v609_v59 = vpop.xlane.xlu1 %608 }
 0x652   :  { %v611_v60 = vmul.f32 0.03125, %v609_v59 }
 0x653   :  { %v606_v61 = vpop.xlane.xlu0 %605 }
 0x654   :  { %v613_v62 = vadd.f32 1e-05, %v611_v60  ;;  %v610_v63 = vmul.f32 0.03125, %v606_v61 }
 0x656   :  { %780 = vrsqrt.f32 %v613_v62  ;;  %v612_v0 = vadd.f32 1e-05, %v610_v63 }
 0x658   :  { %782 = vrsqrt.f32 %v612_v0 }
 0x663   :  { %v781_v1 = vpop.eup %780 }
 0x664   :  { %v617_v3 = vmul.f32 %v781_v1, %v601_v52 }
 0x665   :  { %v783_v4 = vpop.eup %782 }
 0x666   :  { %v625_v6 = vmul.f32 %v652_v2, %v617_v3  ;;  %v616_v7 = vmul.f32 %v783_v4, %v600_v54 }
 0x668   :  { %v633_v8 = vadd.f32 %v653_v5, %v625_v6  ;;  %v624_v9 = vmul.f32 %v652_v2, %v616_v7 }
 0x66a   :  { %635 = vst.msk [vmem:[%s1045_s16 + $0x8] sm:$0xff] %vm149_vm2, %v633_v8  ;;  %v632_v10 = vadd.f32 %v653_v5, %v624_v9 }
 0x66c   :  { %634 = vst.msk [vmem:[%s1045_s16] sm:$0xff] %vm149_vm2, %v632_v10 }

// kernel: cross_modal_forward.4
= control target key start
LH: loop header
LB: loop body
LE: loop exit
PB: predicated region body
PF: predicated region fallthrough
CT: control target
= control target key end

     0   :  { %v792_v0 = vmov 0.0   ;;  %vm793_vm0 = vmmov 0   ;;  %vm66_vm1 = vcmask 326656   ;;  %vm151_vm2 = vcmask 261120   ;;  %s1043_s1 = inlined_call_operand.vmem [shape: f32[40,32], index: 1, kind: input, shape index: {}]   ;;  %s1044_s0 = inlined_call_operand.vmem [shape: f32[2,40], index: 0, kind: input, shape index: {}]   ;;  %s1045_s3 = inlined_call_operand.vmem [shape: f32[32,32], index: 3, kind: input, shape index: {}]   ;;  %s1046_s2 = inlined_call_operand.vmem [shape: f32[1,32], index: 2, kind: input, shape index: {}]   ;;  %s1047_s5 = inlined_call_operand.vmem [shape: f32[32,32], index: 5, kind: input, shape index: {}]   ;;  %s1048_s4 = inlined_call_operand.vmem [shape: f32[1,32], index: 4, kind: input, shape index: {}]   ;;  %s1049_s6 = inlined_call_operand.vmem [shape: f32[1,32], index: 6, kind: input, shape index: {}]   ;;  %s1050_s7 = inlined_call_operand.vmem [shape: f32[8,32], index: 7, kind: input, shape index: {}]   ;;  %s1051_s10 = inlined_call_operand.vmem [shape: f32[32,128], index: 10, kind: input, shape index: {}]   ;;  %s1052_s12 = inlined_call_operand.vmem [shape: f32[128,32], index: 12, kind: input, shape index: {}]   ;;  %s1053_s8 = inlined_call_operand.vmem [shape: f32[1,32], index: 8, kind: input, shape index: {}]   ;;  %s1054_s9 = inlined_call_operand.vmem [shape: f32[1,32], index: 9, kind: input, shape index: {}]   ;;  %s1055_s11 = inlined_call_operand.vmem [shape: f32[1,128], index: 11, kind: input, shape index: {}]   ;;  %s1056_s13 = inlined_call_operand.vmem [shape: f32[1,32], index: 13, kind: input, shape index: {}]   ;;  %s1057_s14 = inlined_call_operand.vmem [shape: f32[1,32], index: 14, kind: input, shape index: {}]   ;;  %s1058_s15 = inlined_call_operand.vmem [shape: f32[1,32], index: 15, kind: input, shape index: {}]   ;;  %s1059_s16 = inlined_call_operand.vmem [shape: f32[16,32], index: 16, kind: output, shape index: {}]  }
   0x1   :  { %1061 = sst [smem:[#allocation2_spill]] %s1043_s1  ;;  %696 = vmatprep.subr.mxu0 %v792_v0  ;;  %706 = vmatprep.mubr.msk.f32.mxu0 %vm793_vm0, %v792_v0  ;;  %v53_v6 = vld [vmem:[%s1044_s0] sm:$0x3]  ;;  %v143_v7 = vld [vmem:[%s1045_s3 + $0x18] sm:$0xff]  ;;  %v142_v8 = vld [vmem:[%s1045_s3 + $0x10] sm:$0xff]  ;;  %v314_v25 = vlaneseq }
   0x2   :  { %s1062_s23 = sld [smem:[#allocation2_spill]]  ;;  %v141_v9 = vld [vmem:[%s1045_s3 + $0x8] sm:$0xff]  ;;  %v140_v10 = vld [vmem:[%s1045_s3] sm:$0xff]  ;;  %v228_v14 = vld [vmem:[%s1047_s5 + $0x18] sm:$0xff]  ;;  %v794_v23 = vmov 1966171168  }
   0x3   :  { %v642_v11 = vld [vmem:[%s1046_s2] ss:$0 sm:$0xff]  ;;  %v227_v16 = vld [vmem:[%s1047_s5 + $0x10] sm:$0xff]  ;;  %v226_v17 = vld [vmem:[%s1047_s5 + $0x8] sm:$0xff]  ;;  %v312_v24 = vunpack.c.l.s4 %v794_v23  ;;  %v315_v27 = vshrl.u32 %v314_v25, 7 }
   0x4   :  { %v225_v18 = vld [vmem:[%s1047_s5] sm:$0xff]  ;;  %v393_v55 = vld [vmem:[%s1051_s10 + $0x18] sm:$0xff]  ;;  %v392_v56 = vld [vmem:[%s1051_s10 + $0x10] sm:$0xff] }
   0x5   :  { %v644_v19 = vld [vmem:[%s1048_s4] ss:$0 sm:$0xff]  ;;  %v313_v26 = vunpack.c.0.s8 %v312_v24  ;;  %v335_v34 = vsub.s32 0, %v315_v27  ;;  %v391_v57 = vld [vmem:[%s1051_s10 + $0x8] sm:$0xff]  ;;  %v507_v59 = vld [vmem:[%s1052_s12 + $0x78] sm:$0xff] }
   0x6   :  { %v646_v28 = vld [vmem:[%s1049_s6] ss:$0 sm:$0xff]  ;;  %v506_v60 = vld [vmem:[%s1052_s12 + $0x70] sm:$0xff]  ;;  %742 = vmatprep.subr.mxu1 %v507_v59  ;;  %v505_v61 = vld [vmem:[%s1052_s12 + $0x68] sm:$0xff] }
   0x7   :  { %v316_v29 = vsub.s32 %v313_v26, %v315_v27  ;;  %v309_v37 = vld [vmem:[%s1050_s7] sm:$0xff]  ;;  %743 = vmatpush3.msra.mxu1 %v507_v59  ;;  %v495_v23 = vld [vmem:[%s1052_s12 + $0x18] sm:$0xff]  ;;  %v494_v24 = vld [vmem:[%s1052_s12 + $0x10] sm:$0xff] }
   0x8   :  { %v58_v1 = vld [vmem:[%s1062_s23 + $0x20] sm:$0xff]  ;;  %v57_v2 = vld [vmem:[%s1062_s23 + $0x18] sm:$0xff]  ;;  %v56_v3 = vld [vmem:[%s1062_s23 + $0x10] sm:$0xff]  ;;  %744 = vmatprep.subr.mxu1 %v506_v60 }
   0x9   :  { %697 = vmatpush3.msra.mxu0 %v58_v1  ;;  %v55_v4 = vld [vmem:[%s1062_s23 + $0x8] sm:$0xff]  ;;  %v54_v5 = vld [vmem:[%s1062_s23] sm:$0xff]  ;;  %745 = vmatpush3.msra.mxu1 %v506_v60 }
   0xa   :  { %698 = vmatprep.subr.mxu0 %v792_v0  ;;  %v390_v58 = vld [vmem:[%s1051_s10] sm:$0xff]  ;;  %746 = vmatprep.subr.mxu1 %v505_v61  ;;  %v493_v25 = vld [vmem:[%s1052_s12 + $0x8] sm:$0xff] }
   0xb   :  { %699 = vmatpush3.msra.mxu0 %v57_v2  ;;  %747 = vmatpush3.msra.mxu1 %v505_v61  ;;  %v492_v26 = vld [vmem:[%s1052_s12] sm:$0xff] }
   0xc   :  { %700 = vmatprep.subr.mxu0 %v792_v0  ;;  %v650_v27 = vld [vmem:[%s1055_s11] ss:$0 sm:$0xff] }
   0xd   :  { %701 = vmatpush3.msra.mxu0 %v56_v3 }
   0xe   :  { %702 = vmatprep.subr.mxu0 %v792_v0 }
   0xf   :  { %703 = vmatpush3.msra.mxu0 %v55_v4 }
  0x10   :  { %704 = vmatprep.subr.mxu0 %v792_v0 }
  0x11   :  { %705 = vmatpush3.msra.mxu0 %v54_v5  ;;  %v648_v5 = vld [vmem:[%s1053_s8] ss:$0 sm:$0xff] }
  0x12   :  { %707 = vmatmul.mubr.msk.f32.vlgmr.msra.gmra.mxu0 %vm66_vm1, %v53_v6  ;;  %709 = vmatprep.subr.mxu0 %v792_v0 }
  0x13   :  { %710 = vmatpush3.msra.mxu0 %v143_v7  ;;  %717 = vmatprep.mubr.msk.f32.mxu0 %vm793_vm0, %v792_v0  ;;  %v649_v7 = vld [vmem:[%s1054_s9] ss:$0 sm:$0xff] }
  0x14   :  { %711 = vmatprep.subr.mxu0 %v792_v0 }
  0x15   :  { %712 = vmatpush3.msra.mxu0 %v142_v8 }
  0x16   :  { %713 = vmatprep.subr.mxu0 %v792_v0 }
  0x17   :  { %714 = vmatpush3.msra.mxu0 %v141_v9 }
  0x18   :  { %715 = vmatprep.subr.mxu0 %v792_v0 }
  0x19   :  { %716 = vmatpush3.msra.mxu0 %v140_v10 }
  0x1a   :  { %720 = vmatprep.subr.mxu0 %v792_v0 }
  0xd2   :  { %v136_v12 = vpop.f32.mrf.mxu0 }
  0xd3   :  { %v137_v13 = vadd.f32 %v642_v11, %v136_v12 }
  0xd4   :  { %v708_v15 = vpop.f32.mrf.mxu0 }
  0xd5   :  { %718 = vmatmul.mubr.msk.f32.vlgmr.msra.gmra.mxu0 %vm151_vm2, %v137_v13  ;;  %v503_v15 = vld [vmem:[%s1052_s12 + $0x58] sm:$0xff] }
  0xd6   :  { %721 = vmatpush3.msra.mxu0 %v228_v14  ;;  %728 = vmatprep.mubr.msk.f32.mxu0 %vm793_vm0, %v792_v0  ;;  %v504_v14 = vld [vmem:[%s1052_s12 + $0x60] sm:$0xff] }
  0xd7   :  { %722 = vmatprep.subr.mxu0 %v792_v0  ;;  %748 = vmatprep.subr.mxu1 %v504_v14 }
  0xd8   :  { %723 = vmatpush3.msra.mxu0 %v227_v16  ;;  %749 = vmatpush3.msra.mxu1 %v504_v14  ;;  %v502_v16 = vld [vmem:[%s1052_s12 + $0x50] sm:$0xff] }
  0xd9   :  { %724 = vmatprep.subr.mxu0 %v792_v0  ;;  %750 = vmatprep.subr.mxu1 %v503_v15 }
  0xda   :  { %725 = vmatpush3.msra.mxu0 %v226_v17  ;;  %751 = vmatpush3.msra.mxu1 %v503_v15  ;;  %v501_v17 = vld [vmem:[%s1052_s12 + $0x48] sm:$0xff] }
  0xdb   :  { %726 = vmatprep.subr.mxu0 %v792_v0  ;;  %752 = vmatprep.subr.mxu1 %v502_v16 }
  0xdc   :  { %727 = vmatpush3.msra.mxu0 %v225_v18  ;;  %753 = vmatpush3.msra.mxu1 %v502_v16  ;;  %v500_v18 = vld [vmem:[%s1052_s12 + $0x40] sm:$0xff] }
  0xdd   :  { %731 = vmatprep.subr.mxu0 %v393_v55  ;;  %754 = vmatprep.subr.mxu1 %v501_v17 }
  0xde   :  { %755 = vmatpush3.msra.mxu1 %v501_v17 }
  0xdf   :  { %756 = vmatprep.subr.mxu1 %v500_v18 }
  0xe0   :  { %757 = vmatpush3.msra.mxu1 %v500_v18 }
 0x195   :  { %v221_v20 = vpop.f32.mrf.mxu0 }
 0x196   :  { %v222_v21 = vadd.f32 %v644_v19, %v221_v20  ;;  %v499_v19 = vld [vmem:[%s1052_s12 + $0x38] sm:$0xff]  ;;  %v498_v20 = vld [vmem:[%s1052_s12 + $0x30] sm:$0xff] }
 0x197   :  { %v719_v22 = vpop.f32.mrf.mxu0  ;;  %758 = vmatprep.subr.mxu1 %v499_v19 }
 0x198   :  { %729 = vmatmul.mubr.msk.f32.vlgmr.msra.gmra.mxu0 %vm151_vm2, %v222_v21  ;;  %759 = vmatpush3.msra.mxu1 %v499_v19  ;;  %v497_v21 = vld [vmem:[%s1052_s12 + $0x28] sm:$0xff]  ;;  %v496_v22 = vld [vmem:[%s1052_s12 + $0x20] sm:$0xff] }
 0x199   :  { %732 = vmatpush3.msra.mxu0 %v393_v55  ;;  %760 = vmatprep.subr.mxu1 %v498_v20 }
 0x19a   :  { %733 = vmatprep.subr.mxu0 %v392_v56  ;;  %761 = vmatpush3.msra.mxu1 %v498_v20 }
 0x19b   :  { %734 = vmatpush3.msra.mxu0 %v392_v56  ;;  %762 = vmatprep.subr.mxu1 %v497_v21 }
 0x19c   :  { %735 = vmatprep.subr.mxu0 %v391_v57  ;;  %763 = vmatpush3.msra.mxu1 %v497_v21 }
 0x19d   :  { %736 = vmatpush3.msra.mxu0 %v391_v57  ;;  %764 = vmatprep.subr.mxu1 %v496_v22 }
 0x19e   :  { %737 = vmatprep.subr.mxu0 %v390_v58  ;;  %765 = vmatpush3.msra.mxu1 %v496_v22 }
 0x19f   :  { %738 = vmatpush3.msra.mxu0 %v390_v58  ;;  %766 = vmatprep.subr.mxu1 %v495_v23 }
 0x1a0   :  { %767 = vmatpush3.msra.mxu1 %v495_v23 }
 0x1a1   :  { %768 = vmatprep.subr.mxu1 %v494_v24 }
 0x1a2   :  { %769 = vmatpush3.msra.mxu1 %v494_v24 }
 0x1a3   :  { %770 = vmatprep.subr.mxu1 %v493_v25 }
 0x1a4   :  { %771 = vmatpush3.msra.mxu1 %v493_v25 }
 0x1a5   :  { %772 = vmatprep.subr.mxu1 %v492_v26 }
 0x1a6   :  { %773 = vmatpush3.msra.mxu1 %v492_v26 }
 0x258   :  { %v305_v30 = vpop.f32.mrf.mxu0 }
 0x259   :  { %v306_v31 = vadd.f32 %v646_v28, %v305_v30 }
 0x25a   :  { %v730_v32 = vpop.f32.mrf.mxu0 }
 0x25b   :  { %v317_v33 = vrot.slane %v306_v31, %v316_v29 }
 0x25d   :  { %v318_v35 = vcombine.high %v317_v33, %v317_v33  ;;  %v325_v36 = vrot.slane %v317_v33, %v316_v29 }
 0x25f   :  { %v336_v38 = vrot.slane %v325_v36, %v335_v34  ;;  %v332_v39 = vrot.slane %v318_v35, %v316_v29 }
 0x261   :  { %v343_v40 = vadd.f32 %v336_v38, %v309_v37  ;;  %v340_v41 = vrot.slane %v332_v39, %v335_v34 }
 0x263   :  { %v347_v42 = vsel %vm151_vm2, %v343_v40, 0.0  ;;  %v344_v43 = vadd.f32 %v340_v41, %v309_v37 }
 0x264   :  { %348 = vadd.xlane.f32.xlu0 %v347_v42  ;;  %v653_v42 = vld [vmem:[%s1056_s13] ss:$0 sm:$0xff] }
 0x265   :  { %v350_v44 = vsel %vm151_vm2, %v344_v43, 0.0 }
 0x268   :  { %351 = vadd.xlane.f32.xlu0 %v350_v44 }
 0x2ed   :  { %v349_v45 = vpop.xlane.xlu0 %348 }
 0x2ee   :  { %v354_v46 = vmul.f32 0.03125, %v349_v45 }
 0x2f0   :  { %v356_v47 = vsub.f32 %v343_v40, %v354_v46 }
 0x2f1   :  { %v352_v48 = vpop.xlane.xlu0 %351 }
 0x2f2   :  { %v355_v49 = vmul.f32 0.03125, %v352_v48  ;;  %v358_v50 = vmul.f32 %v356_v47, %v356_v47 }
 0x2f4   :  { %v357_v51 = vsub.f32 %v344_v43, %v355_v49  ;;  %v360_v52 = vsel %vm151_vm2, %v358_v50, 0.0 }
 0x2f5   :  { %361 = vadd.xlane.f32.xlu1 %v360_v52 }
 0x2f6   :  { %v359_v53 = vmul.f32 %v357_v51, %v357_v51 }
 0x2f8   :  { %v363_v54 = vsel %vm151_vm2, %v359_v53, 0.0 }
 0x2f9   :  { %364 = vadd.xlane.f32.xlu1 %v363_v54 }
 0x37e   :  { %v362_v62 = vpop.xlane.xlu1 %361 }
 0x37f   :  { %v366_v63 = vmul.f32 0.03125, %v362_v62 }
 0x381   :  { %v368_v0 = vadd.f32 1e-05, %v366_v63 }
 0x382   :  { %v365_v1 = vpop.xlane.xlu1 %364 }
 0x383   :  { %780 = vrsqrt.f32 %v368_v0  ;;  %v367_v2 = vmul.f32 0.03125, %v365_v1 }
 0x385   :  { %v369_v3 = vadd.f32 1e-05, %v367_v2 }
 0x387   :  { %782 = vrsqrt.f32 %v369_v3 }
 0x390   :  { %v781_v4 = vpop.eup %780 }
 0x391   :  { %v372_v6 = vmul.f32 %v781_v4, %v356_v47  ;;  %v654_v4 = vld [vmem:[%s1057_s14] ss:$0 sm:$0xff] }
 0x393   :  { %v380_v8 = vmul.f32 %v648_v5, %v372_v6 }
 0x394   :  { %v783_v9 = vpop.eup %782 }
 0x395   :  { %v373_v10 = vmul.f32 %v783_v9, %v357_v51  ;;  %v970_v11 = vadd.f32 %v649_v7, %v380_v8 }
 0x397   :  { %v381_v12 = vmul.f32 %v648_v5, %v373_v10  ;;  %739 = vmatprep.mubr.msk.f32.mxu0 %vm151_vm2, %v970_v11 }
 0x399   :  { %v974_v13 = vadd.f32 %v649_v7, %v381_v12  ;;  %v655_v7 = vld [vmem:[%s1058_s15] ss:$0 sm:$0xff] }
 0x39b   :  { %740 = vmatmul.mubr.msk.f32.vlgmr.msra.gmra.mxu0 %vm151_vm2, %v974_v13 }
 0x45b   :  { %v741_v28 = vpop.f32.mrf.mxu0 }
 0x45c   :  { %v479_v29 = vadd.f32 %v741_v28, %v650_v27 }
 0x45d   :  { %v473_v30 = vpop.f32.mrf.mxu0 }
 0x45e   :  { %v485_v31 = vmul.f32 0.70710677, %v479_v29  ;;  %v474_v32 = vadd.f32 %v650_v27, %v473_v30  ;;  %v483_v39 = vmul.f32 0.5, %v479_v29 }
 0x460   :  { %784 = verf.f32 %v485_v31  ;;  %v484_v33 = vmul.f32 0.70710677, %v474_v32  ;;  %v482_v37 = vmul.f32 0.5, %v474_v32 }
 0x462   :  { %786 = verf.f32 %v484_v33 }
 0x46d   :  { %v785_v34 = vpop.eup %784 }
 0x46e   :  { %v489_v36 = vadd.f32 1.0, %v785_v34 }
 0x46f   :  { %v787_v35 = vpop.eup %786 }
 0x470   :  { %v488_v38 = vadd.f32 1.0, %v787_v35  ;;  %v491_v41 = vmul.f32 %v489_v36, %v483_v39 }
 0x472   :  { %v490_v40 = vmul.f32 %v488_v38, %v482_v37 }
 0x474   :  { %774 = vmatprep.mubr.f32.mxu1 %v490_v40 }
 0x475   :  { %775 = vmatmul.mubr.f32.vlgmr.msra.gmra.mxu1 %v491_v41 }
 0x535   :  { %v776_v43 = vpop.f32.mrf.mxu1 }
 0x536   :  { %v587_v44 = vadd.f32 %v776_v43, %v653_v42 }
 0x537   :  { %v581_v45 = vpop.f32.mrf.mxu1 }
 0x538   :  { %v582_v46 = vadd.f32 %v653_v42, %v581_v45  ;;  %v591_v47 = vadd.f32 %v587_v44, %v974_v13 }
 0x53a   :  { %v597_v48 = vsel %vm151_vm2, %v591_v47, 0.0  ;;  %v590_v49 = vadd.f32 %v582_v46, %v970_v11 }
 0x53b   :  { %598 = vadd.xlane.f32.xlu1 %v597_v48 }
 0x53c   :  { %v594_v50 = vsel %vm151_vm2, %v590_v49, 0.0 }
 0x53d   :  { %595 = vadd.xlane.f32.xlu0 %v594_v50 }
 0x5c4   :  { %v599_v51 = vpop.xlane.xlu1 %598 }
 0x5c5   :  { %v601_v52 = vmul.f32 0.03125, %v599_v51 }
 0x5c6   :  { %v596_v53 = vpop.xlane.xlu0 %595 }
 0x5c7   :  { %v603_v54 = vsub.f32 %v591_v47, %v601_v52  ;;  %v600_v55 = vmul.f32 0.03125, %v596_v53 }
 0x5c9   :  { %v602_v56 = vsub.f32 %v590_v49, %v600_v55  ;;  %v605_v57 = vmul.f32 %v603_v54, %v603_v54 }
 0x5cb   :  { %v609_v58 = vsel %vm151_vm2, %v605_v57, 0.0  ;;  %v604_v59 = vmul.f32 %v602_v56, %v602_v56 }
 0x5cc   :  { %610 = vadd.xlane.f32.xlu1 %v609_v58 }
 0x5cd   :  { %v606_v60 = vsel %vm151_vm2, %v604_v59, 0.0 }
 0x5ce   :  { %607 = vadd.xlane.f32.xlu0 %v606_v60 }
 0x655   :  { %v611_v61 = vpop.xlane.xlu1 %610 }
 0x656   :  { %v613_v62 = vmul.f32 0.03125, %v611_v61 }
 0x657   :  { %v608_v63 = vpop.xlane.xlu0 %607 }
 0x658   :  { %v615_v0 = vadd.f32 1e-05, %v613_v62  ;;  %v612_v1 = vmul.f32 0.03125, %v608_v63 }
 0x65a   :  { %788 = vrsqrt.f32 %v615_v0  ;;  %v614_v2 = vadd.f32 1e-05, %v612_v1 }
 0x65c   :  { %790 = vrsqrt.f32 %v614_v2 }
 0x667   :  { %v789_v3 = vpop.eup %788 }
 0x668   :  { %v619_v5 = vmul.f32 %v789_v3, %v603_v54 }
 0x669   :  { %v791_v6 = vpop.eup %790 }
 0x66a   :  { %v627_v8 = vmul.f32 %v654_v4, %v619_v5  ;;  %v618_v9 = vmul.f32 %v791_v6, %v602_v56 }
 0x66c   :  { %v635_v10 = vadd.f32 %v655_v7, %v627_v8  ;;  %v626_v11 = vmul.f32 %v654_v4, %v618_v9 }
 0x66e   :  { %637 = vst.msk [vmem:[%s1059_s16 + $0x8] sm:$0xff] %vm151_vm2, %v635_v10  ;;  %v634_v12 = vadd.f32 %v655_v7, %v626_v11 }
 0x670   :  { %636 = vst.msk [vmem:[%s1059_s16] sm:$0xff] %vm151_vm2, %v634_v12 }

// kernel: cross_modal_forward.5
= control target key start
LH: loop header
LB: loop body
LE: loop exit
PB: predicated region body
PF: predicated region fallthrough
CT: control target
= control target key end

     0   :  { %s6172_s0 = inlined_call_operand.vmem [shape: f32[16,32], index: 0, kind: input, shape index: {}]   ;;  %s6173_s1 = inlined_call_operand.vmem [shape: f32[16,32], index: 1, kind: input, shape index: {}]   ;;  %s6174_s2 = inlined_call_operand.vmem [shape: f32[4,32,8], index: 2, kind: input, shape index: {}]   ;;  %s6175_s3 = inlined_call_operand.vmem [shape: f32[4,1,8], index: 3, kind: input, shape index: {}]   ;;  %s6176_s4 = inlined_call_operand.vmem [shape: f32[4,32,8], index: 4, kind: input, shape index: {}]   ;;  %s6177_s5 = inlined_call_operand.vmem [shape: f32[4,1,8], index: 5, kind: input, shape index: {}]   ;;  %s6178_s6 = inlined_call_operand.vmem [shape: f32[4,32,8], index: 6, kind: input, shape index: {}]   ;;  %s6179_s7 = inlined_call_operand.vmem [shape: f32[4,1,8], index: 7, kind: input, shape index: {}]   ;;  %s6180_s8 = inlined_call_operand.vmem [shape: f32[4,8,32], index: 8, kind: input, shape index: {}]   ;;  %s6181_s9 = inlined_call_operand.vmem [shape: f32[1,32], index: 9, kind: input, shape index: {}]   ;;  %s6182_s10 = inlined_call_operand.vmem [shape: f32[1,32], index: 10, kind: input, shape index: {}]   ;;  %s6183_s11 = inlined_call_operand.vmem [shape: f32[1,32], index: 11, kind: input, shape index: {}]   ;;  %s6184_s12 = inlined_call_operand.hbm [shape: f32[2,1,32], index: 12, kind: output, shape index: {0}]   ;;  %s6185_s13 = inlined_call_operand.hbm [shape: f32[2,1,32], index: 13, kind: output, shape index: {1}]  }
   0x1   :  { %6207 = sst [smem:[#allocation27_spill]] %s6172_s0 }
   0x2   :  { %6208 = sst [smem:[#allocation28_spill]] %s6173_s1 }
   0x3   :  { %6209 = sst [smem:[#allocation29_spill]] %s6174_s2 }
   0x4   :  { %6210 = sst [smem:[#allocation30_spill]] %s6175_s3 }
   0x5   :  { %6211 = sst [smem:[#allocation31_spill]] %s6176_s4 }
   0x6   :  { %19 = vsyncpa [#allocation3], 0 }
   0x7   :  { %21 = vsyncpa [#allocation3 + $0x1], 0 }
   0x8   :  { %22 = vsyncpa [#allocation5], 0 }
   0x9   :  { %24 = vsyncpa [#allocation5 + $0x1], 0  ;;  %s5241_s25 = smov 0   ;;  %s5243_s26 = smov 0  }
   0xa   :  { %s5245_s27 = smov 0   ;;  %s5247_s28 = smov 0  }
   0xb LB: > { %s5262_s29 = sadd.s32 4294967295, %s5165_s28   ;;  %s4362_s30 = sadd.s32 4294967294, %s5165_s28   ;;  %s5165_s28 = sphi %s5247_s28, %s6262_s28   ;;  %s5161_s27 = sphi %s5245_s27, %s6261_s27   ;;  %s5157_s26 = sphi %s5243_s26, %s6260_s26   ;;  %s5153_s25 = sphi %s5241_s25, %s6259_s25  }
   0xc   : > { %s5266_s14 = sadd.s32 1, %s5165_s28   ;;  %s299_s15 = sadd.s32 1, %s5161_s27 }
   0xd   : > { %s296_s16 = ssub.s32 %s5165_s28, %s5266_s14  ;;  %p309_p0 = scmp.ne.s32.totalorder %s5161_s27, %s5157_s26 }
   0xe   : > { %p297_p1 = scmp.eq.s32.totalorder %s296_s16, 0  ;;  %p310_p2 = scmp.eq.s32.totalorder %s5262_s29, 1 }
   0xf   : > { %p315_p3 = scmp.ne.s32.totalorder %s5157_s26, %s5153_s25  ;;  %p316_p4 = scmp.eq.s32.totalorder %s4362_s30, 1 }
  0x10   : > { %s5277_s17 = scalar_select %p297_p1, %s5161_s27, %s299_s15  }
  0x11   : > { %p5279_p5 = por %p310_p2, %p309_p0  ;;  %p5283_p6 = por %p316_p4, %p315_p3 }
  0x12   : > { %6212 = sst [smem:[#allocation8_spill]] %s5277_s17  ;;  %p4365_p7 = scmp.ge.s32.totalorder %s5165_s28, 1 }
  0x13   : > { %p404_p8 = scmp.lt.s32.totalorder %s5165_s28, 3 }
  0x15   : > { %p405_p9 = pnand %p4365_p7, %p404_p8 }
  0x17   : > { %408 = sbr.rel (%p405_p9) target bundleno = 2618 (0xa3a), region = 68 }
  0x1c   : > { %s6215_s2 = sld [smem:[#allocation29_spill]]  ;;  %p454_p10 = scmp.lt.s32.totalorder %s5262_s29, 1  ;;  %v6186_v2 = vmov 0.0   ;;  %vm553_vm0 = vcmask 261120   ;;  %vm5168_vm1 = vmmov 0   ;;  %v5573_v35 = vld [vmem:[%s6178_s6 + $0x18] sm:$0xff] }
  0x1d   : > { %4611 = vmatprep.subr.mxu0 %v6186_v2  ;;  %4622 = vmatprep.subr.mxu1 %v6186_v2  ;;  %s6216_s0 = sld [smem:[#allocation27_spill]]  ;;  %v5578_v36 = vld [vmem:[%s6178_s6 + $0x38] sm:$0xff]  ;;  %v5585_v37 = vld [vmem:[%s6178_s6 + $0x10] sm:$0xff]  ;;  %v5597_v39 = vld [vmem:[%s6178_s6 + $0x8] sm:$0xff]  ;;  %vm1448_vm2 = vcmask 64512   ;;  %s5938_s24 = sand.u32 1, %s5157_s26  }
  0x1e   : > { %s5315_s20 = scalar_select %p454_p10, %s5262_s29, 1  ;;  %4619 = vmatprep.mubr.msk.f32.mxu0 %vm5168_vm1, %v6186_v2  ;;  %4630 = vmatprep.mubr.msk.f32.mxu1 %vm5168_vm1, %v6186_v2  ;;  %v5590_v38 = vld [vmem:[%s6178_s6 + $0x30] sm:$0xff]  ;;  %v5602_v40 = vld [vmem:[%s6178_s6 + $0x28] sm:$0xff]  ;;  %v5615_v41 = vld [vmem:[%s6178_s6] sm:$0xff]  ;;  %vm4226_vm3 = vcmask 253952  }
  0x1f   : > { %s6217_s4 = sld [smem:[#allocation31_spill]]  ;;  %v5620_v42 = vld [vmem:[%s6178_s6 + $0x20] sm:$0xff]  ;;  %v5629_v43 = vld [vmem:[%s6178_s6 + $0x58] sm:$0xff]  ;;  %v5643_v45 = vld [vmem:[%s6178_s6 + $0x50] sm:$0xff]  ;;  %s447_s17 = scalar_lea.vmem [#allocation2], %s5938_s24 }
  0x20   : > { %s4366_s30 = sshll.u32 %s5315_s20, 3  ;;  %s6218_s1 = sld [smem:[#allocation28_spill]]  ;;  %6219 = vst [vmem:[#allocation9_spill] sm:$0xff] %v5629_v43  ;;  %v5634_v44 = vld [vmem:[%s6178_s6 + $0x78] sm:$0xff]  ;;  %6221 = vst [vmem:[#allocation11_spill] sm:$0xff] %v5643_v45  ;;  %v5648_v46 = vld [vmem:[%s6178_s6 + $0x70] sm:$0xff] }
  0x21   : > { %6220 = vst [vmem:[#allocation10_spill] sm:$0xff] %v5634_v44  ;;  %6222 = vst [vmem:[#allocation12_spill] sm:$0xff] %v5648_v46  ;;  %v5657_v47 = vld [vmem:[%s6178_s6 + $0x48] sm:$0xff]  ;;  %v5679_v49 = vld [vmem:[%s6178_s6 + $0x40] sm:$0xff]  ;;  %s6229_s3 = sld [smem:[#allocation30_spill]]  ;;  %s6206_s20 = sshll.u32 %s5262_s29, 4 }
  0x22   : > { %v5292_v0 = vld [vmem:[%s6215_s2 + $0x18] sm:$0xff]  ;;  %v5305_v3 = vld [vmem:[%s6215_s2 + $0x10] sm:$0xff]  ;;  %v5322_v5 = vld [vmem:[%s6215_s2 + $0x8] sm:$0xff]  ;;  %6223 = vst [vmem:[#allocation13_spill] sm:$0xff] %v5657_v47  ;;  %s4252_s15 = scalar_lea.hbm %s6184_s12, %s6206_s20  ;;  %s4238_s21 = scalar_lea.sflag [#allocation3], %s5938_s24 }
  0x23   : > { %v5297_v1 = vld [vmem:[%s6215_s2 + $0x38] sm:$0xff]  ;;  %v5310_v4 = vld [vmem:[%s6215_s2 + $0x30] sm:$0xff]  ;;  %4612 = vmatpush3.msra.mxu0 %v5292_v0  ;;  %v5327_v6 = vld [vmem:[%s6215_s2 + $0x28] sm:$0xff]  ;;  %s457_s23 = scalar_lea.vmem %s6216_s0, %s4366_s30  ;;  %6225 = vst [vmem:[#allocation15_spill] sm:$0xff] %v5679_v49  ;;  %s5169_s0 = smov [#allocation2]  }
  0x24   : > { %4623 = vmatpush3.msra.mxu1 %v5297_v1  ;;  %4613 = vmatprep.subr.mxu0 %v6186_v2  ;;  %v5337_v7 = vld [vmem:[%s6215_s2] sm:$0xff]  ;;  %v5364_v10 = vld [vmem:[%s6215_s2 + $0x58] sm:$0xff]  ;;  %v5380_v12 = vld [vmem:[%s6215_s2 + $0x50] sm:$0xff] }
  0x25   : > { %4624 = vmatprep.subr.mxu1 %v6186_v2  ;;  %4614 = vmatpush3.msra.mxu0 %v5305_v3  ;;  %v5349_v8 = vld [vmem:[%s6215_s2 + $0x20] sm:$0xff]  ;;  %v5369_v11 = vld [vmem:[%s6215_s2 + $0x78] sm:$0xff]  ;;  %v5385_v13 = vld [vmem:[%s6215_s2 + $0x70] sm:$0xff] }
  0x26   : > { %4625 = vmatpush3.msra.mxu1 %v5310_v4  ;;  %4615 = vmatprep.subr.mxu0 %v6186_v2  ;;  %v5351_v9 = vld [vmem:[%s457_s23] sm:$0xff]  ;;  %v5394_v14 = vld [vmem:[%s6215_s2 + $0x48] sm:$0xff]  ;;  %v5428_v18 = vld [vmem:[%s6217_s4 + $0x18] sm:$0xff]  ;;  %s461_s16 = scalar_lea.vmem %s6218_s1, %s4366_s30  ;;  %s5079_s1 = sshll.u32 %s5169_s0, 4  ;;  %s5080_s1 = int_to_ptr.vmem [resolvable:$false] %s5079_s1 }
  0x27   : > { %4626 = vmatprep.subr.mxu1 %v6186_v2  ;;  %4616 = vmatpush3.msra.mxu0 %v5322_v5  ;;  %v5399_v15 = vld [vmem:[%s6215_s2 + $0x68] sm:$0xff]  ;;  %v5408_v16 = vld [vmem:[%s6215_s2 + $0x40] sm:$0xff]  ;;  %v5433_v19 = vld [vmem:[%s6217_s4 + $0x38] sm:$0xff] }
  0x28   : > { %4627 = vmatpush3.msra.mxu1 %v5327_v6  ;;  %4617 = vmatprep.subr.mxu0 %v6186_v2  ;;  %v5415_v17 = vld [vmem:[%s6215_s2 + $0x60] sm:$0xff]  ;;  %v5444_v20 = vld [vmem:[%s6217_s4 + $0x10] sm:$0xff]  ;;  %v5458_v22 = vld [vmem:[%s6217_s4 + $0x8] sm:$0xff]  ;;  %s5081_s2 = scalar_lea.vmem %s5080_s1, 32 }
  0x29   : > { %4628 = vmatprep.subr.mxu1 %v6186_v2  ;;  %4618 = vmatpush3.msra.mxu0 %v5337_v7  ;;  %v5449_v21 = vld [vmem:[%s6217_s4 + $0x30] sm:$0xff]  ;;  %v5463_v23 = vld [vmem:[%s6217_s4 + $0x28] sm:$0xff]  ;;  %v5477_v24 = vld [vmem:[%s6217_s4] sm:$0xff] }
  0x2a   : > { %4629 = vmatpush3.msra.mxu1 %v5349_v8  ;;  %4620 = vmatmul.mubr.msk.f32.vlgmr.msra.gmra.mxu0 %vm553_vm0, %v5351_v9  ;;  %v5484_v25 = vld [vmem:[%s6217_s4 + $0x20] sm:$0xff]  ;;  %v5499_v27 = vld [vmem:[%s6217_s4 + $0x58] sm:$0xff]  ;;  %v5515_v29 = vld [vmem:[%s6217_s4 + $0x50] sm:$0xff] }
  0x2b   : > { %4633 = vmatprep.subr.mxu0 %v6186_v2  ;;  %4644 = vmatprep.subr.mxu1 %v6186_v2  ;;  %v5486_v26 = vld [vmem:[%s461_s16] sm:$0xff]  ;;  %v5504_v28 = vld [vmem:[%s6217_s4 + $0x78] sm:$0xff]  ;;  %v5520_v30 = vld [vmem:[%s6217_s4 + $0x70] sm:$0xff]  ;;  %s4254_s16 = sshll.u32 %s447_s17, 4  ;;  %s4255_s16 = int_to_ptr.vmem [resolvable:$true] %s4254_s16 }
  0x2c   : > { %4631 = vmatmul.mubr.msk.f32.vlgmr.msra.gmra.mxu1 %vm553_vm0, %v5351_v9  ;;  %4634 = vmatpush3.msra.mxu0 %v5364_v10  ;;  %v5529_v31 = vld [vmem:[%s6217_s4 + $0x48] sm:$0xff]  ;;  %v5543_v33 = vld [vmem:[%s6217_s4 + $0x40] sm:$0xff]  ;;  %s5075_s22 = scalar_lea.vmem %s4255_s16, 16  ;;  %p5082_p0 = scmp.lt.s32.totalorder %s4255_s16, %s5080_s1 }
  0x2d   : > { %4645 = vmatpush3.msra.mxu1 %v5369_v11  ;;  %4635 = vmatprep.subr.mxu0 %v6186_v2  ;;  %v5534_v32 = vld [vmem:[%s6217_s4 + $0x68] sm:$0xff]  ;;  %v5550_v34 = vld [vmem:[%s6217_s4 + $0x60] sm:$0xff]  ;;  %p5076_p11 = scmp.ne.s32.totalorder %s4255_s16, %s5075_s22  ;;  %p5083_p1 = scmp.lt.s32.totalorder %s5081_s2, %s5075_s22 }
  0x2e   : > { %4646 = vmatprep.subr.mxu1 %v6186_v2  ;;  %4636 = vmatpush3.msra.mxu0 %v5380_v12  ;;  %v5662_v48 = vld [vmem:[%s6178_s6 + $0x68] sm:$0xff]  ;;  %v5684_v50 = vld [vmem:[%s6178_s6 + $0x60] sm:$0xff] }
  0x2f   : > { %4647 = vmatpush3.msra.mxu1 %v5385_v13  ;;  %4637 = vmatprep.subr.mxu0 %v6186_v2  ;;  %6224 = vst [vmem:[#allocation14_spill] sm:$0xff] %v5662_v48  ;;  %6226 = vst [vmem:[#allocation16_spill] sm:$0xff] %v5684_v50  ;;  %v5701_v59 = vld [vmem:[%s6177_s5] ss:$0 sm:$0xff]  ;;  %v5706_v60 = vld [vmem:[%s6177_s5 + $0x1] ss:$0 sm:$0xff]  ;;  %p5077_p12 = pnand %p5076_p11, %p5279_p5  ;;  %p5084_p2 = por %p5083_p1, %p5082_p0 }
  0x30   : > { %4648 = vmatprep.subr.mxu1 %v6186_v2  ;;  %4638 = vmatpush3.msra.mxu0 %v5394_v14  ;;  %6227 = vst [vmem:[#allocation17_spill] sm:$0xff] %v5701_v59  ;;  %6228 = vst [vmem:[#allocation18_spill] sm:$0xff] %v5706_v60  ;;  %v5711_v63 = vld [vmem:[%s6229_s3] ss:$0 sm:$0xff] }
  0x31   : > { %4649 = vmatpush3.msra.mxu1 %v5399_v15  ;;  %4639 = vmatprep.subr.mxu0 %v6186_v2  ;;  %6230 = vst [vmem:[#allocation19_spill] sm:$0xff] %v5711_v63  ;;  %p5078_p13 = pneg %p5077_p12 }
  0x32   : > { %4650 = vmatprep.subr.mxu1 %v6186_v2  ;;  %4640 = vmatpush3.msra.mxu0 %v5408_v16 }
  0x33   : > { %4641 = vmatprep.mubr.msk.f32.mxu0 %vm5168_vm1, %v6186_v2  ;;  %4651 = vmatpush3.msra.mxu1 %v5415_v17  ;;  %p5085_p3 = pnand %p5084_p2, %p5078_p13 }
  0x34   : > { %4642 = vmatmul.mubr.msk.f32.vlgmr.msra.gmra.mxu0 %vm553_vm0, %v5351_v9  ;;  %4652 = vmatprep.mubr.msk.f32.mxu1 %vm5168_vm1, %v6186_v2 }
  0x35   : > { %4655 = vmatprep.subr.mxu0 %v6186_v2  ;;  %4666 = vmatprep.subr.mxu1 %v6186_v2 }
  0x36   : > { %4653 = vmatmul.mubr.msk.f32.vlgmr.msra.gmra.mxu1 %vm553_vm0, %v5351_v9  ;;  %4656 = vmatpush3.msra.mxu0 %v5428_v18 }
  0x37   : > { %4667 = vmatpush3.msra.mxu1 %v5433_v19  ;;  %4657 = vmatprep.subr.mxu0 %v6186_v2 }
  0x38   : > { %4668 = vmatprep.subr.mxu1 %v6186_v2  ;;  %4658 = vmatpush3.msra.mxu0 %v5444_v20 }
  0x39   : > { %4669 = vmatpush3.msra.mxu1 %v5449_v21  ;;  %4659 = vmatprep.subr.mxu0 %v6186_v2 }
  0x3a   : > { %4670 = vmatprep.subr.mxu1 %v6186_v2  ;;  %4660 = vmatpush3.msra.mxu0 %v5458_v22 }
  0x3b   : > { %4671 = vmatpush3.msra.mxu1 %v5463_v23  ;;  %4661 = vmatprep.subr.mxu0 %v6186_v2 }
  0x3c   : > { %4672 = vmatprep.subr.mxu1 %v6186_v2  ;;  %4662 = vmatpush3.msra.mxu0 %v5477_v24 }
  0x3d   : > { %4663 = vmatprep.mubr.msk.f32.mxu0 %vm5168_vm1, %v6186_v2  ;;  %4673 = vmatpush3.msra.mxu1 %v5484_v25 }
  0x3e   : > { %4674 = vmatprep.mubr.msk.f32.mxu1 %vm5168_vm1, %v6186_v2  ;;  %4664 = vmatmul.mubr.msk.f32.vlgmr.msra.gmra.mxu0 %vm553_vm0, %v5486_v26 }
  0x3f   : > { %4675 = vmatmul.mubr.msk.f32.vlgmr.msra.gmra.mxu1 %vm553_vm0, %v5486_v26  ;;  %4677 = vmatprep.subr.mxu0 %v6186_v2 }
  0x40   : > { %4688 = vmatprep.subr.mxu1 %v6186_v2  ;;  %4678 = vmatpush3.msra.mxu0 %v5499_v27 }
  0x41   : > { %4689 = vmatpush3.msra.mxu1 %v5504_v28  ;;  %4679 = vmatprep.subr.mxu0 %v6186_v2 }
  0x42   : > { %4690 = vmatprep.subr.mxu1 %v6186_v2  ;;  %4680 = vmatpush3.msra.mxu0 %v5515_v29 }
  0x43   : > { %4691 = vmatpush3.msra.mxu1 %v5520_v30  ;;  %4681 = vmatprep.subr.mxu0 %v6186_v2 }
  0x44   : > { %4692 = vmatprep.subr.mxu1 %v6186_v2  ;;  %4682 = vmatpush3.msra.mxu0 %v5529_v31 }
  0x45   : > { %4693 = vmatpush3.msra.mxu1 %v5534_v32  ;;  %4683 = vmatprep.subr.mxu0 %v6186_v2 }
  0x46   : > { %4694 = vmatprep.subr.mxu1 %v6186_v2  ;;  %4684 = vmatpush3.msra.mxu0 %v5543_v33 }
  0x47   : > { %4685 = vmatprep.mubr.msk.f32.mxu0 %vm5168_vm1, %v6186_v2  ;;  %4695 = vmatpush3.msra.mxu1 %v5550_v34 }
  0x48   : > { %4696 = vmatprep.mubr.msk.f32.mxu1 %vm5168_vm1, %v6186_v2  ;;  %4686 = vmatmul.mubr.msk.f32.vlgmr.msra.gmra.mxu0 %vm553_vm0, %v5486_v26 }
  0x49   : > { %4697 = vmatmul.mubr.msk.f32.vlgmr.msra.gmra.mxu1 %vm553_vm0, %v5486_v26  ;;  %4699 = vmatprep.subr.mxu0 %v6186_v2 }
  0x4a   : > { %4710 = vmatprep.subr.mxu1 %v6186_v2  ;;  %4707 = vmatprep.mubr.msk.f32.mxu0 %vm5168_vm1, %v6186_v2 }
  0x4b   : > { %4718 = vmatprep.mubr.msk.f32.mxu1 %vm5168_vm1, %v6186_v2  ;;  %4700 = vmatpush3.msra.mxu0 %v5573_v35 }
  0x4c   : > { %4711 = vmatpush3.msra.mxu1 %v5578_v36  ;;  %4701 = vmatprep.subr.mxu0 %v6186_v2 }
  0x4d   : > { %4712 = vmatprep.subr.mxu1 %v6186_v2  ;;  %4702 = vmatpush3.msra.mxu0 %v5585_v37 }
  0x4e   : > { %4713 = vmatpush3.msra.mxu1 %v5590_v38  ;;  %4703 = vmatprep.subr.mxu0 %v6186_v2 }
  0x4f   : > { %4714 = vmatprep.subr.mxu1 %v6186_v2  ;;  %4704 = vmatpush3.msra.mxu0 %v5597_v39 }
  0x50   : > { %4715 = vmatpush3.msra.mxu1 %v5602_v40  ;;  %4705 = vmatprep.subr.mxu0 %v6186_v2 }
  0x51   : > { %4716 = vmatprep.subr.mxu1 %v6186_v2  ;;  %4706 = vmatpush3.msra.mxu0 %v5615_v41 }
  0x52   : > { %4717 = vmatpush3.msra.mxu1 %v5620_v42  ;;  %4721 = vmatprep.subr.mxu0 %v6186_v2 }
  0x53   : > { %4732 = vmatprep.subr.mxu1 %v6186_v2  ;;  %4708 = vmatmul.mubr.msk.f32.vlgmr.msra.gmra.mxu0 %vm553_vm0, %v5486_v26 }
  0x54   : > { %4719 = vmatmul.mubr.msk.f32.vlgmr.msra.gmra.mxu1 %vm553_vm0, %v5486_v26  ;;  %4722 = vmatpush3.msra.mxu0 %v5629_v43 }
  0x55   : > { %4733 = vmatpush3.msra.mxu1 %v5634_v44  ;;  %4723 = vmatprep.subr.mxu0 %v6186_v2 }
  0x56   : > { %4734 = vmatprep.subr.mxu1 %v6186_v2  ;;  %4724 = vmatpush3.msra.mxu0 %v5643_v45 }
  0x57   : > { %4735 = vmatpush3.msra.mxu1 %v5648_v46  ;;  %4725 = vmatprep.subr.mxu0 %v6186_v2 }
  0x58   : > { %4736 = vmatprep.subr.mxu1 %v6186_v2  ;;  %4726 = vmatpush3.msra.mxu0 %v5657_v47 }
  0x59   : > { %4737 = vmatpush3.msra.mxu1 %v5662_v48  ;;  %4727 = vmatprep.subr.mxu0 %v6186_v2  ;;  %v6232_v48 = vmov 0.0  }
  0x5a   : > { %4738 = vmatprep.subr.mxu1 %v6186_v2  ;;  %4729 = vmatprep.mubr.msk.f32.mxu0 %vm5168_vm1, %v6186_v2 }
  0x5b   : > { %4740 = vmatprep.mubr.msk.f32.mxu1 %vm5168_vm1, %v6186_v2  ;;  %4728 = vmatpush3.msra.mxu0 %v5679_v49 }
  0x5c   : > { %4739 = vmatpush3.msra.mxu1 %v5684_v50  ;;  %4730 = vmatmul.mubr.msk.f32.vlgmr.msra.gmra.mxu0 %vm553_vm0, %v5486_v26 }
  0x5d   : > { %4741 = vmatmul.mubr.msk.f32.vlgmr.msra.gmra.mxu1 %vm553_vm0, %v5486_v26  ;;  %4743 = vmatprep.subr.mxu0 %v6186_v2 }
  0x5e   : > { %4748 = vmatprep.subr.mxu1 %v6186_v2  ;;  %4745 = vmatprep.mubr.msk.f32.mxu0 %vm5168_vm1, %v6186_v2 }
  0x5f   : > { %4750 = vmatprep.mubr.msk.f32.mxu1 %vm5168_vm1, %v6186_v2 }
  0xea   : > { %v623_v51 = vpop.f32.mrf.mxu0 }
  0xeb   : > { %v624_v50 = vadd.f32 %v5711_v63, %v623_v51  ;;  %v5740_v51 = vld [vmem:[%s6177_s5 + $0x3] ss:$0 sm:$0xff] }
  0xec   : > { %v4621_v52 = vpop.f32.mrf.mxu0  ;;  %v693_v53 = vpop.f32.mrf.mxu1  ;;  %6234 = vst [vmem:[#allocation22_spill] sm:$0xff] %v5740_v51 }
  0xed   : > { %v5716_v52 = vld [vmem:[%s6229_s3 + $0x1] ss:$0 sm:$0xff] }
  0xee   : > { %v4632_v54 = vpop.f32.mrf.mxu1  ;;  %6231 = vst [vmem:[#allocation20_spill] sm:$0xff] %v5716_v52  ;;  %v694_v49 = vadd.f32 %v5716_v52, %v693_v53 }
  0xf4   : > { %v763_v55 = vpop.f32.mrf.mxu0 }
  0xf6   : > { %v4643_v56 = vpop.f32.mrf.mxu0  ;;  %v833_v57 = vpop.f32.mrf.mxu1 }
  0xf8   : > { %v4654_v58 = vpop.f32.mrf.mxu1 }
  0xfe   : > { %v930_v61 = vpop.f32.mrf.mxu0 }
  0xff   : > { %v1000_v62 = vpop.f32.mrf.mxu1  ;;  %v931_v54 = vadd.f32 %v5701_v59, %v930_v61  ;;  %v5750_v61 = vld [vmem:[%s6229_s3 + $0x3] ss:$0 sm:$0xff] }
 0x100   : > { %v1001_v56 = vadd.f32 %v5706_v60, %v1000_v62  ;;  %v4665_v58 = vpop.f32.mrf.mxu0  ;;  %6236 = vst [vmem:[#allocation24_spill] sm:$0xff] %v5750_v61  ;;  %v834_v63 = vadd.f32 %v5750_v61, %v833_v57  ;;  %v5774_v57 = vld [vmem:[%s6179_s7 + $0x1] ss:$0 sm:$0xff] }
 0x101   : > { %v4676_v2 = vpop.f32.mrf.mxu1  ;;  %4744 = vmatpush3.xpose.msk.msra.mxu0 %vm1448_vm2, %v931_v54  ;;  %6238 = vst [vmem:[#allocation26_spill] sm:$0xff] %v5774_v57 }
 0x102   : > { %4749 = vmatpush3.xpose.msk.msra.mxu1 %vm1448_vm2, %v1001_v56  ;;  %4753 = vmatprep.subr.mxu0 %v6232_v48  ;;  %v5735_v2 = vld [vmem:[%s6177_s5 + $0x2] ss:$0 sm:$0xff] }
 0x103   : > { %4758 = vmatprep.subr.mxu1 %v6232_v48  ;;  %6233 = vst [vmem:[#allocation21_spill] sm:$0xff] %v5735_v2 }
 0x104   : > { %4746 = vmatmul.mubr.msk.f32.vlgmr.msra.gmra.mxu0 %vm1448_vm2, %v624_v50 }
 0x105   : > { %4751 = vmatmul.mubr.msk.f32.vlgmr.msra.gmra.mxu1 %vm1448_vm2, %v694_v49  ;;  %4755 = vmatprep.mubr.msk.f32.mxu0 %vm5168_vm1, %v6232_v48  ;;  %v5745_v49 = vld [vmem:[%s6229_s3 + $0x2] ss:$0 sm:$0xff] }
 0x106   : > { %4760 = vmatprep.mubr.msk.f32.mxu1 %vm5168_vm1, %v6232_v48  ;;  %6235 = vst [vmem:[#allocation23_spill] sm:$0xff] %v5745_v49  ;;  %v764_v52 = vadd.f32 %v5745_v49, %v763_v55  ;;  %v5769_v55 = vld [vmem:[%s6179_s7] ss:$0 sm:$0xff] }
 0x107   : > { %6237 = vst [vmem:[#allocation25_spill] sm:$0xff] %v5769_v55 }
 0x108   : > { %v1070_v53 = vpop.f32.mrf.mxu0 }
 0x109   : > { %v1140_v50 = vpop.f32.mrf.mxu1  ;;  %v1071_v62 = vadd.f32 %v5735_v2, %v1070_v53 }
 0x10a   : > { %v1141_v54 = vadd.f32 %v5740_v51, %v1140_v50  ;;  %v4687_v56 = vpop.f32.mrf.mxu0 }
 0x10b   : > { %v4698_v58 = vpop.f32.mrf.mxu1  ;;  %4754 = vmatpush3.xpose.msk.msra.mxu0 %vm1448_vm2, %v1071_v62 }
 0x10c   : > { %4759 = vmatpush3.xpose.msk.msra.mxu1 %vm1448_vm2, %v1141_v54  ;;  %4763 = vmatprep.subr.mxu0 %v6232_v48 }
 0x10d   : > { %4768 = vmatprep.subr.mxu1 %v6232_v48 }
 0x10e   : > { %4756 = vmatmul.mubr.msk.f32.vlgmr.msra.gmra.mxu0 %vm1448_vm2, %v764_v52 }
 0x10f   : > { %4761 = vmatmul.mubr.msk.f32.vlgmr.msra.gmra.mxu1 %vm1448_vm2, %v834_v63  ;;  %4765 = vmatprep.mubr.msk.f32.mxu0 %vm5168_vm1, %v6232_v48 }
 0x110   : > { %4770 = vmatprep.mubr.msk.f32.mxu1 %vm5168_vm1, %v6232_v48 }
 0x113   : > { %v1234_v53 = vpop.f32.mrf.mxu0 }
 0x114   : > { %v1304_v52 = vpop.f32.mrf.mxu1  ;;  %v1235_v63 = vadd.f32 %v5769_v55, %v1234_v53 }
 0x115   : > { %v1305_v50 = vadd.f32 %v5774_v57, %v1304_v52  ;;  %v4709_v62 = vpop.f32.mrf.mxu0 }
 0x116   : > { %v4720_v54 = vpop.f32.mrf.mxu1  ;;  %4764 = vmatpush3.msra.mxu0 %v1235_v63 }
 0x117   : > { %4769 = vmatpush3.msra.mxu1 %v1305_v50  ;;  %4773 = vmatprep.subr.mxu0 %v6232_v48 }
 0x118   : > { %4778 = vmatprep.subr.mxu1 %v6232_v48 }
 0x11c   : > { %v5780_v56 = vpop.f32.mrf.mxu0 }
 0x11d   : > { %v5782_v58 = vpop.f32.mrf.mxu1 }
 0x11e   : > { %v4731_v61 = vpop.f32.mrf.mxu0 }
 0x11f   : > { %v4742_v49 = vpop.f32.mrf.mxu1 }
 0x1c4   : > { %v1521_v51 = vpop.f32.mrf.mxu0 }
 0x1c5   : > { %v1597_v2 = vpop.f32.mrf.mxu1  ;;  %v1753_v60 = vmul.f32 0.35355338, %v1521_v51 }
 0x1c6   : > { %v4747_v53 = vpop.f32.mrf.mxu0  ;;  %v1754_v52 = vmul.f32 0.35355338, %v1597_v2 }
 0x1c7   : > { %v4752_v55 = vpop.f32.mrf.mxu1  ;;  %v1757_v62 = vsel %vm1448_vm2, %v1753_v60, -inf }
 0x1c8   : > { %1758 = vmax.xlane.f32.xlu0 %v1757_v62  ;;  %v1760_v63 = vsel %vm1448_vm2, %v1754_v52, -inf }
 0x1cc   : > { %1761 = vmax.xlane.f32.xlu0 %v1760_v63 }
 0x1ce   : > { %v1673_v54 = vpop.f32.mrf.mxu0 }
 0x1cf   : > { %v1749_v50 = vpop.f32.mrf.mxu1  ;;  %v1755_v57 = vmul.f32 0.35355338, %v1673_v54 }
 0x1d0   : > { %v4757_v59 = vpop.f32.mrf.mxu0  ;;  %v1756_v46 = vmul.f32 0.35355338, %v1749_v50 }
 0x1d1   : > { %v4762_v47 = vpop.f32.mrf.mxu1  ;;  %v1763_v49 = vsel %vm1448_vm2, %v1755_v57, -inf }
 0x1d2   : > { %1764 = vmax.xlane.f32.xlu1 %v1763_v49  ;;  %v1766_v51 = vsel %vm1448_vm2, %v1756_v46, -inf }
 0x1d6   : > { %1767 = vmax.xlane.f32.xlu1 %v1766_v51 }
 0x251   : > { %v1759_v61 = vpop.xlane.xlu0 %1758 }
 0x252   : > { %v1769_v2 = vsub.f32 %v1753_v60, %v1759_v61 }
 0x254   : > { %v1773_v55 = vmul.f32 1.442695, %v1769_v2 }
 0x255   : > { %v1762_v53 = vpop.xlane.xlu0 %1761 }
 0x256   : > { %5041 = vpow2.f32 %v1773_v55  ;;  %v1770_v62 = vsub.f32 %v1754_v52, %v1762_v53  ;;  %v5795_v55 = vld [vmem:[%s6179_s7 + $0x2] ss:$0 sm:$0xff] }
 0x258   : > { %v1775_v45 = vmul.f32 1.442695, %v1770_v62 }
 0x25a   : > { %5043 = vpow2.f32 %v1775_v45 }
 0x25b   : > { %v1765_v63 = vpop.xlane.xlu1 %1764 }
 0x25c   : > { %v1771_v44 = vsub.f32 %v1755_v57, %v1765_v63 }
 0x25e   : > { %v1777_v54 = vmul.f32 1.442695, %v1771_v44 }
 0x25f   : > { %v1768_v59 = vpop.xlane.xlu1 %1767 }
 0x260   : > { %5045 = vpow2.f32 %v1777_v54  ;;  %v1772_v47 = vsub.f32 %v1756_v46, %v1768_v59  ;;  %v1375_v54 = vadd.f32 %v5795_v55, %v5780_v56  ;;  %v5802_v59 = vld [vmem:[%s6179_s7 + $0x3] ss:$0 sm:$0xff] }
 0x262   : > { %v1779_v50 = vmul.f32 1.442695, %v1772_v47 }
 0x263   : > { %v5042_v43 = vpop.eup %5041 }
 0x264   : > { %5047 = vpow2.f32 %v1779_v50  ;;  %v1781_v49 = vsel %vm1448_vm2, %v5042_v43, 0.0 }
 0x265   : > { %1782 = vadd.xlane.f32.xlu0 %v1781_v49 }
 0x267   : > { %v5044_v51 = vpop.eup %5043 }
 0x268   : > { %v1784_v60 = vsel %vm1448_vm2, %v5044_v51, 0.0 }
 0x269   : > { %1785 = vadd.xlane.f32.xlu1 %v1784_v60 }
 0x26d   : > { %v5046_v61 = vpop.eup %5045 }
 0x26e   : > { %v1787_v52 = vsel %vm1448_vm2, %v5046_v61, 0.0 }
 0x26f   : > { %1788 = vadd.xlane.f32.xlu0 %v1787_v52  ;;  %v5837_v52 = vld [vmem:[%s6180_s8 + $0x10] sm:$0xff] }
 0x271   : > { %v5048_v45 = vpop.eup %5047 }
 0x272   : > { %v1790_v44 = vsel %vm1448_vm2, %v5048_v45, 0.0 }
 0x273   : > { %1791 = vadd.xlane.f32.xlu1 %v1790_v44 }
 0x2ee   : > { %v1783_v57 = vpop.xlane.xlu0 %1782 }
 0x2ef   : > { %5049 = vrcp.f32 %v1783_v57  ;;  %v5846_v57 = vld [vmem:[%s6180_s8 + $0x18] sm:$0xff] }
 0x2f2   : > { %v1786_v46 = vpop.xlane.xlu1 %1785 }
 0x2f3   : > { %5051 = vrcp.f32 %v1786_v46 }
 0x2f8   : > { %v1789_v2 = vpop.xlane.xlu0 %1788 }
 0x2f9   : > { %5053 = vrcp.f32 %v1789_v2 }
 0x2fc   : > { %v5050_v53 = vpop.eup %5049  ;;  %v1792_v62 = vpop.xlane.xlu1 %1791 }
 0x2fd   : > { %5055 = vrcp.f32 %v1792_v62  ;;  %v1797_v63 = vmul.f32 %v5050_v53, %v5042_v43  ;;  %v1445_v43 = vadd.f32 %v5802_v59, %v5782_v58  ;;  %v5823_v58 = vld [vmem:[%s6180_s8] sm:$0xff] }
 0x2ff   : > { %4766 = vmatmul.mubr.msk.f32.vlgmr.msra.gmra.mxu0 %vm1448_vm2, %v1797_v63 }
 0x300   : > { %v5052_v47 = vpop.eup %5051  ;;  %4774 = vmatpush3.msra.mxu0 %v1375_v54  ;;  %4775 = vmatprep.mubr.msk.f32.mxu0 %vm5168_vm1, %v6232_v48 }
 0x301   : > { %v1798_v50 = vmul.f32 %v5052_v47, %v5044_v51  ;;  %4783 = vmatprep.subr.mxu0 %v6232_v48 }
 0x303   : > { %4771 = vmatmul.mubr.msk.f32.vlgmr.msra.gmra.mxu1 %vm1448_vm2, %v1798_v50 }
 0x304   : > { %4779 = vmatpush3.msra.mxu1 %v1445_v43  ;;  %4780 = vmatprep.mubr.msk.f32.mxu1 %vm5168_vm1, %v6232_v48 }
 0x305   : > { %4788 = vmatprep.subr.mxu1 %v6232_v48 }
 0x306   : > { %v5054_v56 = vpop.eup %5053 }
 0x307   : > { %v1799_v49 = vmul.f32 %v5054_v56, %v5046_v61  ;;  %v5830_v61 = vld [vmem:[%s6180_s8 + $0x8] sm:$0xff] }
 0x309   : > { %4776 = vmatmul.mubr.msk.f32.vlgmr.msra.gmra.mxu0 %vm1448_vm2, %v1799_v49 }
 0x30a   : > { %v5056_v60 = vpop.eup %5055  ;;  %4785 = vmatprep.mubr.msk.f32.mxu0 %vm5168_vm1, %v6232_v48  ;;  %4784 = vmatpush3.msra.mxu0 %v5823_v58 }
 0x30b   : > { %v1800_v51 = vmul.f32 %v5056_v60, %v5048_v45  ;;  %4793 = vmatprep.subr.mxu0 %v6232_v48 }
 0x30d   : > { %4781 = vmatmul.mubr.msk.f32.vlgmr.msra.gmra.mxu1 %vm1448_vm2, %v1800_v51 }
 0x30e   : > { %4790 = vmatprep.mubr.msk.f32.mxu1 %vm5168_vm1, %v6232_v48  ;;  %4789 = vmatpush3.msra.mxu1 %v5830_v61 }
 0x30f   : > { %4798 = vmatprep.subr.mxu1 %v6232_v48 }
 0x3bf   : > { %v1870_v45 = vpop.f32.mrf.mxu0 }
 0x3c0   : > { %4786 = vmatmul.mubr.msk.f32.vlgmr.msra.gmra.mxu0 %vm1448_vm2, %v1870_v45 }
 0x3c1   : > { %v4767_v44 = vpop.f32.mrf.mxu0  ;;  %4794 = vmatpush3.msra.mxu0 %v5837_v52  ;;  %4795 = vmatprep.mubr.msk.f32.mxu0 %vm5168_vm1, %v6232_v48 }
 0x3c2   : > { %4803 = vmatprep.subr.mxu0 %v6232_v48 }
 0x3c3   : > { %v1943_v46 = vpop.f32.mrf.mxu1 }
 0x3c4   : > { %4791 = vmatmul.mubr.msk.f32.vlgmr.msra.gmra.mxu1 %vm1448_vm2, %v1943_v46 }
 0x3c5   : > { %v4772_v2 = vpop.f32.mrf.mxu1  ;;  %4799 = vmatpush3.msra.mxu1 %v5846_v57  ;;  %4800 = vmatprep.mubr.msk.f32.mxu1 %vm5168_vm1, %v6232_v48 }
 0x3c6   : > { %4814 = vmatprep.subr.mxu1 %v6232_v48 }
 0x3c9   : > { %v2016_v53 = vpop.f32.mrf.mxu0 }
 0x3ca   : > { %4796 = vmatmul.mubr.msk.f32.vlgmr.msra.gmra.mxu0 %vm1448_vm2, %v2016_v53 }
 0x3cb   : > { %v4777_v62 = vpop.f32.mrf.mxu0  ;;  %4804 = vmatpush3.msra.mxu0 %v5292_v0  ;;  %4811 = vmatprep.mubr.msk.f32.mxu0 %vm5168_vm1, %v6232_v48 }
 0x3cc   : > { %4805 = vmatprep.subr.mxu0 %v6232_v48 }
 0x3cd   : > { %v2089_v63 = vpop.f32.mrf.mxu1  ;;  %4806 = vmatpush3.msra.mxu0 %v5305_v3 }
 0x3ce   : > { %4801 = vmatmul.mubr.msk.f32.vlgmr.msra.gmra.mxu1 %vm1448_vm2, %v2089_v63  ;;  %4807 = vmatprep.subr.mxu0 %v6232_v48 }
 0x3cf   : > { %v4782_v54 = vpop.f32.mrf.mxu1  ;;  %4815 = vmatpush3.msra.mxu1 %v5297_v1  ;;  %4808 = vmatpush3.msra.mxu0 %v5322_v5 }
 0x3d0   : > { %4816 = vmatprep.subr.mxu1 %v6232_v48  ;;  %4809 = vmatprep.subr.mxu0 %v6232_v48 }
 0x3d1   : > { %4817 = vmatpush3.msra.mxu1 %v5310_v4  ;;  %4810 = vmatpush3.msra.mxu0 %v5337_v7 }
 0x3d2   : > { %4818 = vmatprep.subr.mxu1 %v6232_v48  ;;  %4812 = vmatmul.mubr.msk.f32.vlgmr.msra.gmra.mxu0 %vm553_vm0, %v5486_v26 }
 0x3d3   : > { %4819 = vmatpush3.msra.mxu1 %v5327_v6  ;;  %4825 = vmatprep.subr.mxu0 %v6232_v48 }
 0x3d4   : > { %4820 = vmatprep.subr.mxu1 %v6232_v48  ;;  %4822 = vmatprep.mubr.msk.f32.mxu1 %vm5168_vm1, %v6232_v48 }
 0x3d5   : > { %4821 = vmatpush3.msra.mxu1 %v5349_v8  ;;  %4826 = vmatpush3.msra.mxu0 %v5364_v10 }
 0x3d6   : > { %4836 = vmatprep.subr.mxu1 %v6232_v48  ;;  %4823 = vmatmul.mubr.msk.f32.vlgmr.msra.gmra.mxu1 %vm553_vm0, %v5486_v26 }
 0x3d7   : > { %4827 = vmatprep.subr.mxu0 %v6232_v48  ;;  %4837 = vmatpush3.msra.mxu1 %v5369_v11 }
 0x3d8   : > { %4828 = vmatpush3.msra.mxu0 %v5380_v12  ;;  %4838 = vmatprep.subr.mxu1 %v6232_v48 }
 0x3d9   : > { %4829 = vmatprep.subr.mxu0 %v6232_v48  ;;  %4839 = vmatpush3.msra.mxu1 %v5385_v13 }
 0x3da   : > { %4830 = vmatpush3.msra.mxu0 %v5394_v14  ;;  %4840 = vmatprep.subr.mxu1 %v6232_v48  ;;  %v5930_v14 = vld [vmem:[%s6181_s9] ss:$0 sm:$0xff] }
 0x3db   : > { %4831 = vmatprep.subr.mxu0 %v6232_v48  ;;  %4841 = vmatpush3.msra.mxu1 %v5399_v15 }
 0x3dc   : > { %4832 = vmatpush3.msra.mxu0 %v5408_v16  ;;  %4833 = vmatprep.mubr.msk.f32.mxu0 %vm5168_vm1, %v6232_v48 }
 0x3dd   : > { %4842 = vmatprep.subr.mxu1 %v6232_v48  ;;  %4834 = vmatmul.mubr.msk.f32.vlgmr.msra.gmra.mxu0 %vm553_vm0, %v5486_v26 }
 0x3de   : > { %4843 = vmatpush3.msra.mxu1 %v5415_v17  ;;  %4844 = vmatprep.mubr.msk.f32.mxu1 %vm5168_vm1, %v6232_v48 }
 0x3df   : > { %4847 = vmatprep.subr.mxu0 %v6232_v48  ;;  %4858 = vmatprep.subr.mxu1 %v6232_v48 }
 0x3e0   : > { %4845 = vmatmul.mubr.msk.f32.vlgmr.msra.gmra.mxu1 %vm553_vm0, %v5486_v26  ;;  %4848 = vmatpush3.msra.mxu0 %v5428_v18 }
 0x3e1   : > { %4859 = vmatpush3.msra.mxu1 %v5433_v19  ;;  %4849 = vmatprep.subr.mxu0 %v6232_v48 }
 0x3e2   : > { %4860 = vmatprep.subr.mxu1 %v6232_v48  ;;  %4850 = vmatpush3.msra.mxu0 %v5444_v20 }
 0x3e3   : > { %4861 = vmatpush3.msra.mxu1 %v5449_v21  ;;  %4851 = vmatprep.subr.mxu0 %v6232_v48 }
 0x3e4   : > { %4862 = vmatprep.subr.mxu1 %v6232_v48  ;;  %4852 = vmatpush3.msra.mxu0 %v5458_v22 }
 0x3e5   : > { %4863 = vmatpush3.msra.mxu1 %v5463_v23  ;;  %4853 = vmatprep.subr.mxu0 %v6232_v48 }
 0x3e6   : > { %4864 = vmatprep.subr.mxu1 %v6232_v48  ;;  %4854 = vmatpush3.msra.mxu0 %v5477_v24 }
 0x3e7   : > { %4865 = vmatpush3.msra.mxu1 %v5484_v25  ;;  %4855 = vmatprep.mubr.msk.f32.mxu0 %vm5168_vm1, %v6232_v48 }
 0x3e8   : > { %4866 = vmatprep.mubr.msk.f32.mxu1 %vm5168_vm1, %v6232_v48  ;;  %4869 = vmatprep.subr.mxu0 %v6232_v48 }
 0x3e9   : > { %4880 = vmatprep.subr.mxu1 %v6232_v48 }
 0x480   : > { %v2162_v0 = vpop.f32.mrf.mxu0 }
 0x481   : > { %v2385_v7 = vsel %vm553_vm0, %v2162_v0, 0.0 }
 0x482   : > { %v4787_v1 = vpop.f32.mrf.mxu0 }
 0x484   : > { %v2235_v3 = vpop.f32.mrf.mxu1 }
 0x485   : > { %v2386_v5 = vsel %vm553_vm0, %v2235_v3, 0.0 }
 0x486   : > { %v4792_v4 = vpop.f32.mrf.mxu1  ;;  %v2387_v10 = vadd.f32 %v2386_v5, %v2385_v7 }
 0x487   : > { %v4409_v4 = vld [vmem:[%s6182_s10] ss:$0 sm:$0xff] }
 0x48a   : > { %v2308_v6 = vpop.f32.mrf.mxu0 }
 0x48b   : > { %v2388_v8 = vsel %vm553_vm0, %v2308_v6, 0.0  ;;  %v4410_v6 = vld [vmem:[%s6183_s11] ss:$0 sm:$0xff] }
 0x48c   : > { %v4797_v11 = vpop.f32.mrf.mxu0  ;;  %v2389_v12 = vadd.f32 %v2388_v8, %v2387_v10  ;;  %v6249_v10 = vld [vmem:[#allocation19_spill] sm:$0xff] }
 0x48e   : > { %v2381_v13 = vpop.f32.mrf.mxu1 }
 0x48f   : > { %v2390_v15 = vsel %vm553_vm0, %v2381_v13, 0.0 }
 0x490   : > { %v2391_v16 = vadd.f32 %v2390_v15, %v2389_v12  ;;  %v4802_v17 = vpop.f32.mrf.mxu1  ;;  %v6250_v12 = vld [vmem:[#allocation20_spill] sm:$0xff] }
 0x491   : > { %v6251_v17 = vld [vmem:[#allocation21_spill] sm:$0xff] }
 0x492   : > { %v2398_v18 = vadd.f32 %v5930_v14, %v2391_v16  ;;  %v5945_v51 = vpop.f32.mrf.mxu0 }
 0x493   : > { %v2497_v11 = vadd.f32 %v6249_v10, %v5945_v51 }
 0x494   : > { %v4217_v19 = vsel %vm553_vm0, %v2398_v18, 0.0  ;;  %v2399_v20 = vadd.f32 %v2398_v18, %v5351_v9  ;;  %v4813_v44 = vpop.f32.mrf.mxu0 }
 0x495   : > { %v4218_v21 = vrot.slane %v4217_v19, 4 }
 0x496   : > { %v2402_v22 = vsel %vm553_vm0, %v2399_v20, 0.0  ;;  %v5947_v45 = vpop.f32.mrf.mxu1 }
 0x497   : > { %v4219_v23 = vadd.f32 %v4218_v21, %v4217_v19  ;;  %2403 = vadd.xlane.f32.xlu0 %v2402_v22  ;;  %v2567_v13 = vadd.f32 %v6250_v12, %v5947_v45  ;;  %v6252_v19 = vld [vmem:[#allocation22_spill] sm:$0xff] }
 0x498   : > { %v4824_v46 = vpop.f32.mrf.mxu1 }
 0x499   : > { %v4220_v24 = vrot.slane %v4219_v23, 2 }
 0x49b   : > { %v4221_v25 = vadd.f32 %v4220_v24, %v4219_v23  ;;  %v6253_v23 = vld [vmem:[#allocation23_spill] sm:$0xff] }
 0x49d   : > { %v4222_v26 = vrot.slane %v4221_v25, 1  ;;  %v5949_v2 = vpop.f32.mrf.mxu0 }
 0x49e   : > { %v2637_v24 = vadd.f32 %v6253_v23, %v5949_v2 }
 0x49f   : > { %v4223_v47 = vadd.f32 %v4222_v26, %v4221_v25  ;;  %v4835_v62 = vpop.f32.mrf.mxu0  ;;  %v6254_v25 = vld [vmem:[#allocation24_spill] sm:$0xff] }
 0x4a0   : > { %v5951_v53 = vpop.f32.mrf.mxu1 }
 0x4a1   : > { %v4225_v50 = vmul.f32 0.125, %v4223_v47  ;;  %v2707_v26 = vadd.f32 %v6254_v25, %v5951_v53 }
 0x4a2   : > { %v4846_v63 = vpop.f32.mrf.mxu1 }
 0x4a3   : > { %4227 = vst.msk [vmem:[%s447_s17] sm:$0x1] %vm4226_vm3, %v4225_v50 }
 0x520   : > { %v2404_v9 = vpop.xlane.xlu0 %2403 }
 0x521   : > { %v2406_v43 = vmul.f32 0.03125, %v2404_v9  ;;  %v6255_v9 = vld [vmem:[#allocation25_spill] sm:$0xff] }
 0x523   : > { %v2407_v56 = vsub.f32 %v2399_v20, %v2406_v43 }
 0x525   : > { %v2408_v49 = vmul.f32 %v2407_v56, %v2407_v56 }
 0x527   : > { %v2409_v60 = vsel %vm553_vm0, %v2408_v49, 0.0 }
 0x528   : > { %2410 = vadd.xlane.f32.xlu1 %v2409_v60 }
 0x5b1   : > { %v2411_v54 = vpop.xlane.xlu1 %2410 }
 0x5b2   : > { %v2412_v0 = vmul.f32 0.03125, %v2411_v54 }
 0x5b4   : > { %v2413_v1 = vadd.f32 1e-05, %v2412_v0 }
 0x5b6   : > { %5057 = vrsqrt.f32 %v2413_v1 }
 0x5c3   : > { %v5058_v3 = vpop.eup %5057 }
 0x5c4   : > { %v2415_v5 = vmul.f32 %v5058_v3, %v2407_v56  ;;  %v6256_v56 = vld [vmem:[#allocation26_spill] sm:$0xff] }
 0x5c6   : > { %v2422_v7 = vmul.f32 %v4409_v4, %v2415_v5 }
 0x5c8   : > { %v2429_v8 = vadd.f32 %v4410_v6, %v2422_v7 }
 0x5ca   : > { %4856 = vmatmul.mubr.msk.f32.vlgmr.msra.gmra.mxu0 %vm553_vm0, %v2429_v8  ;;  %4867 = vmatmul.mubr.msk.f32.vlgmr.msra.gmra.mxu1 %vm553_vm0, %v2429_v8 }
 0x5cb   : > { %4870 = vmatpush3.msra.mxu0 %v5499_v27  ;;  %4881 = vmatpush3.msra.mxu1 %v5504_v28  ;;  %v6239_v27 = vld [vmem:[#allocation9_spill] sm:$0xff]  ;;  %v6240_v28 = vld [vmem:[#allocation10_spill] sm:$0xff] }
 0x5cc   : > { %4871 = vmatprep.subr.mxu0 %v6232_v48  ;;  %4882 = vmatprep.subr.mxu1 %v6232_v48 }
 0x5cd   : > { %4872 = vmatpush3.msra.mxu0 %v5515_v29  ;;  %4883 = vmatpush3.msra.mxu1 %v5520_v30  ;;  %v6241_v29 = vld [vmem:[#allocation11_spill] sm:$0xff]  ;;  %v6242_v30 = vld [vmem:[#allocation12_spill] sm:$0xff] }
 0x5ce   : > { %4873 = vmatprep.subr.mxu0 %v6232_v48  ;;  %4884 = vmatprep.subr.mxu1 %v6232_v48 }
 0x5cf   : > { %4874 = vmatpush3.msra.mxu0 %v5529_v31  ;;  %4885 = vmatpush3.msra.mxu1 %v5534_v32  ;;  %v6243_v31 = vld [vmem:[#allocation13_spill] sm:$0xff]  ;;  %v6244_v32 = vld [vmem:[#allocation14_spill] sm:$0xff] }
 0x5d0   : > { %4875 = vmatprep.subr.mxu0 %v6232_v48  ;;  %4886 = vmatprep.subr.mxu1 %v6232_v48 }
 0x5d1   : > { %4876 = vmatpush3.msra.mxu0 %v5543_v33  ;;  %4877 = vmatprep.mubr.msk.f32.mxu0 %vm5168_vm1, %v6232_v48  ;;  %v6245_v33 = vld [vmem:[#allocation15_spill] sm:$0xff] }
 0x5d2   : > { %4887 = vmatpush3.msra.mxu1 %v5550_v34  ;;  %4888 = vmatprep.mubr.msk.f32.mxu1 %vm5168_vm1, %v6232_v48  ;;  %v6246_v34 = vld [vmem:[#allocation16_spill] sm:$0xff] }
 0x5d3   : > { %4878 = vmatmul.mubr.msk.f32.vlgmr.msra.gmra.mxu0 %vm553_vm0, %v2429_v8  ;;  %4889 = vmatmul.mubr.msk.f32.vlgmr.msra.gmra.mxu1 %vm553_vm0, %v2429_v8 }
 0x5d4   : > { %4891 = vmatprep.subr.mxu0 %v6232_v48  ;;  %4902 = vmatprep.subr.mxu1 %v6232_v48 }
 0x5d5   : > { %4892 = vmatpush3.msra.mxu0 %v5573_v35  ;;  %4903 = vmatpush3.msra.mxu1 %v5578_v36 }
 0x5d6   : > { %4893 = vmatprep.subr.mxu0 %v6232_v48  ;;  %4904 = vmatprep.subr.mxu1 %v6232_v48 }
 0x5d7   : > { %4894 = vmatpush3.msra.mxu0 %v5585_v37  ;;  %4905 = vmatpush3.msra.mxu1 %v5590_v38  ;;  %v6247_v37 = vld [vmem:[#allocation17_spill] sm:$0xff] }
 0x5d8   : > { %4895 = vmatprep.subr.mxu0 %v6232_v48  ;;  %4906 = vmatprep.subr.mxu1 %v6232_v48 }
 0x5d9   : > { %4896 = vmatpush3.msra.mxu0 %v5597_v39  ;;  %4907 = vmatpush3.msra.mxu1 %v5602_v40  ;;  %v6248_v39 = vld [vmem:[#allocation18_spill] sm:$0xff] }
 0x5da   : > { %4897 = vmatprep.subr.mxu0 %v6232_v48  ;;  %4908 = vmatprep.subr.mxu1 %v6232_v48 }
 0x5db   : > { %4898 = vmatpush3.msra.mxu0 %v5615_v41  ;;  %4899 = vmatprep.mubr.msk.f32.mxu0 %vm5168_vm1, %v6232_v48 }
 0x5dc   : > { %4909 = vmatpush3.msra.mxu1 %v5620_v42  ;;  %4910 = vmatprep.mubr.msk.f32.mxu1 %vm5168_vm1, %v6232_v48 }
 0x5dd   : > { %4900 = vmatmul.mubr.msk.f32.vlgmr.msra.gmra.mxu0 %vm553_vm0, %v2429_v8  ;;  %4911 = vmatmul.mubr.msk.f32.vlgmr.msra.gmra.mxu1 %vm553_vm0, %v2429_v8 }
 0x5de   : > { %4913 = vmatprep.subr.mxu0 %v6232_v48  ;;  %4924 = vmatprep.subr.mxu1 %v6232_v48 }
 0x5df   : > { %4914 = vmatpush3.msra.mxu0 %v6239_v27  ;;  %4925 = vmatpush3.msra.mxu1 %v6240_v28 }
 0x5e0   : > { %4915 = vmatprep.subr.mxu0 %v6232_v48  ;;  %4926 = vmatprep.subr.mxu1 %v6232_v48 }
 0x5e1   : > { %4916 = vmatpush3.msra.mxu0 %v6241_v29  ;;  %4927 = vmatpush3.msra.mxu1 %v6242_v30 }
 0x5e2   : > { %4917 = vmatprep.subr.mxu0 %v6232_v48  ;;  %4928 = vmatprep.subr.mxu1 %v6232_v48 }
 0x5e3   : > { %4918 = vmatpush3.msra.mxu0 %v6243_v31  ;;  %4929 = vmatpush3.msra.mxu1 %v6244_v32 }
 0x5e4   : > { %4919 = vmatprep.subr.mxu0 %v6232_v48  ;;  %4930 = vmatprep.subr.mxu1 %v6232_v48 }
 0x5e5   : > { %4920 = vmatpush3.msra.mxu0 %v6245_v33  ;;  %4921 = vmatprep.mubr.msk.f32.mxu0 %vm5168_vm1, %v6232_v48 }
 0x5e6   : > { %4931 = vmatpush3.msra.mxu1 %v6246_v34  ;;  %4932 = vmatprep.mubr.msk.f32.mxu1 %vm5168_vm1, %v6232_v48 }
 0x5e7   : > { %4922 = vmatmul.mubr.msk.f32.vlgmr.msra.gmra.mxu0 %vm553_vm0, %v2429_v8  ;;  %4933 = vmatmul.mubr.msk.f32.vlgmr.msra.gmra.mxu1 %vm553_vm0, %v2429_v8 }
 0x5e8   : > { %4935 = vmatprep.subr.mxu0 %v6232_v48  ;;  %4940 = vmatprep.subr.mxu1 %v6232_v48 }
 0x5e9   : > { %4937 = vmatprep.mubr.msk.f32.mxu0 %vm5168_vm1, %v6232_v48  ;;  %4942 = vmatprep.mubr.msk.f32.mxu1 %vm5168_vm1, %v6232_v48 }
 0x68a   : > { %v2779_v35 = vpop.f32.mrf.mxu0  ;;  %v2849_v36 = vpop.f32.mrf.mxu1 }
 0x68b   : > { %v2780_v38 = vadd.f32 %v6247_v37, %v2779_v35  ;;  %v2850_v40 = vadd.f32 %v6248_v39, %v2849_v36 }
 0x68c   : > { %v4857_v41 = vpop.f32.mrf.mxu0  ;;  %v4868_v42 = vpop.f32.mrf.mxu1 }
 0x68d   : > { %4936 = vmatpush3.xpose.msk.msra.mxu0 %vm1448_vm2, %v2780_v38  ;;  %4941 = vmatpush3.xpose.msk.msra.mxu1 %vm1448_vm2, %v2850_v40 }
 0x68e   : > { %4945 = vmatprep.subr.mxu0 %v6232_v48  ;;  %4950 = vmatprep.subr.mxu1 %v6232_v48 }
 0x690   : > { %4938 = vmatmul.mubr.msk.f32.vlgmr.msra.gmra.mxu0 %vm1448_vm2, %v2497_v11  ;;  %4943 = vmatmul.mubr.msk.f32.vlgmr.msra.gmra.mxu1 %vm1448_vm2, %v2567_v13 }
 0x691   : > { %4947 = vmatprep.mubr.msk.f32.mxu0 %vm5168_vm1, %v6232_v48  ;;  %4952 = vmatprep.mubr.msk.f32.mxu1 %vm5168_vm1, %v6232_v48 }
 0x693   : > { %v2919_v15 = vpop.f32.mrf.mxu0  ;;  %v2989_v16 = vpop.f32.mrf.mxu1 }
 0x694   : > { %v2920_v18 = vadd.f32 %v6251_v17, %v2919_v15  ;;  %v2990_v20 = vadd.f32 %v6252_v19, %v2989_v16 }
 0x695   : > { %v4879_v21 = vpop.f32.mrf.mxu0  ;;  %v4890_v22 = vpop.f32.mrf.mxu1 }
 0x696   : > { %4946 = vmatpush3.xpose.msk.msra.mxu0 %vm1448_vm2, %v2920_v18  ;;  %4951 = vmatpush3.xpose.msk.msra.mxu1 %vm1448_vm2, %v2990_v20 }
 0x697   : > { %4955 = vmatprep.subr.mxu0 %v6232_v48  ;;  %4960 = vmatprep.subr.mxu1 %v6232_v48 }
 0x699   : > { %4948 = vmatmul.mubr.msk.f32.vlgmr.msra.gmra.mxu0 %vm1448_vm2, %v2637_v24  ;;  %4953 = vmatmul.mubr.msk.f32.vlgmr.msra.gmra.mxu1 %vm1448_vm2, %v2707_v26 }
 0x69a   : > { %4957 = vmatprep.mubr.msk.f32.mxu0 %vm5168_vm1, %v6232_v48  ;;  %4962 = vmatprep.mubr.msk.f32.mxu1 %vm5168_vm1, %v6232_v48 }
 0x69d   : > { %v3059_v47 = vpop.f32.mrf.mxu0  ;;  %v3129_v50 = vpop.f32.mrf.mxu1 }
 0x69e   : > { %v3060_v43 = vadd.f32 %v6255_v9, %v3059_v47  ;;  %v3130_v49 = vadd.f32 %v6256_v56, %v3129_v50 }
 0x69f   : > { %v4901_v60 = vpop.f32.mrf.mxu0  ;;  %v4912_v51 = vpop.f32.mrf.mxu1 }
 0x6a0   : > { %4956 = vmatpush3.msra.mxu0 %v3060_v43  ;;  %4961 = vmatpush3.msra.mxu1 %v3130_v49 }
 0x6a1   : > { %4965 = vmatprep.subr.mxu0 %v6232_v48  ;;  %4970 = vmatprep.subr.mxu1 %v6232_v48 }
 0x6a7   : > { %v6067_v45 = vpop.f32.mrf.mxu0  ;;  %v3269_v44 = vpop.f32.mrf.mxu1 }
 0x6a8   : > { %v3270_v26 = vadd.f32 %v5802_v59, %v3269_v44  ;;  %v3200_v50 = vadd.f32 %v5795_v55, %v6067_v45 }
 0x6a9   : > { %v4923_v46 = vpop.f32.mrf.mxu0  ;;  %v4934_v2 = vpop.f32.mrf.mxu1 }
 0x750   : > { %v3345_v53 = vpop.f32.mrf.mxu0  ;;  %v3421_v62 = vpop.f32.mrf.mxu1 }
 0x751   : > { %v3577_v63 = vmul.f32 0.35355338, %v3345_v53  ;;  %v3578_v54 = vmul.f32 0.35355338, %v3421_v62 }
 0x752   : > { %v4939_v0 = vpop.f32.mrf.mxu0  ;;  %v4944_v1 = vpop.f32.mrf.mxu1 }
 0x753   : > { %v3584_v3 = vsel %vm1448_vm2, %v3578_v54, -inf  ;;  %v3581_v4 = vsel %vm1448_vm2, %v3577_v63, -inf }
 0x754   : > { %3585 = vmax.xlane.f32.xlu1 %v3584_v3  ;;  %3582 = vmax.xlane.f32.xlu0 %v3581_v4 }
 0x759   : > { %v3497_v5 = vpop.f32.mrf.mxu0  ;;  %v3573_v6 = vpop.f32.mrf.mxu1 }
 0x75a   : > { %v3579_v7 = vmul.f32 0.35355338, %v3497_v5  ;;  %v3580_v8 = vmul.f32 0.35355338, %v3573_v6 }
 0x75b   : > { %v4949_v27 = vpop.f32.mrf.mxu0  ;;  %v4954_v28 = vpop.f32.mrf.mxu1 }
 0x75c   : > { %v3590_v29 = vsel %vm1448_vm2, %v3580_v8, -inf  ;;  %v3587_v30 = vsel %vm1448_vm2, %v3579_v7, -inf }
 0x75d   : > { %3591 = vmax.xlane.f32.xlu1 %v3590_v29  ;;  %3588 = vmax.xlane.f32.xlu0 %v3587_v30 }
 0x7dd   : > { %v3586_v31 = vpop.xlane.xlu1 %3585  ;;  %v3583_v32 = vpop.xlane.xlu0 %3582 }
 0x7de   : > { %v3594_v33 = vsub.f32 %v3578_v54, %v3586_v31  ;;  %v3593_v34 = vsub.f32 %v3577_v63, %v3583_v32 }
 0x7e0   : > { %v3599_v35 = vmul.f32 1.442695, %v3594_v33  ;;  %v3597_v36 = vmul.f32 1.442695, %v3593_v34 }
 0x7e2   : > { %5059 = vpow2.f32 %v3599_v35 }
 0x7e3   : > { %5061 = vpow2.f32 %v3597_v36 }
 0x7e6   : > { %v3592_v37 = vpop.xlane.xlu1 %3591  ;;  %v3589_v38 = vpop.xlane.xlu0 %3588 }
 0x7e7   : > { %v3596_v39 = vsub.f32 %v3580_v8, %v3592_v37  ;;  %v3595_v40 = vsub.f32 %v3579_v7, %v3589_v38 }
 0x7e9   : > { %v3603_v41 = vmul.f32 1.442695, %v3596_v39  ;;  %v3601_v42 = vmul.f32 1.442695, %v3595_v40 }
 0x7eb   : > { %5063 = vpow2.f32 %v3603_v41 }
 0x7ec   : > { %5065 = vpow2.f32 %v3601_v42 }
 0x7ef   : > { %v5060_v10 = vpop.eup %5059 }
 0x7f0   : > { %v5062_v11 = vpop.eup %5061  ;;  %v3608_v12 = vsel %vm1448_vm2, %v5060_v10, 0.0 }
 0x7f1   : > { %3609 = vadd.xlane.f32.xlu1 %v3608_v12  ;;  %v3605_v13 = vsel %vm1448_vm2, %v5062_v11, 0.0 }
 0x7f2   : > { %3606 = vadd.xlane.f32.xlu0 %v3605_v13 }
 0x7f8   : > { %v5064_v15 = vpop.eup %5063 }
 0x7f9   : > { %v5066_v16 = vpop.eup %5065  ;;  %v3614_v17 = vsel %vm1448_vm2, %v5064_v15, 0.0 }
 0x7fa   : > { %3615 = vadd.xlane.f32.xlu1 %v3614_v17  ;;  %v3611_v18 = vsel %vm1448_vm2, %v5066_v16, 0.0 }
 0x7fb   : > { %3612 = vadd.xlane.f32.xlu0 %v3611_v18 }
 0x87a   : > { %v3610_v19 = vpop.xlane.xlu1 %3609 }
 0x87b   : > { %5067 = vrcp.f32 %v3610_v19  ;;  %v3607_v20 = vpop.xlane.xlu0 %3606 }
 0x87c   : > { %5069 = vrcp.f32 %v3607_v20 }
 0x883   : > { %v3616_v21 = vpop.xlane.xlu1 %3615 }
 0x884   : > { %5071 = vrcp.f32 %v3616_v21  ;;  %v3613_v22 = vpop.xlane.xlu0 %3612 }
 0x885   : > { %5073 = vrcp.f32 %v3613_v22 }
 0x888   : > { %v5068_v23 = vpop.eup %5067 }
 0x889   : > { %v5070_v24 = vpop.eup %5069  ;;  %v3622_v25 = vmul.f32 %v5068_v23, %v5060_v10 }
 0x88a   : > { %v3621_v47 = vmul.f32 %v5070_v24, %v5062_v11 }
 0x88b   : > { %4963 = vmatmul.mubr.msk.f32.vlgmr.msra.gmra.mxu1 %vm1448_vm2, %v3622_v25 }
 0x88c   : > { %4958 = vmatmul.mubr.msk.f32.vlgmr.msra.gmra.mxu0 %vm1448_vm2, %v3621_v47  ;;  %4971 = vmatpush3.msra.mxu1 %v3270_v26 }
 0x88d   : > { %4966 = vmatpush3.msra.mxu0 %v3200_v50  ;;  %4967 = vmatprep.mubr.msk.f32.mxu0 %vm5168_vm1, %v6232_v48 }
 0x88e   : > { %4972 = vmatprep.mubr.msk.f32.mxu1 %vm5168_vm1, %v6232_v48  ;;  %4975 = vmatprep.subr.mxu0 %v6232_v48 }
 0x88f   : > { %4980 = vmatprep.subr.mxu1 %v6232_v48 }
 0x891   : > { %v5072_v59 = vpop.eup %5071 }
 0x892   : > { %v5074_v9 = vpop.eup %5073  ;;  %v3624_v43 = vmul.f32 %v5072_v59, %v5064_v15 }
 0x893   : > { %v3623_v55 = vmul.f32 %v5074_v9, %v5066_v16 }
 0x894   : > { %4973 = vmatmul.mubr.msk.f32.vlgmr.msra.gmra.mxu1 %vm1448_vm2, %v3624_v43 }
 0x895   : > { %4968 = vmatmul.mubr.msk.f32.vlgmr.msra.gmra.mxu0 %vm1448_vm2, %v3623_v55  ;;  %4981 = vmatpush3.msra.mxu1 %v5830_v61 }
 0x896   : > { %4976 = vmatpush3.msra.mxu0 %v5823_v58  ;;  %4977 = vmatprep.mubr.msk.f32.mxu0 %vm5168_vm1, %v6232_v48 }
 0x897   : > { %4982 = vmatprep.mubr.msk.f32.mxu1 %vm5168_vm1, %v6232_v48  ;;  %4985 = vmatprep.subr.mxu0 %v6232_v48 }
 0x898   : > { %4990 = vmatprep.subr.mxu1 %v6232_v48 }
 0x94b   : > { %v3767_v56 = vpop.f32.mrf.mxu1 }
 0x94c   : > { %v3694_v49 = vpop.f32.mrf.mxu0  ;;  %4983 = vmatmul.mubr.msk.f32.vlgmr.msra.gmra.mxu1 %vm1448_vm2, %v3767_v56 }
 0x94d   : > { %4978 = vmatmul.mubr.msk.f32.vlgmr.msra.gmra.mxu0 %vm1448_vm2, %v3694_v49  ;;  %v4964_v58 = vpop.f32.mrf.mxu1  ;;  %4991 = vmatpush3.msra.mxu1 %v5846_v57 }
 0x94e   : > { %v4959_v61 = vpop.f32.mrf.mxu0  ;;  %4986 = vmatpush3.msra.mxu0 %v5837_v52  ;;  %4987 = vmatprep.mubr.msk.f32.mxu0 %vm5168_vm1, %v6232_v48 }
 0x94f   : > { %4992 = vmatprep.mubr.msk.f32.mxu1 %vm5168_vm1, %v6232_v48 }
 0x954   : > { %v3913_v60 = vpop.f32.mrf.mxu1 }
 0x955   : > { %v3840_v51 = vpop.f32.mrf.mxu0  ;;  %4993 = vmatmul.mubr.msk.f32.vlgmr.msra.gmra.mxu1 %vm1448_vm2, %v3913_v60 }
 0x956   : > { %4988 = vmatmul.mubr.msk.f32.vlgmr.msra.gmra.mxu0 %vm1448_vm2, %v3840_v51  ;;  %v4974_v45 = vpop.f32.mrf.mxu1 }
 0x957   : > { %v4969_v44 = vpop.f32.mrf.mxu0 }
 0x958   : > { %5088 = shalt.err (!%p5085_p3)
}
 0x959   : > { %s5089_s23 = scalar_lea.hbm %s4252_s15, 16  ;;  %s5093_s20 = scalar_lea.hbm %s6184_s12, 32 }
 0x95a   : > { %p5090_p4 = scmp.ne.s32.totalorder %s4252_s15, %s5089_s23  ;;  %p5094_p9 = scmp.lt.s32.totalorder %s4252_s15, %s6184_s12 }
 0x95b   : > { %p5095_p10 = scmp.lt.s32.totalorder %s5093_s20, %s5089_s23 }
 0x95c   : > { %p5091_p7 = pnand %p5090_p4, %p5279_p5 }
 0x95d   : > { %p5096_p11 = por %p5095_p10, %p5094_p9 }
 0x95e   : > { %p5092_p8 = pneg %p5091_p7 }
 0x960   : > { %p5097_p12 = pnand %p5096_p11, %p5092_p8 }
 0x962   : > { %5100 = shalt.err (!%p5097_p12)
}
 0x963   : > { %4995 = dma.vmem_to_hbm [thread:$0]  (%p5279_p5), %s4255_s16, 16, %s4252_s15, %s4238_s21  }
 0x964   : > { %s453_s0 = scalar_lea.vmem [#allocation4], %s5938_s24  ;;  %s6257_s2 = sshll.u32 %s5262_s29, 4 }
 0x965   : > { %s4267_s1 = sshll.u32 %s453_s0, 4  ;;  %s4265_s20 = scalar_lea.hbm %s6185_s13, %s6257_s2  ;;  %s4268_s1 = int_to_ptr.vmem [resolvable:$true] %s4267_s1 }
 0x966   : > { %s4242_s15 = scalar_lea.sflag [#allocation5], %s5938_s24  ;;  %s5101_s16 = scalar_lea.vmem %s4268_s1, 16 }
 0x967   : > { %p5102_p13 = scmp.ne.s32.totalorder %s4268_s1, %s5101_s16  ;;  %s5170_s21 = smov [#allocation4]  }
 0x968   : > { %s5105_s22 = sshll.u32 %s5170_s21, 4  ;;  %s5106_s22 = int_to_ptr.vmem [resolvable:$false] %s5105_s22 }
 0x969   : > { %p5103_p0 = pnand %p5102_p13, %p5279_p5  ;;  %s5107_s23 = scalar_lea.vmem %s5106_s22, 32 }
 0x96a   : > { %p5108_p2 = scmp.lt.s32.totalorder %s4268_s1, %s5106_s22  ;;  %p5109_p3 = scmp.lt.s32.totalorder %s5107_s23, %s5101_s16 }
 0x96b   : > { %p5104_p1 = pneg %p5103_p0 }
 0x96c   : > { %p5110_p4 = por %p5109_p3, %p5108_p2 }
 0x96e   : > { %p5111_p7 = pnand %p5110_p4, %p5104_p1 }
 0xa0c   : > { %v4059_v48 = vpop.f32.mrf.mxu1 }
 0xa0d   : > { %v3986_v52 = vpop.f32.mrf.mxu0  ;;  %v4210_v53 = vsel %vm553_vm0, %v4059_v48, 0.0 }
 0xa0e   : > { %v4984_v57 = vpop.f32.mrf.mxu1  ;;  %v4209_v2 = vsel %vm553_vm0, %v3986_v52, 0.0 }
 0xa0f   : > { %v4979_v46 = vpop.f32.mrf.mxu0  ;;  %v4211_v63 = vadd.f32 %v4210_v53, %v4209_v2 }
 0xa15   : > { %v4205_v62 = vpop.f32.mrf.mxu1 }
 0xa16   : > { %v4132_v54 = vpop.f32.mrf.mxu0  ;;  %v4214_v5 = vsel %vm553_vm0, %v4205_v62, 0.0 }
 0xa17   : > { %v4212_v0 = vsel %vm553_vm0, %v4132_v54, 0.0  ;;  %v4994_v1 = vpop.f32.mrf.mxu1 }
 0xa18   : > { %v4213_v3 = vadd.f32 %v4212_v0, %v4211_v63  ;;  %v4989_v4 = vpop.f32.mrf.mxu0 }
 0xa1a   : > { %v4215_v6 = vadd.f32 %v4214_v5, %v4213_v3 }
 0xa1c   : > { %v4216_v7 = vadd.f32 %v5930_v14, %v4215_v6 }
 0xa1e   : > { %v4228_v8 = vsel %vm553_vm0, %v4216_v7, 0.0 }
 0xa1f   : > { %v4229_v27 = vrot.slane %v4228_v8, 4 }
 0xa21   : > { %v4230_v28 = vadd.f32 %v4229_v27, %v4228_v8 }
 0xa23   : > { %v4231_v29 = vrot.slane %v4230_v28, 2 }
 0xa25   : > { %v4232_v30 = vadd.f32 %v4231_v29, %v4230_v28 }
 0xa27   : > { %v4233_v31 = vrot.slane %v4232_v30, 1 }
 0xa29   : > { %v4234_v32 = vadd.f32 %v4233_v31, %v4232_v30 }
 0xa2b   : > { %v4235_v33 = vmul.f32 0.125, %v4234_v32 }
 0xa2d   : > { %4236 = vst.msk [vmem:[%s453_s0] sm:$0x1] %vm4226_vm3, %v4235_v33 }
 0xa2e   : > { %5114 = shalt.err (!%p5111_p7)
}
 0xa2f   : > { %s5115_s29 = scalar_lea.hbm %s4265_s20, 16  ;;  %s5119_s30 = scalar_lea.hbm %s6185_s13, 32 }
 0xa30   : > { %p5116_p8 = scmp.ne.s32.totalorder %s4265_s20, %s5115_s29  ;;  %p5120_p11 = scmp.lt.s32.totalorder %s4265_s20, %s6185_s13 }
 0xa31   : > { %p5121_p12 = scmp.lt.s32.totalorder %s5119_s30, %s5115_s29 }
 0xa32   : > { %p5117_p9 = pnand %p5116_p8, %p5279_p5 }
 0xa33   : > { %p5122_p13 = por %p5121_p12, %p5120_p11 }
 0xa34   : > { %p5118_p10 = pneg %p5117_p9 }
 0xa36   : > { %p5123_p0 = pnand %p5122_p13, %p5118_p10 }
 0xa38   : > { %5126 = shalt.err (!%p5123_p0)
}
 0xa39   : > { %4996 = dma.vmem_to_hbm [thread:$0]  (%p5279_p5), %s4268_s1, 16, %s4265_s20, %s4242_s15  }
 0xa3a PF: > { %p5006_p1 = scmp.ge.s32.totalorder %s5165_s28, 2  ;;  %s4279_s3 = sand.u32 1, %s5153_s25  }
 0xa3b   : > { %s4280_s4 = scalar_lea.sflag [#allocation3], %s4279_s3 }
 0xa3c   : > { %p5000_p2 = pnand %p5006_p1, %p5283_p6 }
 0xa3e   : > { %p5001_p3 = pneg %p5000_p2 }
 0xa40   : > { %5144 = dma.done.wait (%p5001_p3), %s4280_s4, 16  }
 0xa41   : > { %5146 = vsyncadd (%p5001_p3), %s4280_s4, 4294967280  ;;  %s4288_s16 = scalar_lea.sflag [#allocation5], %s4279_s3 }
 0xa42   : > { %5148 = dma.done.wait (%p5001_p3), %s4288_s16, 16  }
 0xa43   : > { %5150 = vsyncadd (%p5001_p3), %s4288_s16, 4294967280  ;;  %s6258_s18 = sld [smem:[#allocation8_spill]]  ;;  %p27_p5 = scmp.ge.s32.totalorder %s5266_s14, 4  }
 0xa44   : > { %s6259_s25 = smov %s5157_s26  ;;  %s6260_s26 = smov %s5161_s27 }
 0xa45   : > { %s6262_s28 = smov %s5266_s14  ;;  %29 = sbr.rel (!%p27_p5) target bundleno = 11 (0xb), region = 123 }
 0xa49   : > { %s6261_s27 = smov %s6258_s18 }
 0xa4a   :  { %4292 = vsyncpa [#allocation3], 1 }
 0xa4b   :  { %4294 = vsyncpa [#allocation3 + $0x1], 1 }
 0xa4c   :  { %4295 = vsyncpa [#allocation5], 1 }
 0xa4d   :  { %4297 = vsyncpa [#allocation5 + $0x1], 1 }

</bundles_post_ra>
